<compile_context>
chip_gen: v5e
topology: v5e:2x2
jax: 0.10.0
libtpu: 0.0.40
codegen_flags: <defaults>
</compile_context>

<pallas_src>
import numpy as np
import jax
import jax.numpy as jnp
from jax.experimental import pallas as pl
from jax.experimental.pallas import tpu as pltpu


# ----------------------- host-side operand packing -------------------------

def _build_g(wt_dy, cin_pad, width):
    """Banded matrix for one vertical tap dy: folds the 3 horizontal taps, the
    zero padding in w and the input-channel contraction.
    wt_dy: (cout, cin, 3) -> (width*cin_pad, width*cout)."""
    cout, cin, _ = wt_dy.shape
    g = np.zeros((width * cin_pad, width * cout), np.float32)
    for dx in range(3):
        for w in range(width):
            wi = w + dx - 1                        # input column feeding output column w
            if 0 <= wi < width:
                g[wi * cin_pad: wi * cin_pad + cin,
                  w * cout: (w + 1) * cout] = wt_dy[:, :, dx].T
    return g


def _build_sh(h_in):
    """(h_in//2 + 2, h_in): picks even rows into rows 1..h_in//2 and re-emits
    zero padding rows 0 / h_in//2+1 for the next layer's vertical taps."""
    h2 = h_in // 2
    s = np.zeros((h2 + 2, h_in), np.float32)
    s[1 + np.arange(h2), 2 * np.arange(h2)] = 1.0
    return s


def _build_sw(w_in, cout):
    """(w_in*cout, (w_in//2)*cout): keeps the even image columns (all channels)."""
    w2 = w_in // 2
    s = np.zeros((w_in * cout, w2 * cout), np.float32)
    for wo in range(w2):
        for c in range(cout):
            s[(2 * wo) * cout + c, wo * cout + c] = 1.0
    return s


def _build_bias_slab(b, h2, w2):
    """(h2+2, w2*cout) conv-bias slab; zero in the pad rows so they stay 0."""
    cout = b.shape[0]
    slab = np.zeros((h2 + 2, w2 * cout), np.float32)
    slab[1:1 + h2, :] = np.tile(b, w2)[None, :]
    return slab


def init_params(key, num_channels):
    C = num_channels
    ks = jax.random.split(key, 10)
    return {
        "w1": jax.random.normal(ks[0], (C, 3, 3, 3), jnp.float32) * 0.1,
        "b1": jax.random.normal(ks[1], (C,), jnp.float32) * 0.01,
        "w2": jax.random.normal(ks[2], (2 * C, C, 3, 3), jnp.float32) * 0.1,
        "b2": jax.random.normal(ks[3], (2 * C,), jnp.float32) * 0.01,
        "w3": jax.random.normal(ks[4], (4 * C, 2 * C, 3, 3), jnp.float32) * 0.1,
        "b3": jax.random.normal(ks[5], (4 * C,), jnp.float32) * 0.01,
        "fc1_w": jax.random.normal(ks[6], (4 * C * 8 * 8, 4 * C), jnp.float32) * 0.02,
        "fc1_b": jax.random.normal(ks[7], (4 * C,), jnp.float32) * 0.01,
        "fc2_w": jax.random.normal(ks[8], (4 * C, 3), jnp.float32) * 0.1,
        "fc2_b": jax.random.normal(ks[9], (3,), jnp.float32) * 0.01,
    }


def pack_params(params, num_channels):
    """Turn PyTorch-layout parameters into the fused kernel's matmul operands."""
    C = num_channels
    layer_cfg = [  # (cin, cin_packed, cout, spatial)
        (3, 4, C, 64),
        (C, C, 2 * C, 32),
        (2 * C, 2 * C, 4 * C, 16),
    ]
    packed = {}
    for i, (_ci, cip, co, s) in enumerate(layer_cfg, start=1):
        wt = np.asarray(params[f"w{i}"], np.float32)              # (co, ci, 3, 3)
        b = np.asarray(params[f"b{i}"], np.float32)
        g = np.stack([_build_g(wt[:, :, dy, :], cip, s) for dy in range(3)])
        packed[f"g{i}"] = jnp.asarray(g, jnp.bfloat16)            # (3, s*cip, s*co)
        packed[f"sh{i}"] = jnp.asarray(_build_sh(s), jnp.bfloat16)
        packed[f"sw{i}"] = jnp.asarray(_build_sw(s, co), jnp.bfloat16)
        packed[f"bb{i}"] = jnp.asarray(_build_bias_slab(b, s // 2, s // 2), jnp.float32)

    C4 = 4 * C
    w1 = np.asarray(params["fc1_w"], np.float32)                  # torch (c,h,w) flatten
    w1r = w1.reshape(C4, 8, 8, C4).transpose(1, 2, 0, 3).reshape(8, 8 * C4, C4)
    packed["w1r"] = jnp.asarray(w1r, jnp.bfloat16)                # [h, w*C4+c, j]
    packed["b1"] = jnp.asarray(np.asarray(params["fc1_b"], np.float32)[None, :])

    w2p = np.zeros((C4, 128), np.float32)
    w2p[:, :3] = np.asarray(params["fc2_w"], np.float32)
    b2p = np.full((1, 128), -1e30, np.float32)                    # pad logits -> prob 0
    b2p[0, :3] = np.asarray(params["fc2_b"], np.float32)
    packed["w2p"] = jnp.asarray(w2p, jnp.bfloat16)
    packed["b2p"] = jnp.asarray(b2p)
    return packed


def pack_input(x_nchw):
    """NCHW image -> (B, 66, 256) slab: rows = h (+1 zero pad row each side),
    lane index = w*4 + c (channel 3 is a zero pad channel)."""
    x = jnp.transpose(x_nchw, (0, 2, 3, 1))                       # (B, 64, 64, 3)
    x = jnp.pad(x, ((0, 0), (1, 1), (0, 0), (0, 1)))              # (B, 66, 64, 4)
    b, hp, w, cp = x.shape
    return x.reshape(b, hp, w * cp).astype(jnp.float32)


# ------------------------------ Pallas kernel -------------------------------

def _conv_pool_relu(load_rows, g_ref, sh_ref, sw_ref, bb_ref):
    """One conv3x3 -> maxpool2 -> (+bias) -> relu stage on a (H+2, W*Cin) slab.
    Returns the next (H//2+2, (W//2)*Cout) slab (float32)."""
    bf16, f32 = jnp.bfloat16, jnp.float32
    n = sh_ref.shape[1]                                   # H == W (square maps)
    # conv: 3 vertical taps = 3 row-offset reads x banded bf16 matmuls (MXU)
    o = jnp.dot(load_rows(0).astype(bf16), g_ref[0], preferred_element_type=f32)
    o = o + jnp.dot(load_rows(1).astype(bf16), g_ref[1], preferred_element_type=f32)
    o = o + jnp.dot(load_rows(2).astype(bf16), g_ref[2], preferred_element_type=f32)
    cout = o.shape[1] // n
    # 2x2 maxpool: neighbour max via rolls, then tiny 0/1 selection matmuls.
    vm = jnp.maximum(o, pltpu.roll(o, shift=n - 1, axis=0))                 # row h vs h+1
    hm = jnp.maximum(vm, pltpu.roll(vm, shift=o.shape[1] - cout, axis=1))   # col w vs w+1
    p = jnp.dot(sh_ref[...], hm.astype(bf16), preferred_element_type=f32)   # even rows (+pad)
    p = jnp.dot(p.astype(bf16), sw_ref[...], preferred_element_type=f32)    # even cols
    # bias after pool (per-channel constant), then ReLU; the bias slab is zero
    # in the pad rows so they remain exactly 0 for the next layer.
    return jnp.maximum(p + bb_ref[...], 0.0)


def _imagenet_kernel(x_ref, g1, g2, g3, sh1, sh2, sh3, sw1, sw2, sw3,
                     bb1, bb2, bb3, w1r, b1, w2p, b2p, o_ref, act):
    bf16, f32 = jnp.bfloat16, jnp.float32

    # --- conv stack (all intermediates live in the VMEM scratch `act`) ---
    a = _conv_pool_relu(lambda dy: x_ref[0, pl.ds(dy, sh1.shape[1]), :],
                        g1, sh1, sw1, bb1)
    act[pl.ds(0, a.shape[0]), :] = a
    a = _conv_pool_relu(lambda dy: act[pl.ds(dy, sh2.shape[1]), :],
                        g2, sh2, sw2, bb2)
    act[pl.ds(0, a.shape[0]), :] = a
    a = _conv_pool_relu(lambda dy: act[pl.ds(dy, sh3.shape[1]), :],
                        g3, sh3, sw3, bb3)
    act[pl.ds(0, a.shape[0]), :] = a

    # --- fc1 over torch's (c, h, w) flatten: one small dot per image row ---
    h1 = b1[...]                                           # (1, 4C) f32
    for h in range(8):
        h1 = h1 + jnp.dot(act[pl.ds(1 + h, 1), :].astype(bf16), w1r[h],
                          preferred_element_type=f32)
    h1 = jnp.maximum(h1, 0.0).astype(bf16)

    # --- fc2 (padded to 128 lanes) + softmax, single unmasked (1,128) store ---
    logits = jnp.dot(h1, w2p[...], preferred_element_type=f32) + b2p[...]
    m = jnp.max(logits, axis=1, keepdims=True)
    e = jnp.exp(logits - m)
    s = jnp.sum(e, axis=1, keepdims=True)
    o_ref[0] = (e * pl.reciprocal(s, approx=True)).astype(o_ref.dtype)


def imagenet_forward(x_nchw, packed):
    x = pack_input(x_nchw)                                 # (B, 66, 256) f32
    B = x.shape[0]

    def const_spec(arr):
        if arr.ndim == 2:
            return pl.BlockSpec(arr.shape, lambda b: (0, 0))
        return pl.BlockSpec(arr.shape, lambda b: (0, 0, 0))

    names = ["g1", "g2", "g3", "sh1", "sh2", "sh3", "sw1", "sw2", "sw3",
             "bb1", "bb2", "bb3", "w1r", "b1", "w2p", "b2p"]
    consts = [packed[n] for n in names]

    out = pl.pallas_call(
        _imagenet_kernel,
        grid=(B,),
        in_specs=[pl.BlockSpec((1,) + x.shape[1:], lambda b: (b, 0, 0))]
                 + [const_spec(a) for a in consts],
        out_specs=pl.BlockSpec((1, 1, 128), lambda b: (b, 0, 0)),
        out_shape=jax.ShapeDtypeStruct((B, 1, 128), jnp.float32),
        scratch_shapes=[pltpu.VMEM((40, packed["sw1"].shape[1]), jnp.float32)],
        compiler_params=pltpu.CompilerParams(
            dimension_semantics=("parallel",)),
    )(x, *consts)
    return out[:, 0, :3]


# --------------------------- pure-XLA reference -----------------------------

def reference_forward(x_nchw, params):
    """Plain XLA forward (same math, bf16 conv/matmul operands) for checking."""
    f32 = jnp.float32

    def bf(t):
        return t.astype(jnp.bfloat16).astype(f32)

    y = x_nchw.astype(f32)
    for i in (1, 2, 3):
        w = params[f"w{i}"]
        b = params[f"b{i}"]
        y = jax.lax.conv_general_dilated(
            bf(y), bf(w), window_strides=(1, 1), padding=((1, 1), (1, 1)),
            dimension_numbers=("NCHW", "OIHW", "NCHW"))
        y = y + b[None, :, None, None]
        y = jax.lax.reduce_window(y, -jnp.inf, jax.lax.max,
                                  (1, 1, 2, 2), (1, 1, 2, 2), "VALID")
        y = jnp.maximum(y, 0.0)
    feat = y.reshape(y.shape[0], -1)
    h = jnp.maximum(jnp.dot(bf(feat), bf(params["fc1_w"])) + params["fc1_b"], 0.0)
    logits = jnp.dot(bf(h), bf(params["fc2_w"])) + params["fc2_b"]
    return jax.nn.softmax(logits, axis=1)


if __name__ == "__main__":
    num_channels = 4
    key = jax.random.PRNGKey(0)
    kx, kp = jax.random.split(key)
    # 64x64 spatial is forced by fc1's in_features = 4C*8*8 (three /2 pools).
    x = jax.random.normal(kx, (2, 3, 64, 64), jnp.float32)
    params = init_params(kp, num_channels)
    packed = pack_params(params, num_channels)

    fwd = jax.jit(imagenet_forward)
    out = jax.block_until_ready(fwd(x, packed))

    assert out.shape == (2, 3), out.shape
    assert bool(jnp.all(jnp.isfinite(out)))
    assert bool(jnp.allclose(jnp.sum(out, axis=1), 1.0, atol=1e-2))
    ref = reference_forward(x, params)
    assert bool(jnp.allclose(out, ref, atol=5e-2)), (out, ref)
    print("KERNEL_OK")
</pallas_src>

<mosaic_0001>
module attributes {stable_mosaic.version = 11 : i64} {
  func.func @_imagenet_kernel(%arg0: i32, %arg1: memref<1x66x256xf32, #tpu.memory_space<vmem>>, %arg2: memref<3x256x256xbf16, #tpu.memory_space<vmem>>, %arg3: memref<3x128x256xbf16, #tpu.memory_space<vmem>>, %arg4: memref<3x128x256xbf16, #tpu.memory_space<vmem>>, %arg5: memref<34x64xbf16, #tpu.memory_space<vmem>>, %arg6: memref<18x32xbf16, #tpu.memory_space<vmem>>, %arg7: memref<10x16xbf16, #tpu.memory_space<vmem>>, %arg8: memref<256x128xbf16, #tpu.memory_space<vmem>>, %arg9: memref<256x128xbf16, #tpu.memory_space<vmem>>, %arg10: memref<256x128xbf16, #tpu.memory_space<vmem>>, %arg11: memref<34x128xf32, #tpu.memory_space<vmem>>, %arg12: memref<18x128xf32, #tpu.memory_space<vmem>>, %arg13: memref<10x128xf32, #tpu.memory_space<vmem>>, %arg14: memref<8x128x16xbf16, #tpu.memory_space<vmem>>, %arg15: memref<1x16xf32, #tpu.memory_space<vmem>>, %arg16: memref<16x128xbf16, #tpu.memory_space<vmem>>, %arg17: memref<1x128xf32, #tpu.memory_space<vmem>>, %arg18: memref<1x1x128xf32, #tpu.memory_space<vmem>>, %arg19: memref<40x128xf32, #tpu.memory_space<vmem>>) attributes {dimension_semantics = [#tpu.dimension_semantics<parallel>], iteration_bounds = array<i64: 2>, scalar_prefetch = 0 : i64, scratch_operands = 1 : i64, tpu.core_type = #tpu.core_type<tc>, window_params = [{transform_indices = @transform_0, window_bounds = array<i64: 1, 66, 256>}, {pipeline_mode = #tpu.pipeline_mode<synchronous>, transform_indices = @transform_1, window_bounds = array<i64: 3, 256, 256>}, {pipeline_mode = #tpu.pipeline_mode<synchronous>, transform_indices = @transform_2, window_bounds = array<i64: 3, 128, 256>}, {pipeline_mode = #tpu.pipeline_mode<synchronous>, transform_indices = @transform_3, window_bounds = array<i64: 3, 128, 256>}, {pipeline_mode = #tpu.pipeline_mode<synchronous>, transform_indices = @transform_4, window_bounds = array<i64: 34, 64>}, {pipeline_mode = #tpu.pipeline_mode<synchronous>, transform_indices = @transform_5, window_bounds = array<i64: 18, 32>}, {pipeline_mode = #tpu.pipeline_mode<synchronous>, transform_indices = @transform_6, window_bounds = array<i64: 10, 16>}, {pipeline_mode = #tpu.pipeline_mode<synchronous>, transform_indices = @transform_7, window_bounds = array<i64: 256, 128>}, {pipeline_mode = #tpu.pipeline_mode<synchronous>, transform_indices = @transform_8, window_bounds = array<i64: 256, 128>}, {pipeline_mode = #tpu.pipeline_mode<synchronous>, transform_indices = @transform_9, window_bounds = array<i64: 256, 128>}, {pipeline_mode = #tpu.pipeline_mode<synchronous>, transform_indices = @transform_10, window_bounds = array<i64: 34, 128>}, {pipeline_mode = #tpu.pipeline_mode<synchronous>, transform_indices = @transform_11, window_bounds = array<i64: 18, 128>}, {pipeline_mode = #tpu.pipeline_mode<synchronous>, transform_indices = @transform_12, window_bounds = array<i64: 10, 128>}, {pipeline_mode = #tpu.pipeline_mode<synchronous>, transform_indices = @transform_13, window_bounds = array<i64: 8, 128, 16>}, {pipeline_mode = #tpu.pipeline_mode<synchronous>, transform_indices = @transform_14, window_bounds = array<i64: 1, 16>}, {pipeline_mode = #tpu.pipeline_mode<synchronous>, transform_indices = @transform_15, window_bounds = array<i64: 16, 128>}, {pipeline_mode = #tpu.pipeline_mode<synchronous>, transform_indices = @transform_16, window_bounds = array<i64: 1, 128>}, {transform_indices = @transform_17, window_bounds = array<i64: 1, 1, 128>}]} {
    %c0 = arith.constant 0 : index
    %c0_0 = arith.constant 0 : index
    %c0_1 = arith.constant 0 : index
    %0 = vector.load %arg1[%c0, %c0_0, %c0_1] : memref<1x66x256xf32, #tpu.memory_space<vmem>>, vector<1x64x256xf32>
    %1 = vector.shape_cast %0 : vector<1x64x256xf32> to vector<64x256xf32>
    %2 = arith.truncf %1 : vector<64x256xf32> to vector<64x256xbf16>
    %c0_2 = arith.constant 0 : index
    %c0_3 = arith.constant 0 : index
    %c0_4 = arith.constant 0 : index
    %3 = vector.load %arg2[%c0_2, %c0_3, %c0_4] : memref<3x256x256xbf16, #tpu.memory_space<vmem>>, vector<1x256x256xbf16>
    %4 = vector.shape_cast %3 : vector<1x256x256xbf16> to vector<256x256xbf16>
    %cst = arith.constant dense<0.000000e+00> : vector<64x256xf32>
    %5 = tpu.matmul %2, %4, %cst {dimension_numbers = #tpu.dot_dimension_numbers<[1], [0], [0], [1], [0, 0, 1, 1], [], []>} : vector<64x256xbf16>, vector<256x256xbf16>, vector<64x256xf32> -> vector<64x256xf32>
    %c0_5 = arith.constant 0 : index
    %c1 = arith.constant 1 : index
    %c0_6 = arith.constant 0 : index
    %6 = vector.load %arg1[%c0_5, %c1, %c0_6] : memref<1x66x256xf32, #tpu.memory_space<vmem>>, vector<1x64x256xf32>
    %7 = vector.shape_cast %6 : vector<1x64x256xf32> to vector<64x256xf32>
    %8 = arith.truncf %7 : vector<64x256xf32> to vector<64x256xbf16>
    %c1_7 = arith.constant 1 : index
    %c0_8 = arith.constant 0 : index
    %c0_9 = arith.constant 0 : index
    %9 = vector.load %arg2[%c1_7, %c0_8, %c0_9] : memref<3x256x256xbf16, #tpu.memory_space<vmem>>, vector<1x256x256xbf16>
    %10 = vector.shape_cast %9 : vector<1x256x256xbf16> to vector<256x256xbf16>
    %cst_10 = arith.constant dense<0.000000e+00> : vector<64x256xf32>
    %11 = tpu.matmul %8, %10, %cst_10 {dimension_numbers = #tpu.dot_dimension_numbers<[1], [0], [0], [1], [0, 0, 1, 1], [], []>} : vector<64x256xbf16>, vector<256x256xbf16>, vector<64x256xf32> -> vector<64x256xf32>
    %12 = arith.addf %5, %11 : vector<64x256xf32>
    %c0_11 = arith.constant 0 : index
    %c2 = arith.constant 2 : index
    %c0_12 = arith.constant 0 : index
    %13 = vector.load %arg1[%c0_11, %c2, %c0_12] : memref<1x66x256xf32, #tpu.memory_space<vmem>>, vector<1x64x256xf32>
    %14 = vector.shape_cast %13 : vector<1x64x256xf32> to vector<64x256xf32>
    %15 = arith.truncf %14 : vector<64x256xf32> to vector<64x256xbf16>
    %c2_13 = arith.constant 2 : index
    %c0_14 = arith.constant 0 : index
    %c0_15 = arith.constant 0 : index
    %16 = vector.load %arg2[%c2_13, %c0_14, %c0_15] : memref<3x256x256xbf16, #tpu.memory_space<vmem>>, vector<1x256x256xbf16>
    %17 = vector.shape_cast %16 : vector<1x256x256xbf16> to vector<256x256xbf16>
    %cst_16 = arith.constant dense<0.000000e+00> : vector<64x256xf32>
    %18 = tpu.matmul %15, %17, %cst_16 {dimension_numbers = #tpu.dot_dimension_numbers<[1], [0], [0], [1], [0, 0, 1, 1], [], []>} : vector<64x256xbf16>, vector<256x256xbf16>, vector<64x256xf32> -> vector<64x256xf32>
    %19 = arith.addf %12, %18 : vector<64x256xf32>
    %c63_i32 = arith.constant 63 : i32
    %20 = tpu.dynamic_rotate %19 by %c63_i32 dim 0 : vector<64x256xf32>, i32 -> vector<64x256xf32>
    %21 = arith.maximumf %19, %20 : vector<64x256xf32>
    %c252_i32 = arith.constant 252 : i32
    %22 = tpu.dynamic_rotate %21 by %c252_i32 dim 1 : vector<64x256xf32>, i32 -> vector<64x256xf32>
    %23 = arith.maximumf %21, %22 : vector<64x256xf32>
    %c0_17 = arith.constant 0 : index
    %c0_18 = arith.constant 0 : index
    %24 = vector.load %arg5[%c0_17, %c0_18] : memref<34x64xbf16, #tpu.memory_space<vmem>>, vector<34x64xbf16>
    %25 = arith.truncf %23 : vector<64x256xf32> to vector<64x256xbf16>
    %cst_19 = arith.constant dense<0.000000e+00> : vector<34x256xf32>
    %26 = tpu.matmul %24, %25, %cst_19 {dimension_numbers = #tpu.dot_dimension_numbers<[1], [0], [0], [1], [0, 0, 1, 1], [], []>} : vector<34x64xbf16>, vector<64x256xbf16>, vector<34x256xf32> -> vector<34x256xf32>
    %27 = arith.truncf %26 : vector<34x256xf32> to vector<34x256xbf16>
    %c0_20 = arith.constant 0 : index
    %c0_21 = arith.constant 0 : index
    %28 = vector.load %arg8[%c0_20, %c0_21] : memref<256x128xbf16, #tpu.memory_space<vmem>>, vector<256x128xbf16>
    %cst_22 = arith.constant dense<0.000000e+00> : vector<34x128xf32>
    %29 = tpu.matmul %27, %28, %cst_22 {dimension_numbers = #tpu.dot_dimension_numbers<[1], [0], [0], [1], [0, 0, 1, 1], [], []>} : vector<34x256xbf16>, vector<256x128xbf16>, vector<34x128xf32> -> vector<34x128xf32>
    %c0_23 = arith.constant 0 : index
    %c0_24 = arith.constant 0 : index
    %30 = vector.load %arg11[%c0_23, %c0_24] : memref<34x128xf32, #tpu.memory_space<vmem>>, vector<34x128xf32>
    %31 = arith.addf %29, %30 : vector<34x128xf32>
    %cst_25 = arith.constant 0.000000e+00 : f32
    %32 = vector.broadcast %cst_25 : f32 to vector<34x128xf32>
    %33 = arith.maximumf %31, %32 : vector<34x128xf32>
    %c0_26 = arith.constant 0 : index
    %c0_27 = arith.constant 0 : index
    %34 = vector.load %arg19[%c0_26, %c0_27] : memref<40x128xf32, #tpu.memory_space<vmem>>, vector<34x128xf32>
    tpu.vector_store %arg19[%c0_26, %c0_27], %33 {strides = array<i32>} : memref<40x128xf32, #tpu.memory_space<vmem>>, vector<34x128xf32>,
    %c0_28 = arith.constant 0 : index
    %c0_29 = arith.constant 0 : index
    %35 = vector.load %arg19[%c0_28, %c0_29] : memref<40x128xf32, #tpu.memory_space<vmem>>, vector<32x128xf32>
    %36 = arith.truncf %35 : vector<32x128xf32> to vector<32x128xbf16>
    %c0_30 = arith.constant 0 : index
    %c0_31 = arith.constant 0 : index
    %c0_32 = arith.constant 0 : index
    %37 = vector.load %arg3[%c0_30, %c0_31, %c0_32] : memref<3x128x256xbf16, #tpu.memory_space<vmem>>, vector<1x128x256xbf16>
    %38 = vector.shape_cast %37 : vector<1x128x256xbf16> to vector<128x256xbf16>
    %cst_33 = arith.constant dense<0.000000e+00> : vector<32x256xf32>
    %39 = tpu.matmul %36, %38, %cst_33 {dimension_numbers = #tpu.dot_dimension_numbers<[1], [0], [0], [1], [0, 0, 1, 1], [], []>} : vector<32x128xbf16>, vector<128x256xbf16>, vector<32x256xf32> -> vector<32x256xf32>
    %c1_34 = arith.constant 1 : index
    %c0_35 = arith.constant 0 : index
    %40 = vector.load %arg19[%c1_34, %c0_35] : memref<40x128xf32, #tpu.memory_space<vmem>>, vector<32x128xf32>
    %41 = arith.truncf %40 : vector<32x128xf32> to vector<32x128xbf16>
    %c1_36 = arith.constant 1 : index
    %c0_37 = arith.constant 0 : index
    %c0_38 = arith.constant 0 : index
    %42 = vector.load %arg3[%c1_36, %c0_37, %c0_38] : memref<3x128x256xbf16, #tpu.memory_space<vmem>>, vector<1x128x256xbf16>
    %43 = vector.shape_cast %42 : vector<1x128x256xbf16> to vector<128x256xbf16>
    %cst_39 = arith.constant dense<0.000000e+00> : vector<32x256xf32>
    %44 = tpu.matmul %41, %43, %cst_39 {dimension_numbers = #tpu.dot_dimension_numbers<[1], [0], [0], [1], [0, 0, 1, 1], [], []>} : vector<32x128xbf16>, vector<128x256xbf16>, vector<32x256xf32> -> vector<32x256xf32>
    %45 = arith.addf %39, %44 : vector<32x256xf32>
    %c2_40 = arith.constant 2 : index
    %c0_41 = arith.constant 0 : index
    %46 = vector.load %arg19[%c2_40, %c0_41] : memref<40x128xf32, #tpu.memory_space<vmem>>, vector<32x128xf32>
    %47 = arith.truncf %46 : vector<32x128xf32> to vector<32x128xbf16>
    %c2_42 = arith.constant 2 : index
    %c0_43 = arith.constant 0 : index
    %c0_44 = arith.constant 0 : index
    %48 = vector.load %arg3[%c2_42, %c0_43, %c0_44] : memref<3x128x256xbf16, #tpu.memory_space<vmem>>, vector<1x128x256xbf16>
    %49 = vector.shape_cast %48 : vector<1x128x256xbf16> to vector<128x256xbf16>
    %cst_45 = arith.constant dense<0.000000e+00> : vector<32x256xf32>
    %50 = tpu.matmul %47, %49, %cst_45 {dimension_numbers = #tpu.dot_dimension_numbers<[1], [0], [0], [1], [0, 0, 1, 1], [], []>} : vector<32x128xbf16>, vector<128x256xbf16>, vector<32x256xf32> -> vector<32x256xf32>
    %51 = arith.addf %45, %50 : vector<32x256xf32>
    %c31_i32 = arith.constant 31 : i32
    %52 = tpu.dynamic_rotate %51 by %c31_i32 dim 0 : vector<32x256xf32>, i32 -> vector<32x256xf32>
    %53 = arith.maximumf %51, %52 : vector<32x256xf32>
    %c248_i32 = arith.constant 248 : i32
    %54 = tpu.dynamic_rotate %53 by %c248_i32 dim 1 : vector<32x256xf32>, i32 -> vector<32x256xf32>
    %55 = arith.maximumf %53, %54 : vector<32x256xf32>
    %c0_46 = arith.constant 0 : index
    %c0_47 = arith.constant 0 : index
    %56 = vector.load %arg6[%c0_46, %c0_47] : memref<18x32xbf16, #tpu.memory_space<vmem>>, vector<18x32xbf16>
    %57 = arith.truncf %55 : vector<32x256xf32> to vector<32x256xbf16>
    %cst_48 = arith.constant dense<0.000000e+00> : vector<18x256xf32>
    %58 = tpu.matmul %56, %57, %cst_48 {dimension_numbers = #tpu.dot_dimension_numbers<[1], [0], [0], [1], [0, 0, 1, 1], [], []>} : vector<18x32xbf16>, vector<32x256xbf16>, vector<18x256xf32> -> vector<18x256xf32>
    %59 = arith.truncf %58 : vector<18x256xf32> to vector<18x256xbf16>
    %c0_49 = arith.constant 0 : index
    %c0_50 = arith.constant 0 : index
    %60 = vector.load %arg9[%c0_49, %c0_50] : memref<256x128xbf16, #tpu.memory_space<vmem>>, vector<256x128xbf16>
    %cst_51 = arith.constant dense<0.000000e+00> : vector<18x128xf32>
    %61 = tpu.matmul %59, %60, %cst_51 {dimension_numbers = #tpu.dot_dimension_numbers<[1], [0], [0], [1], [0, 0, 1, 1], [], []>} : vector<18x256xbf16>, vector<256x128xbf16>, vector<18x128xf32> -> vector<18x128xf32>
    %c0_52 = arith.constant 0 : index
    %c0_53 = arith.constant 0 : index
    %62 = vector.load %arg12[%c0_52, %c0_53] : memref<18x128xf32, #tpu.memory_space<vmem>>, vector<18x128xf32>
    %63 = arith.addf %61, %62 : vector<18x128xf32>
    %cst_54 = arith.constant 0.000000e+00 : f32
    %64 = vector.broadcast %cst_54 : f32 to vector<18x128xf32>
    %65 = arith.maximumf %63, %64 : vector<18x128xf32>
    %c0_55 = arith.constant 0 : index
    %c0_56 = arith.constant 0 : index
    %66 = vector.load %arg19[%c0_55, %c0_56] : memref<40x128xf32, #tpu.memory_space<vmem>>, vector<18x128xf32>
    tpu.vector_store %arg19[%c0_55, %c0_56], %65 {strides = array<i32>} : memref<40x128xf32, #tpu.memory_space<vmem>>, vector<18x128xf32>,
    %c0_57 = arith.constant 0 : index
    %c0_58 = arith.constant 0 : index
    %67 = vector.load %arg19[%c0_57, %c0_58] : memref<40x128xf32, #tpu.memory_space<vmem>>, vector<16x128xf32>
    %68 = arith.truncf %67 : vector<16x128xf32> to vector<16x128xbf16>
    %c0_59 = arith.constant 0 : index
    %c0_60 = arith.constant 0 : index
    %c0_61 = arith.constant 0 : index
    %69 = vector.load %arg4[%c0_59, %c0_60, %c0_61] : memref<3x128x256xbf16, #tpu.memory_space<vmem>>, vector<1x128x256xbf16>
    %70 = vector.shape_cast %69 : vector<1x128x256xbf16> to vector<128x256xbf16>
    %cst_62 = arith.constant dense<0.000000e+00> : vector<16x256xf32>
    %71 = tpu.matmul %68, %70, %cst_62 {dimension_numbers = #tpu.dot_dimension_numbers<[1], [0], [0], [1], [0, 0, 1, 1], [], []>} : vector<16x128xbf16>, vector<128x256xbf16>, vector<16x256xf32> -> vector<16x256xf32>
    %c1_63 = arith.constant 1 : index
    %c0_64 = arith.constant 0 : index
    %72 = vector.load %arg19[%c1_63, %c0_64] : memref<40x128xf32, #tpu.memory_space<vmem>>, vector<16x128xf32>
    %73 = arith.truncf %72 : vector<16x128xf32> to vector<16x128xbf16>
    %c1_65 = arith.constant 1 : index
    %c0_66 = arith.constant 0 : index
    %c0_67 = arith.constant 0 : index
    %74 = vector.load %arg4[%c1_65, %c0_66, %c0_67] : memref<3x128x256xbf16, #tpu.memory_space<vmem>>, vector<1x128x256xbf16>
    %75 = vector.shape_cast %74 : vector<1x128x256xbf16> to vector<128x256xbf16>
    %cst_68 = arith.constant dense<0.000000e+00> : vector<16x256xf32>
    %76 = tpu.matmul %73, %75, %cst_68 {dimension_numbers = #tpu.dot_dimension_numbers<[1], [0], [0], [1], [0, 0, 1, 1], [], []>} : vector<16x128xbf16>, vector<128x256xbf16>, vector<16x256xf32> -> vector<16x256xf32>
    %77 = arith.addf %71, %76 : vector<16x256xf32>
    %c2_69 = arith.constant 2 : index
    %c0_70 = arith.constant 0 : index
    %78 = vector.load %arg19[%c2_69, %c0_70] : memref<40x128xf32, #tpu.memory_space<vmem>>, vector<16x128xf32>
    %79 = arith.truncf %78 : vector<16x128xf32> to vector<16x128xbf16>
    %c2_71 = arith.constant 2 : index
    %c0_72 = arith.constant 0 : index
    %c0_73 = arith.constant 0 : index
    %80 = vector.load %arg4[%c2_71, %c0_72, %c0_73] : memref<3x128x256xbf16, #tpu.memory_space<vmem>>, vector<1x128x256xbf16>
    %81 = vector.shape_cast %80 : vector<1x128x256xbf16> to vector<128x256xbf16>
    %cst_74 = arith.constant dense<0.000000e+00> : vector<16x256xf32>
    %82 = tpu.matmul %79, %81, %cst_74 {dimension_numbers = #tpu.dot_dimension_numbers<[1], [0], [0], [1], [0, 0, 1, 1], [], []>} : vector<16x128xbf16>, vector<128x256xbf16>, vector<16x256xf32> -> vector<16x256xf32>
    %83 = arith.addf %77, %82 : vector<16x256xf32>
    %c15_i32 = arith.constant 15 : i32
    %84 = tpu.dynamic_rotate %83 by %c15_i32 dim 0 : vector<16x256xf32>, i32 -> vector<16x256xf32>
    %85 = arith.maximumf %83, %84 : vector<16x256xf32>
    %c240_i32 = arith.constant 240 : i32
    %86 = tpu.dynamic_rotate %85 by %c240_i32 dim 1 : vector<16x256xf32>, i32 -> vector<16x256xf32>
    %87 = arith.maximumf %85, %86 : vector<16x256xf32>
    %c0_75 = arith.constant 0 : index
    %c0_76 = arith.constant 0 : index
    %88 = vector.load %arg7[%c0_75, %c0_76] : memref<10x16xbf16, #tpu.memory_space<vmem>>, vector<10x16xbf16>
    %89 = arith.truncf %87 : vector<16x256xf32> to vector<16x256xbf16>
    %cst_77 = arith.constant dense<0.000000e+00> : vector<10x256xf32>
    %90 = tpu.matmul %88, %89, %cst_77 {dimension_numbers = #tpu.dot_dimension_numbers<[1], [0], [0], [1], [0, 0, 1, 1], [], []>} : vector<10x16xbf16>, vector<16x256xbf16>, vector<10x256xf32> -> vector<10x256xf32>
    %91 = arith.truncf %90 : vector<10x256xf32> to vector<10x256xbf16>
    %c0_78 = arith.constant 0 : index
    %c0_79 = arith.constant 0 : index
    %92 = vector.load %arg10[%c0_78, %c0_79] : memref<256x128xbf16, #tpu.memory_space<vmem>>, vector<256x128xbf16>
    %cst_80 = arith.constant dense<0.000000e+00> : vector<10x128xf32>
    %93 = tpu.matmul %91, %92, %cst_80 {dimension_numbers = #tpu.dot_dimension_numbers<[1], [0], [0], [1], [0, 0, 1, 1], [], []>} : vector<10x256xbf16>, vector<256x128xbf16>, vector<10x128xf32> -> vector<10x128xf32>
    %c0_81 = arith.constant 0 : index
    %c0_82 = arith.constant 0 : index
    %94 = vector.load %arg13[%c0_81, %c0_82] : memref<10x128xf32, #tpu.memory_space<vmem>>, vector<10x128xf32>
    %95 = arith.addf %93, %94 : vector<10x128xf32>
    %cst_83 = arith.constant 0.000000e+00 : f32
    %96 = vector.broadcast %cst_83 : f32 to vector<10x128xf32>
    %97 = arith.maximumf %95, %96 : vector<10x128xf32>
    %c0_84 = arith.constant 0 : index
    %c0_85 = arith.constant 0 : index
    %98 = vector.load %arg19[%c0_84, %c0_85] : memref<40x128xf32, #tpu.memory_space<vmem>>, vector<10x128xf32>
    tpu.vector_store %arg19[%c0_84, %c0_85], %97 {strides = array<i32>} : memref<40x128xf32, #tpu.memory_space<vmem>>, vector<10x128xf32>,
    %c0_86 = arith.constant 0 : index
    %c0_87 = arith.constant 0 : index
    %99 = vector.load %arg15[%c0_86, %c0_87] : memref<1x16xf32, #tpu.memory_space<vmem>>, vector<1x16xf32>
    %c1_88 = arith.constant 1 : index
    %c0_89 = arith.constant 0 : index
    %100 = vector.load %arg19[%c1_88, %c0_89] : memref<40x128xf32, #tpu.memory_space<vmem>>, vector<1x128xf32>
    %101 = arith.truncf %100 : vector<1x128xf32> to vector<1x128xbf16>
    %c0_90 = arith.constant 0 : index
    %c0_91 = arith.constant 0 : index
    %c0_92 = arith.constant 0 : index
    %102 = vector.load %arg14[%c0_90, %c0_91, %c0_92] : memref<8x128x16xbf16, #tpu.memory_space<vmem>>, vector<1x128x16xbf16>
    %103 = vector.shape_cast %102 : vector<1x128x16xbf16> to vector<128x16xbf16>
    %cst_93 = arith.constant dense<0.000000e+00> : vector<1x16xf32>
    %104 = tpu.matmul %101, %103, %cst_93 {dimension_numbers = #tpu.dot_dimension_numbers<[1], [0], [0], [1], [0, 0, 1, 1], [], []>} : vector<1x128xbf16>, vector<128x16xbf16>, vector<1x16xf32> -> vector<1x16xf32>
    %105 = arith.addf %99, %104 : vector<1x16xf32>
    %c2_94 = arith.constant 2 : index
    %c0_95 = arith.constant 0 : index
    %106 = vector.load %arg19[%c2_94, %c0_95] : memref<40x128xf32, #tpu.memory_space<vmem>>, vector<1x128xf32>
    %107 = arith.truncf %106 : vector<1x128xf32> to vector<1x128xbf16>
    %c1_96 = arith.constant 1 : index
    %c0_97 = arith.constant 0 : index
    %c0_98 = arith.constant 0 : index
    %108 = vector.load %arg14[%c1_96, %c0_97, %c0_98] : memref<8x128x16xbf16, #tpu.memory_space<vmem>>, vector<1x128x16xbf16>
    %109 = vector.shape_cast %108 : vector<1x128x16xbf16> to vector<128x16xbf16>
    %cst_99 = arith.constant dense<0.000000e+00> : vector<1x16xf32>
    %110 = tpu.matmul %107, %109, %cst_99 {dimension_numbers = #tpu.dot_dimension_numbers<[1], [0], [0], [1], [0, 0, 1, 1], [], []>} : vector<1x128xbf16>, vector<128x16xbf16>, vector<1x16xf32> -> vector<1x16xf32>
    %111 = arith.addf %105, %110 : vector<1x16xf32>
    %c3 = arith.constant 3 : index
    %c0_100 = arith.constant 0 : index
    %112 = vector.load %arg19[%c3, %c0_100] : memref<40x128xf32, #tpu.memory_space<vmem>>, vector<1x128xf32>
    %113 = arith.truncf %112 : vector<1x128xf32> to vector<1x128xbf16>
    %c2_101 = arith.constant 2 : index
    %c0_102 = arith.constant 0 : index
    %c0_103 = arith.constant 0 : index
    %114 = vector.load %arg14[%c2_101, %c0_102, %c0_103] : memref<8x128x16xbf16, #tpu.memory_space<vmem>>, vector<1x128x16xbf16>
    %115 = vector.shape_cast %114 : vector<1x128x16xbf16> to vector<128x16xbf16>
    %cst_104 = arith.constant dense<0.000000e+00> : vector<1x16xf32>
    %116 = tpu.matmul %113, %115, %cst_104 {dimension_numbers = #tpu.dot_dimension_numbers<[1], [0], [0], [1], [0, 0, 1, 1], [], []>} : vector<1x128xbf16>, vector<128x16xbf16>, vector<1x16xf32> -> vector<1x16xf32>
    %117 = arith.addf %111, %116 : vector<1x16xf32>
    %c4 = arith.constant 4 : index
    %c0_105 = arith.constant 0 : index
    %118 = vector.load %arg19[%c4, %c0_105] : memref<40x128xf32, #tpu.memory_space<vmem>>, vector<1x128xf32>
    %119 = arith.truncf %118 : vector<1x128xf32> to vector<1x128xbf16>
    %c3_106 = arith.constant 3 : index
    %c0_107 = arith.constant 0 : index
    %c0_108 = arith.constant 0 : index
    %120 = vector.load %arg14[%c3_106, %c0_107, %c0_108] : memref<8x128x16xbf16, #tpu.memory_space<vmem>>, vector<1x128x16xbf16>
    %121 = vector.shape_cast %120 : vector<1x128x16xbf16> to vector<128x16xbf16>
    %cst_109 = arith.constant dense<0.000000e+00> : vector<1x16xf32>
    %122 = tpu.matmul %119, %121, %cst_109 {dimension_numbers = #tpu.dot_dimension_numbers<[1], [0], [0], [1], [0, 0, 1, 1], [], []>} : vector<1x128xbf16>, vector<128x16xbf16>, vector<1x16xf32> -> vector<1x16xf32>
    %123 = arith.addf %117, %122 : vector<1x16xf32>
    %c5 = arith.constant 5 : index
    %c0_110 = arith.constant 0 : index
    %124 = vector.load %arg19[%c5, %c0_110] : memref<40x128xf32, #tpu.memory_space<vmem>>, vector<1x128xf32>
    %125 = arith.truncf %124 : vector<1x128xf32> to vector<1x128xbf16>
    %c4_111 = arith.constant 4 : index
    %c0_112 = arith.constant 0 : index
    %c0_113 = arith.constant 0 : index
    %126 = vector.load %arg14[%c4_111, %c0_112, %c0_113] : memref<8x128x16xbf16, #tpu.memory_space<vmem>>, vector<1x128x16xbf16>
    %127 = vector.shape_cast %126 : vector<1x128x16xbf16> to vector<128x16xbf16>
    %cst_114 = arith.constant dense<0.000000e+00> : vector<1x16xf32>
    %128 = tpu.matmul %125, %127, %cst_114 {dimension_numbers = #tpu.dot_dimension_numbers<[1], [0], [0], [1], [0, 0, 1, 1], [], []>} : vector<1x128xbf16>, vector<128x16xbf16>, vector<1x16xf32> -> vector<1x16xf32>
    %129 = arith.addf %123, %128 : vector<1x16xf32>
    %c6 = arith.constant 6 : index
    %c0_115 = arith.constant 0 : index
    %130 = vector.load %arg19[%c6, %c0_115] : memref<40x128xf32, #tpu.memory_space<vmem>>, vector<1x128xf32>
    %131 = arith.truncf %130 : vector<1x128xf32> to vector<1x128xbf16>
    %c5_116 = arith.constant 5 : index
    %c0_117 = arith.constant 0 : index
    %c0_118 = arith.constant 0 : index
    %132 = vector.load %arg14[%c5_116, %c0_117, %c0_118] : memref<8x128x16xbf16, #tpu.memory_space<vmem>>, vector<1x128x16xbf16>
    %133 = vector.shape_cast %132 : vector<1x128x16xbf16> to vector<128x16xbf16>
    %cst_119 = arith.constant dense<0.000000e+00> : vector<1x16xf32>
    %134 = tpu.matmul %131, %133, %cst_119 {dimension_numbers = #tpu.dot_dimension_numbers<[1], [0], [0], [1], [0, 0, 1, 1], [], []>} : vector<1x128xbf16>, vector<128x16xbf16>, vector<1x16xf32> -> vector<1x16xf32>
    %135 = arith.addf %129, %134 : vector<1x16xf32>
    %c7 = arith.constant 7 : index
    %c0_120 = arith.constant 0 : index
    %136 = vector.load %arg19[%c7, %c0_120] : memref<40x128xf32, #tpu.memory_space<vmem>>, vector<1x128xf32>
    %137 = arith.truncf %136 : vector<1x128xf32> to vector<1x128xbf16>
    %c6_121 = arith.constant 6 : index
    %c0_122 = arith.constant 0 : index
    %c0_123 = arith.constant 0 : index
    %138 = vector.load %arg14[%c6_121, %c0_122, %c0_123] : memref<8x128x16xbf16, #tpu.memory_space<vmem>>, vector<1x128x16xbf16>
    %139 = vector.shape_cast %138 : vector<1x128x16xbf16> to vector<128x16xbf16>
    %cst_124 = arith.constant dense<0.000000e+00> : vector<1x16xf32>
    %140 = tpu.matmul %137, %139, %cst_124 {dimension_numbers = #tpu.dot_dimension_numbers<[1], [0], [0], [1], [0, 0, 1, 1], [], []>} : vector<1x128xbf16>, vector<128x16xbf16>, vector<1x16xf32> -> vector<1x16xf32>
    %141 = arith.addf %135, %140 : vector<1x16xf32>
    %c8 = arith.constant 8 : index
    %c0_125 = arith.constant 0 : index
    %142 = vector.load %arg19[%c8, %c0_125] : memref<40x128xf32, #tpu.memory_space<vmem>>, vector<1x128xf32>
    %143 = arith.truncf %142 : vector<1x128xf32> to vector<1x128xbf16>
    %c7_126 = arith.constant 7 : index
    %c0_127 = arith.constant 0 : index
    %c0_128 = arith.constant 0 : index
    %144 = vector.load %arg14[%c7_126, %c0_127, %c0_128] : memref<8x128x16xbf16, #tpu.memory_space<vmem>>, vector<1x128x16xbf16>
    %145 = vector.shape_cast %144 : vector<1x128x16xbf16> to vector<128x16xbf16>
    %cst_129 = arith.constant dense<0.000000e+00> : vector<1x16xf32>
    %146 = tpu.matmul %143, %145, %cst_129 {dimension_numbers = #tpu.dot_dimension_numbers<[1], [0], [0], [1], [0, 0, 1, 1], [], []>} : vector<1x128xbf16>, vector<128x16xbf16>, vector<1x16xf32> -> vector<1x16xf32>
    %147 = arith.addf %141, %146 : vector<1x16xf32>
    %cst_130 = arith.constant 0.000000e+00 : f32
    %148 = vector.broadcast %cst_130 : f32 to vector<1x16xf32>
    %149 = arith.maximumf %147, %148 : vector<1x16xf32>
    %150 = arith.truncf %149 : vector<1x16xf32> to vector<1x16xbf16>
    %c0_131 = arith.constant 0 : index
    %c0_132 = arith.constant 0 : index
    %151 = vector.load %arg16[%c0_131, %c0_132] : memref<16x128xbf16, #tpu.memory_space<vmem>>, vector<16x128xbf16>
    %cst_133 = arith.constant dense<0.000000e+00> : vector<1x128xf32>
    %152 = tpu.matmul %150, %151, %cst_133 {dimension_numbers = #tpu.dot_dimension_numbers<[1], [0], [0], [1], [0, 0, 1, 1], [], []>} : vector<1x16xbf16>, vector<16x128xbf16>, vector<1x128xf32> -> vector<1x128xf32>
    %c0_134 = arith.constant 0 : index
    %c0_135 = arith.constant 0 : index
    %153 = vector.load %arg17[%c0_134, %c0_135] : memref<1x128xf32, #tpu.memory_space<vmem>>, vector<1x128xf32>
    %154 = arith.addf %152, %153 : vector<1x128xf32>
    %cst_136 = arith.constant dense<0xFF800000> : vector<1xf32>
    %155 = vector.multi_reduction <maximumf>, %154, %cst_136 [1] : vector<1x128xf32> to vector<1xf32>
    %156 = vector.shape_cast %155 : vector<1xf32> to vector<1x1xf32>
    %157 = vector.broadcast %156 : vector<1x1xf32> to vector<1x128xf32>
    %158 = arith.subf %154, %157 : vector<1x128xf32>
    %159 = math.exp %158 : vector<1x128xf32>
    %cst_137 = arith.constant dense<0.000000e+00> : vector<1xf32>
    %160 = vector.multi_reduction <add>, %159, %cst_137 [1] : vector<1x128xf32> to vector<1xf32>
    %161 = vector.shape_cast %160 : vector<1xf32> to vector<1x1xf32>
    %162 = tpu.reciprocal %161 {approx = true} : vector<1x1xf32> -> vector<1x1xf32>
    %163 = vector.broadcast %162 : vector<1x1xf32> to vector<1x128xf32>
    %164 = arith.mulf %159, %163 : vector<1x128xf32>
    %c0_138 = arith.constant 0 : index
    %c0_139 = arith.constant 0 : index
    %c0_140 = arith.constant 0 : index
    %165 = vector.load %arg18[%c0_138, %c0_139, %c0_140] : memref<1x1x128xf32, #tpu.memory_space<vmem>>, vector<1x1x128xf32>
    %166 = vector.shape_cast %165 : vector<1x1x128xf32> to vector<1x128xf32>
    %167 = vector.shape_cast %164 : vector<1x128xf32> to vector<1x1x128xf32>
    tpu.vector_store %arg18[%c0_138, %c0_139, %c0_140], %167 {strides = array<i32>} : memref<1x1x128xf32, #tpu.memory_space<vmem>>, vector<1x1x128xf32>,
    return
  }
  func.func @transform_0(%arg0: i32) -> (i32, i32, i32) {
    %c0_i32 = arith.constant 0 : i32
    %c0_i32_0 = arith.constant 0 : i32
    %c0_i32_1 = arith.constant 0 : i32
    return %arg0, %c0_i32, %c0_i32_0 : i32, i32, i32
  }
  func.func @transform_1(%arg0: i32) -> (i32, i32, i32) {
    %c0_i32 = arith.constant 0 : i32
    %c0_i32_0 = arith.constant 0 : i32
    %c0_i32_1 = arith.constant 0 : i32
    %c0_i32_2 = arith.constant 0 : i32
    return %c0_i32, %c0_i32_0, %c0_i32_1 : i32, i32, i32
  }
  func.func @transform_2(%arg0: i32) -> (i32, i32, i32) {
    %c0_i32 = arith.constant 0 : i32
    %c0_i32_0 = arith.constant 0 : i32
    %c0_i32_1 = arith.constant 0 : i32
    %c0_i32_2 = arith.constant 0 : i32
    return %c0_i32, %c0_i32_0, %c0_i32_1 : i32, i32, i32
  }
  func.func @transform_3(%arg0: i32) -> (i32, i32, i32) {
    %c0_i32 = arith.constant 0 : i32
    %c0_i32_0 = arith.constant 0 : i32
    %c0_i32_1 = arith.constant 0 : i32
    %c0_i32_2 = arith.constant 0 : i32
    return %c0_i32, %c0_i32_0, %c0_i32_1 : i32, i32, i32
  }
  func.func @transform_4(%arg0: i32) -> (i32, i32) {
    %c0_i32 = arith.constant 0 : i32
    %c0_i32_0 = arith.constant 0 : i32
    %c0_i32_1 = arith.constant 0 : i32
    return %c0_i32, %c0_i32_0 : i32, i32
  }
  func.func @transform_5(%arg0: i32) -> (i32, i32) {
    %c0_i32 = arith.constant 0 : i32
    %c0_i32_0 = arith.constant 0 : i32
    %c0_i32_1 = arith.constant 0 : i32
    return %c0_i32, %c0_i32_0 : i32, i32
  }
  func.func @transform_6(%arg0: i32) -> (i32, i32) {
    %c0_i32 = arith.constant 0 : i32
    %c0_i32_0 = arith.constant 0 : i32
    %c0_i32_1 = arith.constant 0 : i32
    return %c0_i32, %c0_i32_0 : i32, i32
  }
  func.func @transform_7(%arg0: i32) -> (i32, i32) {
    %c0_i32 = arith.constant 0 : i32
    %c0_i32_0 = arith.constant 0 : i32
    %c0_i32_1 = arith.constant 0 : i32
    return %c0_i32, %c0_i32_0 : i32, i32
  }
  func.func @transform_8(%arg0: i32) -> (i32, i32) {
    %c0_i32 = arith.constant 0 : i32
    %c0_i32_0 = arith.constant 0 : i32
    %c0_i32_1 = arith.constant 0 : i32
    return %c0_i32, %c0_i32_0 : i32, i32
  }
  func.func @transform_9(%arg0: i32) -> (i32, i32) {
    %c0_i32 = arith.constant 0 : i32
    %c0_i32_0 = arith.constant 0 : i32
    %c0_i32_1 = arith.constant 0 : i32
    return %c0_i32, %c0_i32_0 : i32, i32
  }
  func.func @transform_10(%arg0: i32) -> (i32, i32) {
    %c0_i32 = arith.constant 0 : i32
    %c0_i32_0 = arith.constant 0 : i32
    %c0_i32_1 = arith.constant 0 : i32
    return %c0_i32, %c0_i32_0 : i32, i32
  }
  func.func @transform_11(%arg0: i32) -> (i32, i32) {
    %c0_i32 = arith.constant 0 : i32
    %c0_i32_0 = arith.constant 0 : i32
    %c0_i32_1 = arith.constant 0 : i32
    return %c0_i32, %c0_i32_0 : i32, i32
  }
  func.func @transform_12(%arg0: i32) -> (i32, i32) {
    %c0_i32 = arith.constant 0 : i32
    %c0_i32_0 = arith.constant 0 : i32
    %c0_i32_1 = arith.constant 0 : i32
    return %c0_i32, %c0_i32_0 : i32, i32
  }
  func.func @transform_13(%arg0: i32) -> (i32, i32, i32) {
    %c0_i32 = arith.constant 0 : i32
    %c0_i32_0 = arith.constant 0 : i32
    %c0_i32_1 = arith.constant 0 : i32
    %c0_i32_2 = arith.constant 0 : i32
    return %c0_i32, %c0_i32_0, %c0_i32_1 : i32, i32, i32
  }
  func.func @transform_14(%arg0: i32) -> (i32, i32) {
    %c0_i32 = arith.constant 0 : i32
    %c0_i32_0 = arith.constant 0 : i32
    %c0_i32_1 = arith.constant 0 : i32
    return %c0_i32, %c0_i32_0 : i32, i32
  }
  func.func @transform_15(%arg0: i32) -> (i32, i32) {
    %c0_i32 = arith.constant 0 : i32
    %c0_i32_0 = arith.constant 0 : i32
    %c0_i32_1 = arith.constant 0 : i32
    return %c0_i32, %c0_i32_0 : i32, i32
  }
  func.func @transform_16(%arg0: i32) -> (i32, i32) {
    %c0_i32 = arith.constant 0 : i32
    %c0_i32_0 = arith.constant 0 : i32
    %c0_i32_1 = arith.constant 0 : i32
    return %c0_i32, %c0_i32_0 : i32, i32
  }
  func.func @transform_17(%arg0: i32) -> (i32, i32, i32) {
    %c0_i32 = arith.constant 0 : i32
    %c0_i32_0 = arith.constant 0 : i32
    %c0_i32_1 = arith.constant 0 : i32
    return %arg0, %c0_i32, %c0_i32_0 : i32, i32, i32
  }
}

</mosaic_0001>

<bundles_post_ra>
// kernel: imagenet_forward.1
= control target key start
LH: loop header
LB: loop body
LE: loop exit
PB: predicated region body
PF: predicated region fallthrough
CT: control target
= control target key end

     0   :  { %s8310_s0 = inlined_call_operand.vmem [shape: f32[2,66,256], index: 0, kind: input, shape index: {}]   ;;  %s8311_s1 = inlined_call_operand.vmem [shape: bf16[3,256,256], index: 1, kind: input, shape index: {}]   ;;  %s8312_s2 = inlined_call_operand.vmem [shape: bf16[3,128,256], index: 2, kind: input, shape index: {}]   ;;  %s8313_s3 = inlined_call_operand.vmem [shape: bf16[3,128,256], index: 3, kind: input, shape index: {}]   ;;  %s8314_s4 = inlined_call_operand.vmem [shape: bf16[34,64], index: 4, kind: input, shape index: {}]   ;;  %s8315_s5 = inlined_call_operand.vmem [shape: bf16[18,32], index: 5, kind: input, shape index: {}]   ;;  %s8316_s6 = inlined_call_operand.vmem [shape: bf16[10,16], index: 6, kind: input, shape index: {}]   ;;  %s8317_s7 = inlined_call_operand.vmem [shape: bf16[256,128], index: 7, kind: input, shape index: {}]   ;;  %s8318_s8 = inlined_call_operand.vmem [shape: bf16[256,128], index: 8, kind: input, shape index: {}]   ;;  %s8319_s9 = inlined_call_operand.vmem [shape: bf16[256,128], index: 9, kind: input, shape index: {}]   ;;  %s8320_s10 = inlined_call_operand.vmem [shape: f32[34,128], index: 10, kind: input, shape index: {}]   ;;  %s8321_s11 = inlined_call_operand.vmem [shape: f32[18,128], index: 11, kind: input, shape index: {}]   ;;  %s8322_s12 = inlined_call_operand.vmem [shape: f32[10,128], index: 12, kind: input, shape index: {}]   ;;  %s8323_s13 = inlined_call_operand.vmem [shape: bf16[8,128,16], index: 13, kind: input, shape index: {}]   ;;  %s8324_s14 = inlined_call_operand.vmem [shape: f32[1,16], index: 14, kind: input, shape index: {}]   ;;  %s8325_s15 = inlined_call_operand.vmem [shape: bf16[16,128], index: 15, kind: input, shape index: {}]   ;;  %s8326_s16 = inlined_call_operand.vmem [shape: f32[1,128], index: 16, kind: input, shape index: {}]   ;;  %s8327_s17 = inlined_call_operand.hbm [shape: f32[2,1,128], index: 17, kind: output, shape index: {}]  }
   0x1   :  { %8338 = sst [smem:[#allocation16_spill]] %s8310_s0 }
   0x2   :  { %8339 = sst [smem:[#allocation17_spill]] %s8311_s1 }
   0x3   :  { %8340 = sst [smem:[#allocation18_spill]] %s8312_s2 }
   0x4   :  { %8341 = sst [smem:[#allocation19_spill]] %s8313_s3 }
   0x5   :  { %8342 = sst [smem:[#allocation20_spill]] %s8327_s17 }
   0x6   :  { %22 = vsyncpa [#allocation4], 0 }
   0x7   :  { %24 = vsyncpa [#allocation4 + $0x1], 0  ;;  %s6220_s24 = smov 0   ;;  %s6222_s25 = smov 0  }
   0x8   :  { %s6224_s26 = smov 0   ;;  %s6226_s27 = smov 0  }
   0x9 LB: > { %8343 = sst [smem:[#allocation6_spill]] %s6113_s24  ;;  %s6241_s28 = sadd.s32 4294967295, %s6125_s27   ;;  %s6125_s27 = sphi %s6226_s27, %s8368_s27   ;;  %s6121_s26 = sphi %s6224_s26, %s8370_s26   ;;  %s6117_s25 = sphi %s6222_s25, %s8372_s25   ;;  %s6113_s24 = sphi %s6220_s24, %s8371_s24  }
   0xa   : > { %8344 = sst [smem:[#allocation7_spill]] %s6121_s26  ;;  %s4141_s29 = sadd.s32 4294967294, %s6125_s27  }
   0xb   : > { %8345 = sst [smem:[#allocation8_spill]] %s6125_s27  ;;  %s6245_s0 = sadd.s32 1, %s6125_s27  }
   0xc   : > { %8346 = sst [smem:[#allocation9_spill]] %s6245_s0  ;;  %s399_s30 = sadd.s32 1, %s6121_s26 }
   0xd   : > { %s396_s18 = ssub.s32 %s6125_s27, %s6245_s0  ;;  %p409_p0 = scmp.ne.s32.totalorder %s6121_s26, %s6117_s25 }
   0xe   : > { %p397_p1 = scmp.eq.s32.totalorder %s396_s18, 0  ;;  %p410_p2 = scmp.eq.s32.totalorder %s6241_s28, 1 }
   0xf   : > { %p415_p3 = scmp.ne.s32.totalorder %s6117_s25, %s6113_s24  ;;  %p416_p4 = scmp.eq.s32.totalorder %s4141_s29, 1 }
  0x10   : > { %s6256_s19 = scalar_select %p397_p1, %s6121_s26, %s399_s30  }
  0x11   : > { %p6258_p5 = por %p410_p2, %p409_p0  ;;  %p6262_p6 = por %p416_p4, %p415_p3 }
  0x12   : > { %8347 = sst [smem:[#allocation10_spill]] %s6256_s19  ;;  %p4144_p7 = scmp.ge.s32.totalorder %s6125_s27, 1 }
  0x13   : > { %s8348_s1 = scalar_select %p6258_p5, 1, 0 }
  0x14   : > { %s8350_s20 = scalar_select %p6262_p6, 1, 0 }
  0x15   : > { %8349 = sst [smem:[#allocation11_spill]] %s8348_s1  ;;  %p490_p8 = scmp.lt.s32.totalorder %s6125_s27, 3 }
  0x16   : > { %8351 = sst [smem:[#allocation12_spill]] %s8350_s20 }
  0x17   : > { %p491_p9 = pnand %p4144_p7, %p490_p8 }
  0x19   : > { %494 = sbr.rel (%p491_p9) target bundleno = 2572 (0xa0c), region = 88 }
  0x1e   : > { %s8352_s23 = sld [smem:[#allocation17_spill]]  ;;  %p541_p10 = scmp.lt.s32.totalorder %s6241_s28, 1  ;;  %vm644_vm0 = vsmask.f32 7424  ;;  %vm1328_vm1 = vcmask 1046528   ;;  %vm1791_vm4 = vcmask 523264  }
  0x1f   : > { %s8353_s1 = sld [smem:[#allocation16_spill]]  ;;  %s6128_s27 = smov 120   ;;  %vm2544_vm6 = vcmask 261120   ;;  %vm3189_vm8 = vcmask 130048   ;;  %vm4060_vm9 = vcmask 1040384  }
  0x20   : > { %s542_s29 = scalar_select %p541_p10, %s6241_s28, 1 }
  0x21   : > { %s8360_s2 = sld [smem:[#allocation18_spill]]  ;;  %s6129_s30 = smov 112  }
  0x22   : > { %s5946_s26 = smul.u32 144, %s542_s29  ;;  %s8361_s3 = sld [smem:[#allocation19_spill]] }
  0x23   : > { %s539_s18 = sand.u32 1, %s6117_s25   ;;  %s8363_s24 = sld [smem:[#allocation20_spill]] }
  0x24   : > { %v4236_v0 = vld [vmem:[%s8352_s23 + $0x170] sm:$0xf]  ;;  %v5684_v1 = vld [vmem:[%s8352_s23 + $0x174] sm:$0xf0]  ;;  %v5683_v5 = vld [vmem:[%s8352_s23 + $0x174] sm:$0xf] }
  0x25   : > { %v4300_v2 = vld [vmem:[%s8352_s23 + $0x1f0] sm:$0xf]  ;;  %v4237_v3 = vor.u32 %v5684_v1, %v4236_v0  ;;  %v5700_v4 = vld [vmem:[%s8352_s23 + $0x1f4] sm:$0xf0]  ;;  %v4238_v6 = vld [vmem:[%s8352_s23 + $0x178] sm:$0xf0]  ;;  %s6465_s21 = scalar_lea.vmem %s8353_s1, %s5946_s26 }
  0x26   : > { %v4301_v7 = vor.u32 %v5700_v4, %v4300_v2  ;;  %v4241_v8 = vor.u32 %v5683_v5, %v4238_v6  ;;  %v5699_v9 = vld [vmem:[%s8352_s23 + $0x1f4] sm:$0xf]  ;;  %v4302_v10 = vld [vmem:[%s8352_s23 + $0x1f8] sm:$0xf0]  ;;  %v4228_v11 = vld [vmem:[%s8352_s23 + $0x160] sm:$0xf] }
  0x27   : > { %885 = vmatpush.bf16.msra.mxu0 %v4237_v3  ;;  %v4305_v12 = vor.u32 %v5699_v9, %v4302_v10  ;;  %v5682_v13 = vld [vmem:[%s8352_s23 + $0x164] sm:$0xf0]  ;;  %v4292_v14 = vld [vmem:[%s8352_s23 + $0x1e0] sm:$0xf]  ;;  %v5681_v18 = vld [vmem:[%s8352_s23 + $0x164] sm:$0xf] }
  0x28   : > { %v5698_v15 = vld [vmem:[%s8352_s23 + $0x1e4] sm:$0xf0]  ;;  %914 = vmatpush.bf16.msra.mxu1 %v4301_v7  ;;  %943 = vmatpush.bf16.msra.mxu2 %v4241_v8  ;;  %v4229_v16 = vor.u32 %v5682_v13, %v4228_v11  ;;  %v4230_v19 = vld [vmem:[%s8352_s23 + $0x168] sm:$0xf0]  ;;  %v5697_v20 = vld [vmem:[%s8352_s23 + $0x1e4] sm:$0xf] }
  0x29   : > { %v4293_v17 = vor.u32 %v5698_v15, %v4292_v14  ;;  %972 = vmatpush.bf16.msra.mxu3 %v4305_v12  ;;  %v4233_v21 = vor.u32 %v5681_v18, %v4230_v19  ;;  %v4294_v22 = vld [vmem:[%s8352_s23 + $0x1e8] sm:$0xf0]  ;;  %v4220_v23 = vld [vmem:[%s8352_s23 + $0x150] sm:$0xf]  ;;  %v5680_v24 = vld [vmem:[%s8352_s23 + $0x154] sm:$0xf0]  ;;  %s8364_s20 = smov %s8363_s24 }
  0x2a   : > { %v4297_v25 = vor.u32 %v5697_v20, %v4294_v22  ;;  %v4284_v26 = vld [vmem:[%s8352_s23 + $0x1d0] sm:$0xf]  ;;  %v5696_v27 = vld [vmem:[%s8352_s23 + $0x1d4] sm:$0xf0]  ;;  %v5679_v28 = vld [vmem:[%s8352_s23 + $0x154] sm:$0xf]  ;;  %v4221_v29 = vor.u32 %v5680_v24, %v4220_v23 }
  0x2b   : > { %886 = vmatpush.bf16.msra.mxu0 %v4229_v16  ;;  %v4222_v30 = vld [vmem:[%s8352_s23 + $0x158] sm:$0xf0]  ;;  %v5695_v31 = vld [vmem:[%s8352_s23 + $0x1d4] sm:$0xf]  ;;  %v4285_v33 = vor.u32 %v5696_v27, %v4284_v26  ;;  %v4212_v35 = vld [vmem:[%s8352_s23 + $0x140] sm:$0xf] }
  0x2c   : > { %v4286_v32 = vld [vmem:[%s8352_s23 + $0x1d8] sm:$0xf0]  ;;  %915 = vmatpush.bf16.msra.mxu1 %v4293_v17  ;;  %944 = vmatpush.bf16.msra.mxu2 %v4233_v21  ;;  %v4225_v34 = vor.u32 %v5679_v28, %v4222_v30  ;;  %v5678_v36 = vld [vmem:[%s8352_s23 + $0x144] sm:$0xf0]  ;;  %v4276_v37 = vld [vmem:[%s8352_s23 + $0x1c0] sm:$0xf] }
  0x2d   : > { %973 = vmatpush.bf16.msra.mxu3 %v4297_v25  ;;  %v4289_v38 = vor.u32 %v5695_v31, %v4286_v32  ;;  %v5694_v39 = vld [vmem:[%s8352_s23 + $0x1c4] sm:$0xf0]  ;;  %v5677_v40 = vld [vmem:[%s8352_s23 + $0x144] sm:$0xf]  ;;  %v4214_v41 = vld [vmem:[%s8352_s23 + $0x148] sm:$0xf0]  ;;  %v4213_v44 = vor.u32 %v5678_v36, %v4212_v35 }
  0x2e   : > { %v5693_v42 = vld [vmem:[%s8352_s23 + $0x1c4] sm:$0xf]  ;;  %v4278_v43 = vld [vmem:[%s8352_s23 + $0x1c8] sm:$0xf0]  ;;  %v4277_v45 = vor.u32 %v5694_v39, %v4276_v37  ;;  %v4217_v46 = vor.u32 %v5677_v40, %v4214_v41  ;;  %v4204_v47 = vld [vmem:[%s8352_s23 + $0x130] sm:$0xf] }
  0x2f   : > { %887 = vmatpush.bf16.msra.mxu0 %v4221_v29  ;;  %v5676_v48 = vld [vmem:[%s8352_s23 + $0x134] sm:$0xf0]  ;;  %v4268_v49 = vld [vmem:[%s8352_s23 + $0x1b0] sm:$0xf]  ;;  %v4281_v50 = vor.u32 %v5693_v42, %v4278_v43  ;;  %v5675_v52 = vld [vmem:[%s8352_s23 + $0x134] sm:$0xf] }
  0x30   : > { %916 = vmatpush.bf16.msra.mxu1 %v4285_v33  ;;  %945 = vmatpush.bf16.msra.mxu2 %v4225_v34  ;;  %v5692_v51 = vld [vmem:[%s8352_s23 + $0x1b4] sm:$0xf0]  ;;  %v4206_v53 = vld [vmem:[%s8352_s23 + $0x138] sm:$0xf0]  ;;  %v5691_v54 = vld [vmem:[%s8352_s23 + $0x1b4] sm:$0xf]  ;;  %v4205_v56 = vor.u32 %v5676_v48, %v4204_v47 }
  0x31   : > { %974 = vmatpush.bf16.msra.mxu3 %v4289_v38  ;;  %v4270_v55 = vld [vmem:[%s8352_s23 + $0x1b8] sm:$0xf0]  ;;  %v4269_v57 = vor.u32 %v5692_v51, %v4268_v49  ;;  %v4209_v58 = vor.u32 %v5675_v52, %v4206_v53  ;;  %v4196_v59 = vld [vmem:[%s8352_s23 + $0x120] sm:$0xf]  ;;  %v5674_v60 = vld [vmem:[%s8352_s23 + $0x124] sm:$0xf0] }
  0x32   : > { %v4260_v61 = vld [vmem:[%s8352_s23 + $0x1a0] sm:$0xf]  ;;  %v4273_v62 = vor.u32 %v5691_v54, %v4270_v55  ;;  %v5690_v63 = vld [vmem:[%s8352_s23 + $0x1a4] sm:$0xf0]  ;;  %v5673_v0 = vld [vmem:[%s8352_s23 + $0x124] sm:$0xf]  ;;  %v4197_v4 = vor.u32 %v5674_v60, %v4196_v59 }
  0x33   : > { %888 = vmatpush.bf16.msra.mxu0 %v4213_v44  ;;  %v4198_v1 = vld [vmem:[%s8352_s23 + $0x128] sm:$0xf0]  ;;  %v5689_v2 = vld [vmem:[%s8352_s23 + $0x1a4] sm:$0xf]  ;;  %v4188_v5 = vld [vmem:[%s8352_s23 + $0x110] sm:$0xf]  ;;  %v4261_v6 = vor.u32 %v5690_v63, %v4260_v61 }
  0x34   : > { %917 = vmatpush.bf16.msra.mxu1 %v4277_v45  ;;  %946 = vmatpush.bf16.msra.mxu2 %v4217_v46  ;;  %v4262_v3 = vld [vmem:[%s8352_s23 + $0x1a8] sm:$0xf0]  ;;  %v4201_v7 = vor.u32 %v5673_v0, %v4198_v1  ;;  %v5672_v8 = vld [vmem:[%s8352_s23 + $0x114] sm:$0xf0]  ;;  %v4252_v9 = vld [vmem:[%s8352_s23 + $0x190] sm:$0xf] }
  0x35   : > { %975 = vmatpush.bf16.msra.mxu3 %v4281_v50  ;;  %v5688_v10 = vld [vmem:[%s8352_s23 + $0x194] sm:$0xf0]  ;;  %v4265_v11 = vor.u32 %v5689_v2, %v4262_v3  ;;  %v5671_v12 = vld [vmem:[%s8352_s23 + $0x114] sm:$0xf]  ;;  %v4190_v13 = vld [vmem:[%s8352_s23 + $0x118] sm:$0xf0]  ;;  %v4189_v16 = vor.u32 %v5672_v8, %v4188_v5 }
  0x36   : > { %v5687_v14 = vld [vmem:[%s8352_s23 + $0x194] sm:$0xf]  ;;  %v4254_v15 = vld [vmem:[%s8352_s23 + $0x198] sm:$0xf0]  ;;  %v4180_v17 = vld [vmem:[%s8352_s23 + $0x100] sm:$0xf]  ;;  %v4253_v18 = vor.u32 %v5688_v10, %v4252_v9  ;;  %v4193_v19 = vor.u32 %v5671_v12, %v4190_v13 }
  0x37   : > { %889 = vmatpush.bf16.msra.mxu0 %v4205_v56  ;;  %v5670_v20 = vld [vmem:[%s8352_s23 + $0x104] sm:$0xf0]  ;;  %v4244_v21 = vld [vmem:[%s8352_s23 + $0x180] sm:$0xf]  ;;  %v4257_v23 = vor.u32 %v5687_v14, %v4254_v15  ;;  %v5669_v24 = vld [vmem:[%s8352_s23 + $0x104] sm:$0xf] }
  0x38   : > { %918 = vmatpush.bf16.msra.mxu1 %v4269_v57  ;;  %947 = vmatpush.bf16.msra.mxu2 %v4209_v58  ;;  %v5686_v22 = vld [vmem:[%s8352_s23 + $0x184] sm:$0xf0]  ;;  %v4182_v25 = vld [vmem:[%s8352_s23 + $0x108] sm:$0xf0]  ;;  %v5685_v26 = vld [vmem:[%s8352_s23 + $0x184] sm:$0xf]  ;;  %v4181_v28 = vor.u32 %v5670_v20, %v4180_v17 }
  0x39   : > { %976 = vmatpush.bf16.msra.mxu3 %v4273_v62  ;;  %v4246_v27 = vld [vmem:[%s8352_s23 + $0x188] sm:$0xf0]  ;;  %v4245_v29 = vor.u32 %v5686_v22, %v4244_v21  ;;  %v4185_v30 = vor.u32 %v5669_v24, %v4182_v25  ;;  %v6468_v31 = vld [vmem:[%s6465_s21 + $0x10] sm:$0xff]  ;;  %v551_v32 = vld [vmem:[%s6465_s21 + $0x20] sm:$0xff]  ;;  %s4074_s29 = scalar_lea.sflag [#allocation4], %s539_s18 }
  0x3a   : > { %v553_v33 = vld [vmem:[%s6465_s21 + $0x30] sm:$0xff]  ;;  %v4249_v34 = vor.u32 %v5685_v26, %v4246_v27  ;;  %v603_v36 = vld [vmem:[%s6465_s21] sm:$0xfe]  ;;  %v6476_v37 = vld [vmem:[%s6465_s21 + $0x18] sm:$0xff] }
  0x3b   : > { %890 = vmatpush.bf16.msra.mxu0 %v4197_v4  ;;  %v6472_v35 = vpack.c.bf16 %v553_v33, %v551_v32  ;;  %v552_v38 = vld [vmem:[%s6465_s21 + $0x28] sm:$0xff]  ;;  %v607_v39 = vpack.c.bf16 %v6468_v31, %v603_v36  ;;  %v554_v40 = vld [vmem:[%s6465_s21 + $0x38] sm:$0xff]  ;;  %v555_v47 = vld [vmem:[%s6465_s21 + $0x40] sm:$0xff] }
  0x3c   : > { %919 = vmatpush.bf16.msra.mxu1 %v4261_v6  ;;  %948 = vmatpush.bf16.msra.mxu2 %v4201_v7  ;;  %v604_v41 = vld [vmem:[%s6465_s21 + $0x8] sm:$0xfe]  ;;  %v6483_v43 = vpack.c.bf16 %v554_v40, %v552_v38  ;;  %v557_v48 = vld [vmem:[%s6465_s21 + $0x50] sm:$0xff]  ;;  %v558_v55 = vld [vmem:[%s6465_s21 + $0x58] sm:$0xff] }
  0x3d   : > { %977 = vmatpush.bf16.msra.mxu3 %v4265_v11  ;;  %v653_v42 = vshll.u32 %v6472_v35, 16  ;;  %v608_v44 = vpack.c.bf16 %v6476_v37, %v604_v41  ;;  %v646_v45 = vshrl.u32 %v607_v39, 16  ;;  %v648_v46 = vshll.u32 %v607_v39, 16  ;;  %v556_v54 = vld [vmem:[%s6465_s21 + $0x48] sm:$0xff]  ;;  %v4364_v63 = vld [vmem:[%s8352_s23 + $0x70] sm:$0xf] }
  0x3e   : > { %v665_v51 = vshll.u32 %v6483_v43, 16  ;;  %v6495_v58 = vpack.c.bf16 %v557_v48, %v555_v47  ;;  %v6497_v61 = vpack.c.bf16 %v558_v55, %v556_v54  ;;  %v5652_v0 = vld [vmem:[%s8352_s23 + $0x74] sm:$0xf0]  ;;  %v669_v2 = vshrl.u32 %v6472_v35, 16  ;;  %v4428_v4 = vld [vmem:[%s8352_s23 + $0xf0] sm:$0xf] }
  0x3f   : > { %891 = vmatpush.bf16.msra.mxu0 %v4189_v16  ;;  %v658_v49 = vshrl.u32 %v608_v44, 16  ;;  %v660_v50 = vshll.u32 %v608_v44, 16  ;;  %v650_v52 = vrot.slane %v648_v46, 1  ;;  %v6489_v53 = vrot.slane %v653_v42, 1  ;;  %v5668_v5 = vld [vmem:[%s8352_s23 + $0xf4] sm:$0xf0] }
  0x40   : > { %920 = vmatpush.bf16.msra.mxu1 %v4253_v18  ;;  %949 = vmatpush.bf16.msra.mxu2 %v4193_v19  ;;  %v6493_v57 = vrot.slane %v665_v51, 1  ;;  %v673_v3 = vshll.u32 %v6495_v58, 16  ;;  %v4365_v6 = vor.u32 %v5652_v0, %v4364_v63  ;;  %v4429_v7 = vor.u32 %v5668_v5, %v4428_v4  ;;  %v5651_v8 = vld [vmem:[%s8352_s23 + $0x74] sm:$0xf]  ;;  %v4366_v9 = vld [vmem:[%s8352_s23 + $0x78] sm:$0xf0] }
  0x41   : > { %978 = vmatpush.bf16.msra.mxu3 %v4257_v23  ;;  %v662_v56 = vrot.slane %v660_v50, 1  ;;  %v651_v59 = vor.u32 %v650_v52, %v646_v45  ;;  %v5667_v10 = vld [vmem:[%s8352_s23 + $0xf4] sm:$0xf]  ;;  %v677_v11 = vshrl.u32 %v6483_v43, 16  ;;  %v681_v12 = vshll.u32 %v6497_v61, 16  ;;  %v560_v50 = vld [vmem:[%s6465_s21 + $0x68] sm:$0xff] }
  0x42   : > { %v4369_v13 = vor.u32 %v5651_v8, %v4366_v9  ;;  %v4430_v14 = vld [vmem:[%s8352_s23 + $0xf8] sm:$0xf0]  ;;  %v4356_v15 = vld [vmem:[%s8352_s23 + $0x60] sm:$0xf]  ;;  %v5650_v17 = vld [vmem:[%s8352_s23 + $0x64] sm:$0xf0]  ;;  %v671_v48 = vor.u32 %v669_v2, %v6489_v53 }
  0x43   : > { %892 = vmatpush.bf16.msra.mxu0 %v4181_v28  ;;  %v663_v60 = vor.u32 %v662_v56, %v658_v49  ;;  %v656_v62 = vsel %vm644_vm0, %v651_v59, %v6489_v53  ;;  %v4433_v16 = vor.u32 %v5667_v10, %v4430_v14  ;;  %v4420_v18 = vld [vmem:[%s8352_s23 + $0xe0] sm:$0xf]  ;;  %v5666_v19 = vld [vmem:[%s8352_s23 + $0xe4] sm:$0xf0]  ;;  %v4357_v20 = vor.u32 %v5650_v17, %v4356_v15  ;;  %v5649_v22 = vld [vmem:[%s8352_s23 + $0x64] sm:$0xf] }
  0x44   : > { %921 = vmatpush.bf16.msra.mxu1 %v4245_v29  ;;  %950 = vmatpush.bf16.msra.mxu2 %v4185_v30  ;;  %v4421_v21 = vor.u32 %v5666_v19, %v4420_v18  ;;  %v4358_v23 = vld [vmem:[%s8352_s23 + $0x68] sm:$0xf0]  ;;  %v5665_v24 = vld [vmem:[%s8352_s23 + $0xe4] sm:$0xf]  ;;  %v4348_v27 = vld [vmem:[%s8352_s23 + $0x50] sm:$0xf]  ;;  %v679_v55 = vor.u32 %v677_v11, %v6493_v57 }
  0x45   : > { %979 = vmatpush.bf16.msra.mxu3 %v4249_v34  ;;  %v668_v1 = vsel %vm644_vm0, %v663_v60, %v6493_v57  ;;  %v4361_v25 = vor.u32 %v5649_v22, %v4358_v23  ;;  %v4422_v26 = vld [vmem:[%s8352_s23 + $0xe8] sm:$0xf0]  ;;  %v5648_v28 = vld [vmem:[%s8352_s23 + $0x54] sm:$0xf0]  ;;  %v559_v29 = vld [vmem:[%s6465_s21 + $0x60] sm:$0xff]  ;;  %v6591_v49 = vrot.slane %v673_v3, 1 }
  0x46   : > { %893 = vmatmul.bf16.vlgmr.msra.gmra.mxu0 %v656_v62  ;;  %v561_v30 = vld [vmem:[%s6465_s21 + $0x70] sm:$0xff]  ;;  %v4425_v32 = vor.u32 %v5665_v24, %v4422_v26  ;;  %v5664_v34 = vld [vmem:[%s8352_s23 + $0xd4] sm:$0xf0]  ;;  %v4349_v38 = vor.u32 %v5648_v28, %v4348_v27  ;;  %v4350_v40 = vld [vmem:[%s8352_s23 + $0x58] sm:$0xf0]  ;;  %v6599_v56 = vrot.slane %v681_v12, 1 }
  0x47   : > { %951 = vmatmul.bf16.vlgmr.msra.gmra.mxu2 %v656_v62  ;;  %922 = vmatmul.bf16.vlgmr.msra.gmra.mxu1 %v668_v1  ;;  %v4412_v33 = vld [vmem:[%s8352_s23 + $0xd0] sm:$0xf]  ;;  %v5647_v36 = vld [vmem:[%s8352_s23 + $0x54] sm:$0xf]  ;;  %v4414_v42 = vld [vmem:[%s8352_s23 + $0xd8] sm:$0xf0]  ;;  %v6604_v60 = vpack.c.bf16 %v561_v30, %v559_v29  ;;  %v676_v2 = vsel %vm644_vm0, %v671_v48, %v6591_v49 }
  0x48   : > { %980 = vmatmul.bf16.vlgmr.msra.gmra.mxu3 %v668_v1  ;;  %1161 = vmatpush.bf16.msrb.mxu0 %v4365_v6  ;;  %v4413_v39 = vor.u32 %v5664_v34, %v4412_v33  ;;  %v5663_v41 = vld [vmem:[%s8352_s23 + $0xd4] sm:$0xf]  ;;  %v4353_v44 = vor.u32 %v5647_v36, %v4350_v40  ;;  %v4340_v45 = vld [vmem:[%s8352_s23 + $0x40] sm:$0xf]  ;;  %v5646_v46 = vld [vmem:[%s8352_s23 + $0x44] sm:$0xf0]  ;;  %v684_v3 = vsel %vm644_vm0, %v679_v55, %v6599_v56 }
  0x49   : > { %1190 = vmatpush.bf16.msrb.mxu1 %v4429_v7  ;;  %1219 = vmatpush.bf16.msrb.mxu2 %v4369_v13  ;;  %v4404_v47 = vld [vmem:[%s8352_s23 + $0xc0] sm:$0xf]  ;;  %v562_v51 = vld [vmem:[%s6465_s21 + $0x78] sm:$0xff]  ;;  %v4417_v52 = vor.u32 %v5663_v41, %v4414_v42  ;;  %v5662_v54 = vld [vmem:[%s8352_s23 + $0xc4] sm:$0xf0]  ;;  %v4341_v53 = vor.u32 %v5646_v46, %v4340_v45  ;;  %v685_v6 = vshrl.u32 %v6495_v58, 16 }
  0x4a   : > { %1248 = vmatpush.bf16.msrb.mxu3 %v4433_v16  ;;  %v5645_v59 = vld [vmem:[%s8352_s23 + $0x44] sm:$0xf]  ;;  %v4405_v62 = vor.u32 %v5662_v54, %v4404_v47  ;;  %v4342_v63 = vld [vmem:[%s8352_s23 + $0x48] sm:$0xf0]  ;;  %v6615_v1 = vpack.c.bf16 %v562_v51, %v560_v50  ;;  %v689_v7 = vshll.u32 %v6604_v60, 16  ;;  %v693_v10 = vshrl.u32 %v6497_v61, 16 }
  0x4b   : > { %v5661_v57 = vld [vmem:[%s8352_s23 + $0xc4] sm:$0xf]  ;;  %v4406_v0 = vld [vmem:[%s8352_s23 + $0xc8] sm:$0xf0]  ;;  %v4345_v4 = vor.u32 %v5645_v59, %v4342_v63  ;;  %v4332_v8 = vld [vmem:[%s8352_s23 + $0x30] sm:$0xf]  ;;  %v687_v54 = vor.u32 %v685_v6, %v6591_v49 }
  0x4c   : > { %1162 = vmatpush.bf16.msrb.mxu0 %v4357_v20  ;;  %v4409_v5 = vor.u32 %v5661_v57, %v4406_v0  ;;  %v5644_v9 = vld [vmem:[%s8352_s23 + $0x34] sm:$0xf0]  ;;  %v697_v11 = vshll.u32 %v6615_v1, 16  ;;  %v4396_v13 = vld [vmem:[%s8352_s23 + $0xb0] sm:$0xf]  ;;  %v691_v55 = vrot.slane %v689_v7, 1  ;;  %v695_v59 = vor.u32 %v693_v10, %v6599_v56 }
  0x4d   : > { %1191 = vmatpush.bf16.msrb.mxu1 %v4421_v21  ;;  %1220 = vmatpush.bf16.msrb.mxu2 %v4361_v25  ;;  %v4333_v12 = vor.u32 %v5644_v9, %v4332_v8  ;;  %v5660_v14 = vld [vmem:[%s8352_s23 + $0xb4] sm:$0xf0]  ;;  %v5643_v16 = vld [vmem:[%s8352_s23 + $0x34] sm:$0xf]  ;;  %v4334_v17 = vld [vmem:[%s8352_s23 + $0x38] sm:$0xf0] }
  0x4e   : > { %1249 = vmatpush.bf16.msrb.mxu3 %v4425_v32  ;;  %v4397_v15 = vor.u32 %v5660_v14, %v4396_v13  ;;  %v5659_v18 = vld [vmem:[%s8352_s23 + $0xb4] sm:$0xf]  ;;  %v4337_v19 = vor.u32 %v5643_v16, %v4334_v17  ;;  %v4398_v20 = vld [vmem:[%s8352_s23 + $0xb8] sm:$0xf0]  ;;  %v4324_v21 = vld [vmem:[%s8352_s23 + $0x20] sm:$0xf] }
  0x4f   : > { %v5642_v22 = vld [vmem:[%s8352_s23 + $0x24] sm:$0xf0]  ;;  %v4401_v23 = vor.u32 %v5659_v18, %v4398_v20  ;;  %v4388_v25 = vld [vmem:[%s8352_s23 + $0xa0] sm:$0xf]  ;;  %v5641_v27 = vld [vmem:[%s8352_s23 + $0x24] sm:$0xf] }
  0x50   : > { %1163 = vmatpush.bf16.msrb.mxu0 %v4349_v38  ;;  %v4325_v24 = vor.u32 %v5642_v22, %v4324_v21  ;;  %v5658_v26 = vld [vmem:[%s8352_s23 + $0xa4] sm:$0xf0]  ;;  %v4326_v29 = vld [vmem:[%s8352_s23 + $0x28] sm:$0xf0]  ;;  %v5657_v30 = vld [vmem:[%s8352_s23 + $0xa4] sm:$0xf] }
  0x51   : > { %1192 = vmatpush.bf16.msrb.mxu1 %v4413_v39  ;;  %1221 = vmatpush.bf16.msrb.mxu2 %v4353_v44  ;;  %v4389_v28 = vor.u32 %v5658_v26, %v4388_v25  ;;  %v4390_v32 = vld [vmem:[%s8352_s23 + $0xa8] sm:$0xf0]  ;;  %v4316_v33 = vld [vmem:[%s8352_s23 + $0x10] sm:$0xf]  ;;  %v5640_v34 = vld [vmem:[%s8352_s23 + $0x14] sm:$0xf0]  ;;  %v4329_v38 = vor.u32 %v5641_v27, %v4326_v29 }
  0x52   : > { %1250 = vmatpush.bf16.msrb.mxu3 %v4417_v52  ;;  %v4380_v36 = vld [vmem:[%s8352_s23 + $0x90] sm:$0xf]  ;;  %v4393_v39 = vor.u32 %v5657_v30, %v4390_v32  ;;  %v5656_v40 = vld [vmem:[%s8352_s23 + $0x94] sm:$0xf0]  ;;  %v5639_v41 = vld [vmem:[%s8352_s23 + $0x14] sm:$0xf]  ;;  %v4317_v44 = vor.u32 %v5640_v34, %v4316_v33 }
  0x53   : > { %v4318_v42 = vld [vmem:[%s8352_s23 + $0x18] sm:$0xf0]  ;;  %v4381_v45 = vor.u32 %v5656_v40, %v4380_v36  ;;  %v5655_v46 = vld [vmem:[%s8352_s23 + $0x94] sm:$0xf]  ;;  %v4308_v48 = vld [vmem:[%s8352_s23] sm:$0xf] }
  0x54   : > { %1164 = vmatpush.bf16.msrb.mxu0 %v4341_v53  ;;  %v4382_v47 = vld [vmem:[%s8352_s23 + $0x98] sm:$0xf0]  ;;  %v5638_v50 = vld [vmem:[%s8352_s23 + $0x4] sm:$0xf0]  ;;  %v4372_v51 = vld [vmem:[%s8352_s23 + $0x80] sm:$0xf] }
  0x55   : > { %1193 = vmatpush.bf16.msrb.mxu1 %v4405_v62  ;;  %1222 = vmatpush.bf16.msrb.mxu2 %v4345_v4  ;;  %v5654_v52 = vld [vmem:[%s8352_s23 + $0x84] sm:$0xf0]  ;;  %v699_v53 = vrot.slane %v697_v11, 1  ;;  %v4321_v62 = vor.u32 %v5639_v41, %v4318_v42  ;;  %v4385_v63 = vor.u32 %v5655_v46, %v4382_v47  ;;  %v5637_v57 = vld [vmem:[%s8352_s23 + $0x4] sm:$0xf]  ;;  %v4309_v0 = vor.u32 %v5638_v50, %v4308_v48 }
  0x56   : > { %898 = vmatmul.bf16.gmra.mxu0 %v676_v2  ;;  %1251 = vmatpush.bf16.msrb.mxu3 %v4409_v5  ;;  %v4310_v49 = vld [vmem:[%s8352_s23 + $0x8] sm:$0xf0]  ;;  %v5653_v56 = vld [vmem:[%s8352_s23 + $0x84] sm:$0xf]  ;;  %v692_v4 = vsel %vm644_vm0, %v687_v54, %v691_v55  ;;  %v605_v6 = vld [vmem:[%s6465_s21 + $0x80] sm:$0x1] }
  0x57   : > { %956 = vmatmul.bf16.gmra.mxu2 %v676_v2  ;;  %927 = vmatmul.bf16.gmra.mxu1 %v684_v3  ;;  %v4373_v2 = vor.u32 %v5654_v52, %v4372_v51  ;;  %v700_v5 = vsel %vm644_vm0, %v695_v59, %v699_v53  ;;  %v4313_v7 = vor.u32 %v5637_v57, %v4310_v49  ;;  %v606_v9 = vld [vmem:[%s6465_s21 + $0x88] sm:$0x1]  ;;  %v709_v14 = vshrl.u32 %v6615_v1, 16  ;;  %v547_v22 = vld [vmem:[%s6465_s21] sm:$0xff]  ;;  %v4524_v26 = vld [vmem:[%s8352_s23 + $0x270] sm:$0xf] }
  0x58   : > { %985 = vmatmul.bf16.gmra.mxu3 %v684_v3  ;;  %1165 = vmatpush.bf16.msrb.mxu0 %v4333_v12  ;;  %v4374_v3 = vld [vmem:[%s8352_s23 + $0x88] sm:$0xf0]  ;;  %v609_v10 = vpack.c.bf16 %v605_v6, %v605_v6  ;;  %v610_v11 = vpack.c.bf16 %v606_v9, %v606_v9  ;;  %v701_v12 = vshrl.u32 %v6604_v60, 16  ;;  %v5716_v27 = vld [vmem:[%s8352_s23 + $0x274] sm:$0xf0] }
  0x59   : > { %1194 = vmatpush.bf16.msrb.mxu1 %v4397_v15  ;;  %1223 = vmatpush.bf16.msrb.mxu2 %v4337_v19  ;;  %v4377_v8 = vor.u32 %v5653_v56, %v4374_v3  ;;  %v711_v18 = vor.u32 %v709_v14, %v699_v53  ;;  %v4525_v29 = vor.u32 %v5716_v27, %v4524_v26  ;;  %v5732_v30 = vld [vmem:[%s8352_s23 + $0x2f4] sm:$0xf0]  ;;  %v5715_v32 = vld [vmem:[%s8352_s23 + $0x274] sm:$0xf]  ;;  %v4526_v33 = vld [vmem:[%s8352_s23 + $0x278] sm:$0xf0] }
  0x5a   : > { %1252 = vmatpush.bf16.msrb.mxu3 %v4401_v23  ;;  %v705_v13 = vshll.u32 %v609_v10, 16  ;;  %v713_v15 = vshll.u32 %v610_v11, 16  ;;  %v703_v16 = vor.u32 %v701_v12, %v691_v55  ;;  %v548_v23 = vld [vmem:[%s6465_s21 + $0x8] sm:$0xff]  ;;  %v4529_v36 = vor.u32 %v5715_v32, %v4526_v33  ;;  %v4516_v40 = vld [vmem:[%s8352_s23 + $0x260] sm:$0xf] }
  0x5b   : > { %v564_v25 = vpack.c.bf16 %v6476_v37, %v548_v23  ;;  %v5714_v42 = vld [vmem:[%s8352_s23 + $0x264] sm:$0xf0]  ;;  %v5713_v48 = vld [vmem:[%s8352_s23 + $0x264] sm:$0xf]  ;;  %v4518_v50 = vld [vmem:[%s8352_s23 + $0x268] sm:$0xf0] }
  0x5c   : > { %1166 = vmatpush.bf16.msrb.mxu0 %v4325_v24  ;;  %v707_v17 = vrot.slane %v705_v13, 1  ;;  %v715_v19 = vrot.slane %v713_v15, 1  ;;  %v563_v24 = vpack.c.bf16 %v6468_v31, %v547_v22  ;;  %v4517_v46 = vor.u32 %v5714_v42, %v4516_v40  ;;  %v5729_v51 = vld [vmem:[%s8352_s23 + $0x2e4] sm:$0xf]  ;;  %v4582_v54 = vld [vmem:[%s8352_s23 + $0x2e8] sm:$0xf0] }
  0x5d   : > { %1195 = vmatpush.bf16.msrb.mxu1 %v4389_v28  ;;  %1224 = vmatpush.bf16.msrb.mxu2 %v4329_v38  ;;  %v4588_v28 = vld [vmem:[%s8352_s23 + $0x2f0] sm:$0xf]  ;;  %v5731_v38 = vld [vmem:[%s8352_s23 + $0x2f4] sm:$0xf]  ;;  %v4521_v52 = vor.u32 %v5713_v48, %v4518_v50  ;;  %v5712_v59 = vld [vmem:[%s8352_s23 + $0x254] sm:$0xf0]  ;;  %v4585_v53 = vor.u32 %v5729_v51, %v4582_v54 }
  0x5e   : > { %1253 = vmatpush.bf16.msrb.mxu3 %v4393_v39  ;;  %v708_v20 = vsel %vm644_vm0, %v703_v16, %v707_v17  ;;  %v716_v21 = vsel %vm644_vm0, %v711_v18, %v715_v19  ;;  %v4589_v34 = vor.u32 %v5732_v30, %v4588_v28  ;;  %v4590_v39 = vld [vmem:[%s8352_s23 + $0x2f8] sm:$0xf0]  ;;  %v4508_v55 = vld [vmem:[%s8352_s23 + $0x250] sm:$0xf]  ;;  %v5711_v57 = vld [vmem:[%s8352_s23 + $0x254] sm:$0xf] }
  0x5f   : > { %v4593_v41 = vor.u32 %v5731_v38, %v4590_v39  ;;  %v5727_v49 = vld [vmem:[%s8352_s23 + $0x2d4] sm:$0xf]  ;;  %v4574_v56 = vld [vmem:[%s8352_s23 + $0x2d8] sm:$0xf0]  ;;  %v5710_v6 = vld [vmem:[%s8352_s23 + $0x244] sm:$0xf0] }
  0x60   : > { %1167 = vmatpush.bf16.msrb.mxu0 %v4317_v44  ;;  %v4580_v44 = vld [vmem:[%s8352_s23 + $0x2e0] sm:$0xf]  ;;  %v5726_v9 = vld [vmem:[%s8352_s23 + $0x2c4] sm:$0xf0]  ;;  %v5709_v10 = vld [vmem:[%s8352_s23 + $0x244] sm:$0xf] }
  0x61   : > { %1196 = vmatpush.bf16.msrb.mxu1 %v4381_v45  ;;  %1225 = vmatpush.bf16.msrb.mxu2 %v4321_v62  ;;  %v5730_v45 = vld [vmem:[%s8352_s23 + $0x2e4] sm:$0xf0]  ;;  %v4572_v62 = vld [vmem:[%s8352_s23 + $0x2d0] sm:$0xf]  ;;  %v4502_v11 = vld [vmem:[%s8352_s23 + $0x248] sm:$0xf0] }
  0x62   : > { %1254 = vmatpush.bf16.msrb.mxu3 %v4385_v63  ;;  %v4581_v47 = vor.u32 %v5730_v45, %v4580_v44  ;;  %v5728_v63 = vld [vmem:[%s8352_s23 + $0x2d4] sm:$0xf0]  ;;  %v4505_v14 = vor.u32 %v5709_v10, %v4502_v11  ;;  %v5725_v15 = vld [vmem:[%s8352_s23 + $0x2c4] sm:$0xf]  ;;  %v4566_v16 = vld [vmem:[%s8352_s23 + $0x2c8] sm:$0xf0] }
  0x63   : > { %v4573_v3 = vor.u32 %v5728_v63, %v4572_v62  ;;  %v4569_v17 = vor.u32 %v5725_v15, %v4566_v16  ;;  %v4492_v18 = vld [vmem:[%s8352_s23 + $0x230] sm:$0xf]  ;;  %v5708_v19 = vld [vmem:[%s8352_s23 + $0x234] sm:$0xf0]  ;;  %v5707_v23 = vld [vmem:[%s8352_s23 + $0x234] sm:$0xf] }
  0x64   : > { %1168 = vmatpush.bf16.msrb.mxu0 %v4309_v0  ;;  %v4509_v0 = vor.u32 %v5712_v59, %v4508_v55  ;;  %v5724_v22 = vld [vmem:[%s8352_s23 + $0x2b4] sm:$0xf0]  ;;  %v5723_v27 = vld [vmem:[%s8352_s23 + $0x2b4] sm:$0xf]  ;;  %v4558_v28 = vld [vmem:[%s8352_s23 + $0x2b8] sm:$0xf0] }
  0x65   : > { %1197 = vmatpush.bf16.msrb.mxu1 %v4373_v2  ;;  %1226 = vmatpush.bf16.msrb.mxu2 %v4313_v7  ;;  %v4510_v2 = vld [vmem:[%s8352_s23 + $0x258] sm:$0xf0]  ;;  %v4564_v7 = vld [vmem:[%s8352_s23 + $0x2c0] sm:$0xf]  ;;  %v4561_v30 = vor.u32 %v5723_v27, %v4558_v28  ;;  %v5706_v32 = vld [vmem:[%s8352_s23 + $0x224] sm:$0xf0] }
  0x66   : > { %903 = vmatmul.bf16.gmra.mxu0 %v692_v4  ;;  %1255 = vmatpush.bf16.msrb.mxu3 %v4377_v8  ;;  %v4577_v8 = vor.u32 %v5727_v49, %v4574_v56  ;;  %v4565_v13 = vor.u32 %v5726_v9, %v4564_v7  ;;  %v4548_v33 = vld [vmem:[%s8352_s23 + $0x2a0] sm:$0xf]  ;;  %v5705_v39 = vld [vmem:[%s8352_s23 + $0x224] sm:$0xf]  ;;  %v4486_v40 = vld [vmem:[%s8352_s23 + $0x228] sm:$0xf0] }
  0x67   : > { %961 = vmatmul.bf16.gmra.mxu2 %v692_v4  ;;  %932 = vmatmul.bf16.gmra.mxu1 %v700_v5  ;;  %v4513_v4 = vor.u32 %v5711_v57, %v4510_v2  ;;  %v4489_v42 = vor.u32 %v5705_v39, %v4486_v40  ;;  %v4550_v44 = vld [vmem:[%s8352_s23 + $0x2a8] sm:$0xf0]  ;;  %v4476_v45 = vld [vmem:[%s8352_s23 + $0x210] sm:$0xf]  ;;  %v5720_v48 = vld [vmem:[%s8352_s23 + $0x294] sm:$0xf0] }
  0x68   : > { %990 = vmatmul.bf16.gmra.mxu3 %v700_v5  ;;  %1515 = vmatpush.bf16.msra.mxu0 %v4525_v29  ;;  %v4500_v5 = vld [vmem:[%s8352_s23 + $0x240] sm:$0xf]  ;;  %v5703_v50 = vld [vmem:[%s8352_s23 + $0x214] sm:$0xf]  ;;  %v4478_v54 = vld [vmem:[%s8352_s23 + $0x218] sm:$0xf0] }
  0x69   : > { %1544 = vmatpush.bf16.msra.mxu1 %v4589_v34  ;;  %1573 = vmatpush.bf16.msra.mxu2 %v4529_v36  ;;  %v4501_v12 = vor.u32 %v5710_v6, %v4500_v5  ;;  %v4484_v29 = vld [vmem:[%s8352_s23 + $0x220] sm:$0xf]  ;;  %v5722_v34 = vld [vmem:[%s8352_s23 + $0x2a4] sm:$0xf0]  ;;  %v4481_v59 = vor.u32 %v5703_v50, %v4478_v54  ;;  %v4542_v62 = vld [vmem:[%s8352_s23 + $0x298] sm:$0xf0] }
  0x6a   : > { %1602 = vmatpush.bf16.msra.mxu3 %v4593_v41  ;;  %v4485_v36 = vor.u32 %v5706_v32, %v4484_v29  ;;  %v4549_v38 = vor.u32 %v5722_v34, %v4548_v33  ;;  %v5721_v41 = vld [vmem:[%s8352_s23 + $0x2a4] sm:$0xf]  ;;  %v4468_v57 = vld [vmem:[%s8352_s23 + $0x200] sm:$0xf]  ;;  %v5718_v56 = vld [vmem:[%s8352_s23 + $0x284] sm:$0xf0] }
  0x6b   : > { %v4553_v51 = vor.u32 %v5721_v41, %v4550_v44  ;;  %v4532_v2 = vld [vmem:[%s8352_s23 + $0x280] sm:$0xf]  ;;  %v5717_v7 = vld [vmem:[%s8352_s23 + $0x284] sm:$0xf]  ;;  %v1278_v11 = vld [vmem:[%s6465_s21 + $0x8] sm:$0xfc] }
  0x6c   : > { %1516 = vmatpush.bf16.msra.mxu0 %v4517_v46  ;;  %v5704_v46 = vld [vmem:[%s8352_s23 + $0x214] sm:$0xf0]  ;;  %v4533_v5 = vor.u32 %v5718_v56, %v4532_v2  ;;  %v1277_v10 = vld [vmem:[%s6465_s21] sm:$0xfc]  ;;  %v1330_v15 = vrot.slane %v6472_v35, 1  ;;  %v1339_v39 = vrot.slane %v6604_v60, 1 }
  0x6d   : > { %1545 = vmatpush.bf16.msra.mxu1 %v4581_v47  ;;  %1574 = vmatpush.bf16.msra.mxu2 %v4521_v52  ;;  %v4540_v47 = vld [vmem:[%s8352_s23 + $0x290] sm:$0xf]  ;;  %v4477_v52 = vor.u32 %v5704_v46, %v4476_v45  ;;  %v1341_v40 = vrot.slane %v6615_v1, 1  ;;  %v1279_v50 = vld [vmem:[%s6465_s21 + $0x80] sm:$0x3] }
  0x6e   : > { %1603 = vmatpush.bf16.msra.mxu3 %v4585_v53  ;;  %v4541_v55 = vor.u32 %v5720_v48, %v4540_v47  ;;  %v5719_v53 = vld [vmem:[%s8352_s23 + $0x294] sm:$0xf] }
  0x6f   : > { %v4545_v63 = vor.u32 %v5719_v53, %v4542_v62 }
  0x70   : > { %1517 = vmatpush.bf16.msra.mxu0 %v4509_v0  ;;  %v5702_v0 = vld [vmem:[%s8352_s23 + $0x204] sm:$0xf0] }
  0x71   : > { %1546 = vmatpush.bf16.msra.mxu1 %v4573_v3  ;;  %1575 = vmatpush.bf16.msra.mxu2 %v4513_v4  ;;  %v4469_v49 = vor.u32 %v5702_v0, %v4468_v57  ;;  %v5701_v3 = vld [vmem:[%s8352_s23 + $0x204] sm:$0xf]  ;;  %v4470_v4 = vld [vmem:[%s8352_s23 + $0x208] sm:$0xf0] }
  0x72   : > { %1604 = vmatpush.bf16.msra.mxu3 %v4577_v8  ;;  %v4473_v6 = vor.u32 %v5701_v3, %v4470_v4  ;;  %v4534_v8 = vld [vmem:[%s8352_s23 + $0x288] sm:$0xf0] }
  0x73   : > { %v4537_v9 = vor.u32 %v5717_v7, %v4534_v8 }
  0x74   : > { %1518 = vmatpush.bf16.msra.mxu0 %v4501_v12  ;;  %v1281_v12 = vpack.c.bf16 %v6468_v31, %v1277_v10 }
  0x75   : > { %1547 = vmatpush.bf16.msra.mxu1 %v4565_v13  ;;  %1576 = vmatpush.bf16.msra.mxu2 %v4505_v14  ;;  %v1282_v13 = vpack.c.bf16 %v6476_v37, %v1278_v11 }
  0x76   : > { %908 = vmatmul.bf16.gmra.mxu0 %v708_v20  ;;  %1605 = vmatpush.bf16.msra.mxu3 %v4569_v17  ;;  %v1329_v14 = vrot.slane %v1281_v12, 1  ;;  %v1333_v17 = vrot.slane %v6483_v43, 1 }
  0x77   : > { %966 = vmatmul.bf16.gmra.mxu2 %v708_v20  ;;  %937 = vmatmul.bf16.gmra.mxu1 %v716_v21  ;;  %v4556_v20 = vld [vmem:[%s8352_s23 + $0x2b0] sm:$0xf]  ;;  %v1332_v16 = vrot.slane %v1282_v13, 1 }
  0x78   : > { %995 = vmatmul.bf16.gmra.mxu3 %v716_v21  ;;  %v4493_v21 = vor.u32 %v5708_v19, %v4492_v18  ;;  %v1331_v19 = vsel %vm1328_vm1, %v1329_v14, %v1330_v15 }
  0x7a   : > { %1519 = vmatpush.bf16.msra.mxu0 %v4493_v21  ;;  %1606 = vmatpush.bf16.msra.mxu3 %v4561_v30  ;;  %v1334_v21 = vsel %vm1328_vm1, %v1332_v16, %v1333_v17 }
  0x7e   : > { %1520 = vmatpush.bf16.msra.mxu0 %v4485_v36  ;;  %1607 = vmatpush.bf16.msra.mxu3 %v4553_v51 }
  0x82   : > { %1521 = vmatpush.bf16.msra.mxu0 %v4477_v52  ;;  %1608 = vmatpush.bf16.msra.mxu3 %v4545_v63 }
  0x86   : > { %1169 = vmatmul.bf16.vlgmr.msrb.gmra.mxu0 %v563_v24  ;;  %1609 = vmatpush.bf16.msra.mxu3 %v4537_v9 }
  0x87   : > { %1227 = vmatmul.bf16.vlgmr.msrb.gmra.mxu2 %v563_v24  ;;  %1198 = vmatmul.bf16.vlgmr.msrb.gmra.mxu1 %v564_v25  ;;  %v4494_v24 = vld [vmem:[%s8352_s23 + $0x238] sm:$0xf0] }
  0x88   : > { %1256 = vmatmul.bf16.vlgmr.msrb.gmra.mxu3 %v564_v25  ;;  %v4557_v25 = vor.u32 %v5724_v22, %v4556_v20  ;;  %v4497_v26 = vor.u32 %v5707_v23, %v4494_v24  ;;  %1522 = vmatpush.bf16.msra.mxu0 %v4469_v49 }
  0x8a   : > { %1548 = vmatpush.bf16.msra.mxu1 %v4557_v25  ;;  %1577 = vmatpush.bf16.msra.mxu2 %v4497_v26  ;;  %v1337_v25 = vrot.slane %v6497_v61, 1 }
  0x8c   : > { %v1338_v32 = vsel %vm1328_vm1, %v1333_v17, %v1337_v25  ;;  %v1342_v47 = vsel %vm1328_vm1, %v1337_v25, %v1341_v40 }
  0x8e   : > { %1549 = vmatpush.bf16.msra.mxu1 %v4549_v38  ;;  %1578 = vmatpush.bf16.msra.mxu2 %v4489_v42 }
  0x92   : > { %1550 = vmatpush.bf16.msra.mxu1 %v4541_v55  ;;  %1579 = vmatpush.bf16.msra.mxu2 %v4481_v59  ;;  %v1283_v55 = vpack.c.bf16 %v1279_v50, %v1279_v50 }
  0x94   : > { %v1343_v62 = vrot.slane %v1283_v55, 1 }
  0x96   : > { %1174 = vmatmul.bf16.gmra.mxu0 %v6472_v35  ;;  %1551 = vmatpush.bf16.msra.mxu1 %v4533_v5  ;;  %v1344_v49 = vsel %vm1328_vm1, %v1339_v39, %v1343_v62 }
  0x97   : > { %1232 = vmatmul.bf16.gmra.mxu2 %v6472_v35  ;;  %1203 = vmatmul.bf16.gmra.mxu1 %v6483_v43 }
  0x98   : > { %1261 = vmatmul.bf16.gmra.mxu3 %v6483_v43  ;;  %1580 = vmatpush.bf16.msra.mxu2 %v4473_v6  ;;  %v1335_v43 = vrot.slane %v6495_v58, 1 }
  0x9a   : > { %v1336_v29 = vsel %vm1328_vm1, %v1330_v15, %v1335_v43  ;;  %v1340_v45 = vsel %vm1328_vm1, %v1335_v43, %v1339_v39 }
  0xa6   : > { %1179 = vmatmul.bf16.gmra.mxu0 %v6495_v58 }
  0xa7   : > { %1237 = vmatmul.bf16.gmra.mxu2 %v6495_v58  ;;  %1208 = vmatmul.bf16.gmra.mxu1 %v6497_v61 }
  0xa8   : > { %1266 = vmatmul.bf16.gmra.mxu3 %v6497_v61 }
  0xb6   : > { %1184 = vmatmul.bf16.gmra.mxu0 %v6604_v60 }
  0xb7   : > { %1242 = vmatmul.bf16.gmra.mxu2 %v6604_v60  ;;  %1213 = vmatmul.bf16.gmra.mxu1 %v6615_v1  ;;  %v1280_v60 = vld [vmem:[%s6465_s21 + $0x88] sm:$0x3]  ;;  %s6127_s21 = smov 124  }
  0xb8   : > { %1271 = vmatmul.bf16.gmra.mxu3 %v6615_v1  ;;  %v1284_v53 = vpack.c.bf16 %v1280_v60, %v1280_v60 }
  0xba   : > { %v1345_v63 = vrot.slane %v1284_v53, 1 }
  0xbc   : > { %v1346_v3 = vsel %vm1328_vm1, %v1341_v40, %v1345_v63 }
  0xc3   : > { %v894_v18 = vpop.f32.mrf.mxu0 }
  0xc4   : > { %v923_v20 = vpop.f32.mrf.mxu1 }
  0xc5   : > { %v6947_v22 = vadd.f32 %v923_v20, %v894_v18 }
  0xc6   : > { %1523 = vmatmul.bf16.vlgmr.msra.gmra.mxu0 %v1331_v19 }
  0xc7   : > { %1581 = vmatmul.bf16.vlgmr.msra.gmra.mxu2 %v1331_v19  ;;  %1552 = vmatmul.bf16.vlgmr.msra.gmra.mxu1 %v1334_v21 }
  0xc8   : > { %1610 = vmatmul.bf16.vlgmr.msra.gmra.mxu3 %v1334_v21 }
  0xca   : > { %v952_v31 = vpop.f32.mrf.mxu2 }
  0xcb   : > { %v981_v37 = vpop.f32.mrf.mxu3  ;;  %v6951_v35 = vpop.f32.mrf.mxu0 }
  0xcc   : > { %v6949_v23 = vadd.f32 %v981_v37, %v952_v31  ;;  %v6953_v24 = vpop.f32.mrf.mxu1 }
  0xd2   : > { %v6957_v26 = vpop.f32.mrf.mxu2 }
  0xd3   : > { %v6959_v27 = vpop.f32.mrf.mxu3  ;;  %v899_v28 = vpop.f32.mrf.mxu0 }
  0xd4   : > { %v928_v30 = vpop.f32.mrf.mxu1 }
  0xd5   : > { %v6963_v33 = vadd.f32 %v928_v30, %v899_v28 }
  0xd6   : > { %1528 = vmatmul.bf16.gmra.mxu0 %v1336_v29 }
  0xd7   : > { %1586 = vmatmul.bf16.gmra.mxu2 %v1336_v29  ;;  %1557 = vmatmul.bf16.gmra.mxu1 %v1338_v32 }
  0xd8   : > { %1615 = vmatmul.bf16.gmra.mxu3 %v1338_v32 }
  0xda   : > { %v957_v34 = vpop.f32.mrf.mxu2 }
  0xdb   : > { %v986_v58 = vpop.f32.mrf.mxu3  ;;  %v6965_v61 = vpop.f32.mrf.mxu0 }
  0xdc   : > { %v987_v36 = vadd.f32 %v986_v58, %v957_v34  ;;  %v6967_v38 = vpop.f32.mrf.mxu1 }
  0xe2   : > { %v6971_v41 = vpop.f32.mrf.mxu2 }
  0xe3   : > { %v6973_v42 = vpop.f32.mrf.mxu3  ;;  %v904_v44 = vpop.f32.mrf.mxu0 }
  0xe4   : > { %v933_v46 = vpop.f32.mrf.mxu1 }
  0xe5   : > { %v934_v48 = vadd.f32 %v933_v46, %v904_v44 }
  0xe6   : > { %1533 = vmatmul.bf16.gmra.mxu0 %v1340_v45 }
  0xe7   : > { %1591 = vmatmul.bf16.gmra.mxu2 %v1340_v45  ;;  %1562 = vmatmul.bf16.gmra.mxu1 %v1342_v47 }
  0xe8   : > { %1620 = vmatmul.bf16.gmra.mxu3 %v1342_v47 }
  0xea   : > { %v962_v51 = vpop.f32.mrf.mxu2 }
  0xeb   : > { %v991_v52 = vpop.f32.mrf.mxu3  ;;  %v6979_v54 = vpop.f32.mrf.mxu0 }
  0xec   : > { %v992_v1 = vadd.f32 %v991_v52, %v962_v51  ;;  %v6981_v59 = vpop.f32.mrf.mxu1 }
  0xf2   : > { %v6983_v57 = vpop.f32.mrf.mxu2 }
  0xf3   : > { %v6985_v0 = vpop.f32.mrf.mxu3  ;;  %v909_v2 = vpop.f32.mrf.mxu0 }
  0xf4   : > { %v938_v56 = vpop.f32.mrf.mxu1 }
  0xf5   : > { %v939_v4 = vadd.f32 %v938_v56, %v909_v2 }
  0xf6   : > { %1538 = vmatmul.bf16.gmra.mxu0 %v1344_v49 }
  0xf7   : > { %1596 = vmatmul.bf16.gmra.mxu2 %v1344_v49  ;;  %1567 = vmatmul.bf16.gmra.mxu1 %v1346_v3 }
  0xf8   : > { %1625 = vmatmul.bf16.gmra.mxu3 %v1346_v3 }
  0xfa   : > { %v967_v5 = vpop.f32.mrf.mxu2 }
  0xfb   : > { %v996_v6 = vpop.f32.mrf.mxu3  ;;  %v6989_v8 = vpop.f32.mrf.mxu0 }
  0xfc   : > { %v997_v7 = vadd.f32 %v996_v6, %v967_v5  ;;  %v6991_v9 = vpop.f32.mrf.mxu1 }
 0x102   : > { %v6993_v10 = vpop.f32.mrf.mxu2 }
 0x103   : > { %v6995_v11 = vpop.f32.mrf.mxu3  ;;  %v1170_v12 = vpop.f32.mrf.mxu0 }
 0x104   : > { %v1171_v13 = vadd.f32 %v1170_v12, %v6947_v22  ;;  %v1199_v14 = vpop.f32.mrf.mxu1 }
 0x106   : > { %v6998_v15 = vadd.f32 %v1199_v14, %v1171_v13 }
 0x10a   : > { %v1228_v16 = vpop.f32.mrf.mxu2 }
 0x10b   : > { %v1229_v17 = vadd.f32 %v1228_v16, %v6949_v23  ;;  %v1257_v18 = vpop.f32.mrf.mxu3  ;;  %v7001_v19 = vpop.f32.mrf.mxu0 }
 0x10c   : > { %v7005_v21 = vpop.f32.mrf.mxu1 }
 0x10d   : > { %v7003_v20 = vadd.f32 %v1257_v18, %v1229_v17  ;;  %8354 = vst [vmem:[#allocation13_spill] sm:$0xff] %v7005_v21 }
 0x112   : > { %v7007_v31 = vpop.f32.mrf.mxu2 }
 0x113   : > { %v7009_v37 = vpop.f32.mrf.mxu3  ;;  %v1175_v43 = vpop.f32.mrf.mxu0 }
 0x114   : > { %v1176_v22 = vadd.f32 %v1175_v43, %v6963_v33  ;;  %v1204_v25 = vpop.f32.mrf.mxu1 }
 0x116   : > { %v1205_v28 = vadd.f32 %v1204_v25, %v1176_v22 }
 0x11a   : > { %v1233_v29 = vpop.f32.mrf.mxu2 }
 0x11b   : > { %v1234_v30 = vadd.f32 %v1233_v29, %v987_v36  ;;  %v1262_v32 = vpop.f32.mrf.mxu3  ;;  %v1177_v23 = vpop.f32.mrf.mxu0 }
 0x11c   : > { %v1206_v58 = vpop.f32.mrf.mxu1 }
 0x11d   : > { %v7012_v34 = vadd.f32 %v1262_v32, %v1234_v30  ;;  %v931_v30 = vadd.f32 %v6967_v38, %v6965_v61 }
 0x122   : > { %v1235_v39 = vpop.f32.mrf.mxu2 }
 0x123   : > { %v1264_v40 = vpop.f32.mrf.mxu3  ;;  %v1180_v44 = vpop.f32.mrf.mxu0 }
 0x124   : > { %v1181_v45 = vadd.f32 %v1180_v44, %v934_v48  ;;  %v1209_v46 = vpop.f32.mrf.mxu1 }
 0x126   : > { %v1210_v47 = vadd.f32 %v1209_v46, %v1181_v45  ;;  %v1178_v45 = vadd.f32 %v1177_v23, %v931_v30 }
 0x12a   : > { %v1238_v50 = vpop.f32.mrf.mxu2 }
 0x12b   : > { %v1239_v51 = vadd.f32 %v1238_v50, %v992_v1  ;;  %v1267_v60 = vpop.f32.mrf.mxu3  ;;  %v1182_v52 = vpop.f32.mrf.mxu0 }
 0x12c   : > { %v7016_v55 = vpop.f32.mrf.mxu1 }
 0x12d   : > { %v7014_v33 = vadd.f32 %v1267_v60, %v1239_v51  ;;  %v1207_v60 = vadd.f32 %v1206_v58, %v1178_v45 }
 0x132   : > { %v7018_v36 = vpop.f32.mrf.mxu2 }
 0x133   : > { %v7020_v53 = vpop.f32.mrf.mxu3  ;;  %v1185_v62 = vpop.f32.mrf.mxu0 }
 0x134   : > { %v1186_v63 = vadd.f32 %v1185_v62, %v939_v4  ;;  %v1214_v2 = vpop.f32.mrf.mxu1 }
 0x136   : > { %v7022_v49 = vadd.f32 %v1214_v2, %v1186_v63  ;;  %v1663_v63 = vlaneseq  ;;  %v989_v2 = vadd.f32 %v6973_v42, %v6971_v41  ;;  %v936_v41 = vadd.f32 %v6981_v59, %v6979_v54 }
 0x138   : > { %v1236_v21 = vadd.f32 %v1235_v39, %v989_v2  ;;  %v7057_v38 = vshrl.u32 %v1663_v63, 7 }
 0x13a   : > { %v1243_v48 = vpop.f32.mrf.mxu2  ;;  %v1265_v58 = vadd.f32 %v1264_v40, %v1236_v21  ;;  %vm1665_vm2 = vcmp.lt.s32.totalorder %v7057_v38, 7  ;;  %v5871_v38 = vld [vmem:[%s8319_s9 + $0x30] sm:$0xff] }
 0x13b   : > { %v1244_v56 = vadd.f32 %v1243_v48, %v997_v7  ;;  %v1272_v3 = vpop.f32.mrf.mxu3  ;;  %v7024_v5 = vpop.f32.mrf.mxu0 }
 0x13c   : > { %v7028_v6 = vpop.f32.mrf.mxu1 }
 0x13d   : > { %v7026_v1 = vadd.f32 %v1272_v3, %v1244_v56 }
 0x142   : > { %v7030_v12 = vpop.f32.mrf.mxu2 }
 0x143   : > { %v7032_v13 = vpop.f32.mrf.mxu3  ;;  %v7034_v14 = vpop.f32.mrf.mxu0 }
 0x144   : > { %v7036_v16 = vpop.f32.mrf.mxu1 }
 0x14a   : > { %v7038_v4 = vpop.f32.mrf.mxu2 }
 0x14b   : > { %v7040_v17 = vpop.f32.mrf.mxu3  ;;  %v7042_v7 = vpop.f32.mrf.mxu0 }
 0x14c   : > { %8355 = vst [vmem:[#allocation14_spill] sm:$0xff] %v7042_v7  ;;  %v7044_v18 = vpop.f32.mrf.mxu1 }
 0x14d   : > { %8356 = vst [vmem:[#allocation15_spill] sm:$0xff] %v7044_v18 }
 0x152   : > { %v7046_v43 = vpop.f32.mrf.mxu2 }
 0x153   : > { %v7048_v22 = vpop.f32.mrf.mxu3  ;;  %v1529_v25 = vpop.f32.mrf.mxu0 }
 0x154   : > { %v1558_v29 = vpop.f32.mrf.mxu1 }
 0x155   : > { %v1559_v62 = vadd.f32 %v1558_v29, %v1529_v25 }
 0x157   : > { %v7054_v18 = vadd.f32 %v1559_v62, %v1205_v28 }
 0x159   : > { %v1651_v25 = vrot.slane %v7054_v18, 1 }
 0x15a   : > { %v1587_v32 = vpop.f32.mrf.mxu2 }
 0x15b   : > { %v1616_v44 = vpop.f32.mrf.mxu3  ;;  %v1531_v46 = vpop.f32.mrf.mxu0 }
 0x15c   : > { %v1560_v50 = vpop.f32.mrf.mxu1  ;;  %v1617_v29 = vadd.f32 %v1616_v44, %v1587_v32 }
 0x15d   : > { %v1561_v51 = vadd.f32 %v1560_v50, %v1531_v46 }
 0x15e   : > { %v7068_v21 = vadd.f32 %v1617_v29, %v7012_v34 }
 0x15f   : > { %v1637_v48 = vadd.f32 %v1561_v51, %v1207_v60 }
 0x161   : > { %v1653_v23 = vrot.slane %v1637_v48, 1 }
 0x162   : > { %v1589_v56 = vpop.f32.mrf.mxu2 }
 0x163   : > { %v1618_v3 = vpop.f32.mrf.mxu3  ;;  %v1534_v7 = vpop.f32.mrf.mxu0  ;;  %v1674_v50 = vsel %vm1665_vm2, %v1651_v25, %v1653_v23 }
 0x164   : > { %v1563_v61 = vpop.f32.mrf.mxu1  ;;  %v1619_v30 = vadd.f32 %v1618_v3, %v1589_v56  ;;  %v7073_v54 = vmax.f32 %v7054_v18, %v1674_v50  ;;  %v1652_v56 = vrot.slane %v7068_v21, 1 }
 0x165   : > { %v1564_v46 = vadd.f32 %v1563_v61, %v1534_v7  ;;  %v1183_v7 = vadd.f32 %v1182_v52, %v936_v41 }
 0x166   : > { %v1638_v42 = vadd.f32 %v1619_v30, %v1265_v58 }
 0x167   : > { %v1639_v45 = vadd.f32 %v1564_v46, %v1210_v47  ;;  %v1212_v52 = vadd.f32 %v7016_v55, %v1183_v7 }
 0x168   : > { %v1654_v60 = vrot.slane %v1638_v42, 1 }
 0x169   : > { %v1655_v28 = vrot.slane %v1639_v45, 1 }
 0x16a   : > { %v1592_v39 = vpop.f32.mrf.mxu2  ;;  %v1675_v55 = vsel %vm1665_vm2, %v1652_v56, %v1654_v60 }
 0x16b   : > { %v1621_v51 = vpop.f32.mrf.mxu3  ;;  %v1536_v47 = vpop.f32.mrf.mxu0  ;;  %v1672_v32 = vsel %vm1665_vm2, %v1653_v23, %v1655_v28 }
 0x16c   : > { %v1622_v40 = vadd.f32 %v1621_v51, %v1592_v39  ;;  %v1565_v44 = vpop.f32.mrf.mxu1  ;;  %v7075_v59 = vmax.f32 %v1637_v48, %v1672_v32  ;;  %v994_v48 = vadd.f32 %v6985_v0, %v6983_v57  ;;  %v7098_v39 = vmax.f32 %v7068_v21, %v1675_v55 }
 0x16d   : > { %v1566_v2 = vadd.f32 %v1565_v44, %v1536_v47  ;;  %v941_v51 = vadd.f32 %v6991_v9, %v6989_v8  ;;  %v1554_v47 = vadd.f32 %v7036_v16, %v7034_v14  ;;  %v984_v32 = vadd.f32 %v6959_v27, %v6957_v26 }
 0x16e   : > { %v7078_v62 = vadd.f32 %v1622_v40, %v7014_v33  ;;  %v6009_v34 = vpack.i.bf16 %v7075_v59, %v7073_v54  ;;  %v1241_v58 = vadd.f32 %v7018_v36, %v994_v48  ;;  %v926_v55 = vadd.f32 %v6953_v24, %v6951_v35 }
 0x16f   : > { %v1641_v61 = vadd.f32 %v1566_v2, %v1212_v52  ;;  %v1188_v36 = vadd.f32 %v7024_v5, %v941_v51  ;;  %v1631_v26 = vadd.f32 %v1554_v47, %v6998_v15  ;;  %v1612_v15 = vadd.f32 %v7040_v17, %v7038_v4  ;;  %v8359_v47 = vld [vmem:[#allocation13_spill] sm:$0xff] }
 0x170   : > { %v1656_v3 = vrot.slane %v7078_v62, 1  ;;  %6010 = vrot.lane.b32.xlu2 %v6009_v34, %s6127_s21  ;;  %v1270_v40 = vadd.f32 %v7020_v53, %v1241_v58  ;;  %v999_v53 = vadd.f32 %v6995_v11, %v6993_v10  ;;  %v1173_v58 = vadd.f32 %v7001_v19, %v926_v55 }
 0x171   : > { %v1657_v57 = vrot.slane %v1641_v61, 1  ;;  %v1217_v16 = vadd.f32 %v7028_v6, %v1188_v36  ;;  %v1632_v35 = vadd.f32 %v1612_v15, %v7003_v20 }
 0x172   : > { %v1594_v23 = vpop.f32.mrf.mxu2  ;;  %v1673_v33 = vsel %vm1665_vm2, %v1654_v60, %v1656_v3 }
 0x173   : > { %v1623_v30 = vpop.f32.mrf.mxu3  ;;  %v7094_v46 = vmax.f32 %v1638_v42, %v1673_v33  ;;  %v1539_v29 = vpop.f32.mrf.mxu0  ;;  %v1670_v9 = vsel %vm1665_vm2, %v1655_v28, %v1657_v57  ;;  %v1614_v28 = vadd.f32 %v7048_v22, %v7046_v43  ;;  %v1647_v43 = vrot.slane %v1631_v26, 1 }
 0x174   : > { %v1568_v41 = vpop.f32.mrf.mxu1  ;;  %v1624_v0 = vadd.f32 %v1623_v30, %v1594_v23  ;;  %v7121_v52 = vmax.f32 %v1639_v45, %v1670_v9  ;;  %v1246_v23 = vadd.f32 %v7030_v12, %v999_v53 }
 0x175   : > { %v1569_v50 = vadd.f32 %v1568_v41, %v1539_v29  ;;  %v6014_v7 = vpack.i.bf16 %v7094_v46, %v7098_v39 }
 0x176   : > { %v1642_v44 = vadd.f32 %v1624_v0, %v1270_v40  ;;  %v1275_v4 = vadd.f32 %v7032_v13, %v1246_v23  ;;  %v8357_v13 = vld [vmem:[#allocation14_spill] sm:$0xff] }
 0x177   : > { %v1643_v42 = vadd.f32 %v1569_v50, %v7022_v49  ;;  %v1231_v49 = vadd.f32 %v7007_v31, %v984_v32  ;;  %v8358_v50 = vld [vmem:[#allocation15_spill] sm:$0xff]  ;;  %v1202_v32 = vadd.f32 %v8359_v47, %v1173_v58 }
 0x178   : > { %6015 = vrot.lane.b32.xlu2 %v6014_v7, %s6127_s21  ;;  %v1658_v10 = vrot.slane %v1642_v44, 1  ;;  %v1556_v51 = vadd.f32 %v8358_v50, %v8357_v13 }
 0x179   : > { %v1659_v60 = vrot.slane %v1643_v42, 1  ;;  %v1260_v6 = vadd.f32 %v7009_v37, %v1231_v49 }
 0x17a   : > { %v1597_v8 = vpop.f32.mrf.mxu2  ;;  %v1671_v37 = vsel %vm1665_vm2, %v1656_v3, %v1658_v10 }
 0x17b   : > { %v1626_v2 = vpop.f32.mrf.mxu3  ;;  %v1541_v34 = vpop.f32.mrf.mxu0  ;;  %v1668_v14 = vsel %vm1665_vm2, %v1657_v57, %v1659_v60  ;;  %v7151_v0 = vmax.f32 %v7078_v62, %v1671_v37 }
 0x17c   : > { %v1627_v5 = vadd.f32 %v1626_v2, %v1597_v8  ;;  %v1570_v27 = vpop.f32.mrf.mxu1  ;;  %v7123_v48 = vmax.f32 %v1641_v61, %v1668_v14 }
 0x17d   : > { %v1571_v31 = vadd.f32 %v1570_v27, %v1541_v34 }
 0x17e   : > { %v1644_v11 = vadd.f32 %v1627_v5, %v7026_v1  ;;  %v5999_v33 = vpack.i.bf16 %v7123_v48, %v7121_v52  ;;  %v1634_v1 = vadd.f32 %v1614_v28, %v1260_v6 }
 0x17f   : > { %v1645_v61 = vadd.f32 %v1571_v31, %v1217_v16 }
 0x180   : > { %v1660_v45 = vrot.slane %v1644_v11, 1  ;;  %6000 = vrot.lane.b32.xlu1 %v5999_v33, %s6127_s21  ;;  %v1650_v7 = vrot.slane %v1634_v1, 1 }
 0x181   : > { %v1661_v22 = vrot.slane %v1645_v61, 1 }
 0x182   : > { %v1599_v30 = vpop.f32.mrf.mxu2  ;;  %v1669_v12 = vsel %vm1665_vm2, %v1658_v10, %v1660_v45 }
 0x183   : > { %v1628_v17 = vpop.f32.mrf.mxu3  ;;  %v7143_v29 = vmax.f32 %v1642_v44, %v1669_v12  ;;  %v1666_v41 = vsel %vm1665_vm2, %v1659_v60, %v1661_v22  ;;  %v1680_v57 = vsel %vm1665_vm2, %v1661_v22, %v1647_v43  ;;  %v1648_v44 = vrot.slane %v1632_v35, 1 }
 0x184   : > { %v1629_v24 = vadd.f32 %v1628_v17, %v1599_v30  ;;  %v7153_v3 = vmax.f32 %v1643_v42, %v1666_v41  ;;  %v7155_v19 = vmax.f32 %v1645_v61, %v1680_v57  ;;  %v1677_v42 = vsel %vm1665_vm2, %v1650_v7, %v1652_v56 }
 0x185   : > { %v6004_v20 = vpack.i.bf16 %v7143_v29, %v7151_v0  ;;  %v1633_v60 = vadd.f32 %v1556_v51, %v1202_v32  ;;  %v1679_v9 = vsel %vm1665_vm2, %v1648_v44, %v1650_v7  ;;  %v7176_v49 = vmax.f32 %v1634_v1, %v1677_v42 }
 0x186   : > { %v1646_v40 = vadd.f32 %v1629_v24, %v1275_v4  ;;  %v5989_v36 = vpack.i.bf16 %v7155_v19, %v7153_v3  ;;  %v7178_v5 = vmax.f32 %v1632_v35, %v1679_v9 }
 0x187   : > { %v1649_v56 = vrot.slane %v1633_v60, 1 }
 0x188   : > { %v1662_v62 = vrot.slane %v1646_v40, 1  ;;  %6005 = vrot.lane.b32.xlu1 %v6004_v20, %s6127_s21  ;;  %5990 = vrot.lane.b32.xlu0 %v5989_v36, %s6127_s21  ;;  %v6024_v34 = vpack.i.bf16 %v7176_v49, %v7178_v5 }
 0x189   : > { %v1676_v16 = vsel %vm1665_vm2, %v1649_v56, %v1651_v25  ;;  %v1678_v27 = vsel %vm1665_vm2, %v1647_v43, %v1649_v56  ;;  %v7198_v25 = vand.u32 127, %v1663_v63 }
 0x18a   : > { %v1681_v8 = vsel %vm1665_vm2, %v1662_v62, %v1648_v44  ;;  %v1667_v2 = vsel %vm1665_vm2, %v1660_v45, %v1662_v62  ;;  %v7190_v28 = vmax.f32 %v1633_v60, %v1676_v16  ;;  %v7192_v10 = vmax.f32 %v1631_v26, %v1678_v27 }
 0x18b   : > { %v1697_v53 = vmax.f32 %v1646_v40, %v1681_v8  ;;  %v1695_v21 = vmax.f32 %v1644_v11, %v1667_v2  ;;  %vm1732_vm3 = vcmp.lt.s32.totalorder %v7198_v25, 124  ;;  %vm2512_vm5 = vcmp.lt.s32.totalorder %v7198_v25, 120 }
 0x18c   : > { %v6019_v11 = vpack.i.bf16 %v7190_v28, %v7192_v10  ;;  %vm3171_vm7 = vcmp.lt.s32.totalorder %v7198_v25, 112  ;;  %v5864_v25 = vld [vmem:[%s8316_s6] sm:$0x10] }
 0x18d   : > { %v5994_v14 = vpack.i.bf16 %v1697_v53, %v1695_v21 }
 0x190   : > { %6025 = vrot.lane.b32.xlu1 %v6024_v34, %s6127_s21  ;;  %5995 = vrot.lane.b32.xlu0 %v5994_v14, %s6127_s21 }
 0x198   : > { %6020 = vrot.lane.b32.xlu0 %v6019_v11, %s6127_s21 }
 0x1ca   : > { %v6011_v18 = vpop.permute.xlu2 %6010 }
 0x1cb   : > { %v6013_v61 = vunpack.i.h.bf16 %v6011_v18  ;;  %v6012_v26 = vunpack.i.l.bf16 %v6011_v18 }
 0x1d2   : > { %v6016_v33 = vpop.permute.xlu2 %6015 }
 0x1d3   : > { %v6018_v15 = vunpack.i.h.bf16 %v6016_v33  ;;  %v6017_v45 = vunpack.i.l.bf16 %v6016_v33 }
 0x1d5   : > { %v1735_v1 = vsel %vm1732_vm3, %v6012_v26, %v6017_v45  ;;  %v1736_v22 = vsel %vm1732_vm3, %v6013_v61, %v6018_v15  ;;  %v1743_v32 = vsel %vm1732_vm3, %v6017_v45, %v6012_v26  ;;  %v1744_v44 = vsel %vm1732_vm3, %v6018_v15, %v6013_v61  ;;  %v5733_v45 = vld [vmem:[%s8314_s4] sm:$0xff]  ;;  %v5740_v61 = vld [vmem:[%s8317_s7 + $0x28] sm:$0xff] }
 0x1d6   : > { %v1754_v56 = vmax.f32 %v7098_v39, %v1743_v32  ;;  %v5748_v26 = vld [vmem:[%s8317_s7 + $0x68] sm:$0xff] }
 0x1f2   : > { %v6001_v31 = vpop.permute.xlu1 %6000 }
 0x1f3   : > { %v6003_v30 = vunpack.i.h.bf16 %v6001_v31  ;;  %v6002_v12 = vunpack.i.l.bf16 %v6001_v31 }
 0x1fa   : > { %v5991_v23 = vpop.permute.xlu0 %5990  ;;  %v6006_v6 = vpop.permute.xlu1 %6005 }
 0x1fb   : > { %v6008_v55 = vunpack.i.h.bf16 %v6006_v6  ;;  %v6007_v43 = vunpack.i.l.bf16 %v6006_v6  ;;  %v5993_v37 = vunpack.i.h.bf16 %v5991_v23  ;;  %v5992_v58 = vunpack.i.l.bf16 %v5991_v23 }
 0x1fd   : > { %v1737_v35 = vsel %vm1732_vm3, %v6002_v12, %v6007_v43  ;;  %v1738_v24 = vsel %vm1732_vm3, %v6003_v30, %v6008_v55  ;;  %v1745_v41 = vsel %vm1732_vm3, %v6007_v43, %v6002_v12  ;;  %v1746_v57 = vsel %vm1732_vm3, %v6008_v55, %v6003_v30  ;;  %v5739_v55 = vld [vmem:[%s8317_s7 + $0x20] sm:$0xff]  ;;  %v5746_v30 = vld [vmem:[%s8317_s7 + $0x58] sm:$0xff]  ;;  %v1769_v12 = vld [vmem:[%s8314_s4 + $0x10] sm:$0x1] }
 0x1fe   : > { %v1757_v62 = vmax.f32 %v7121_v52, %v1737_v35  ;;  %v1759_v42 = vmax.f32 %v7123_v48, %v1738_v24  ;;  %v1758_v2 = vmax.f32 %v7151_v0, %v1745_v41  ;;  %v1756_v52 = vmax.f32 %v7094_v46, %v1744_v44  ;;  %v5747_v43 = vld [vmem:[%s8317_s7 + $0x60] sm:$0xff]  ;;  %v5744_v35 = vld [vmem:[%s8317_s7 + $0x48] sm:$0xff]  ;;  %v4812_v44 = vld [vmem:[%s8360_s2 + $0x78] sm:$0xf0] }
 0x1ff   : > { %v5735_v24 = vld [vmem:[%s8317_s7] sm:$0xff] }
 0x200   : > { %v1774_v27 = vpack.c.bf16 %v1759_v42, %v1757_v62  ;;  %v1773_v39 = vpack.c.bf16 %v1756_v52, %v1754_v56  ;;  %v5743_v41 = vld [vmem:[%s8317_s7 + $0x40] sm:$0xff]  ;;  %v5764_v42 = vld [vmem:[%s8360_s2 + $0x64] sm:$0xf0] }
 0x201   : > { %v4802_v62 = vld [vmem:[%s8360_s2 + $0x60] sm:$0xf] }
 0x202   : > { %v5996_v63 = vpop.permute.xlu0 %5995  ;;  %v6026_v60 = vpop.permute.xlu1 %6025 }
 0x203   : > { %v5998_v4 = vunpack.i.h.bf16 %v5996_v63  ;;  %v5997_v17 = vunpack.i.l.bf16 %v5996_v63  ;;  %v6028_v34 = vunpack.i.h.bf16 %v6026_v60  ;;  %v6027_v48 = vunpack.i.l.bf16 %v6026_v60 }
 0x204   : > { %v1787_v63 = vunpack.c.l.b16 %v1769_v12 }
 0x205   : > { %v1739_v13 = vsel %vm1732_vm3, %v5992_v58, %v5997_v17  ;;  %v1740_v50 = vsel %vm1732_vm3, %v5993_v37, %v5998_v4  ;;  %v1747_v51 = vsel %vm1732_vm3, %v5997_v17, %v5992_v58  ;;  %v1748_v7 = vsel %vm1732_vm3, %v5998_v4, %v5993_v37  ;;  %v5737_v58 = vld [vmem:[%s8317_s7 + $0x10] sm:$0xff]  ;;  %v5736_v17 = vld [vmem:[%s8317_s7 + $0x8] sm:$0xff] }
 0x206   : > { %v1761_v40 = vmax.f32 %v7153_v3, %v1739_v13  ;;  %v1762_v20 = vmax.f32 %v1695_v21, %v1747_v51  ;;  %v1763_v36 = vmax.f32 %v7155_v19, %v1740_v50  ;;  %v1764_v47 = vmax.f32 %v1697_v53, %v1748_v7  ;;  %v5745_v4 = vld [vmem:[%s8317_s7 + $0x50] sm:$0xff] }
 0x207   : > { %v1760_v3 = vmax.f32 %v7143_v29, %v1746_v57  ;;  %v1753_v19 = vmax.f32 %v7073_v54, %v1735_v1  ;;  %v1755_v21 = vmax.f32 %v7075_v59, %v1736_v22  ;;  %v5734_v1 = vld [vmem:[%s8314_s4 + $0x8] sm:$0xff]  ;;  %v5738_v22 = vld [vmem:[%s8317_s7 + $0x18] sm:$0xff]  ;;  %v1790_v37 = vpack.c.b16 %v1787_v63, %v1787_v63  ;;  %v4738_v63 = vld [vmem:[%s8360_s2 + $0xe0] sm:$0xf] }
 0x208   : > { %v1776_v8 = vpack.c.bf16 %v1763_v36, %v1761_v40  ;;  %v1777_v9 = vpack.c.bf16 %v1764_v47, %v1762_v20  ;;  %v4810_v20 = vld [vmem:[%s8360_s2 + $0x70] sm:$0xf]  ;;  %v5766_v36 = vld [vmem:[%s8360_s2 + $0x74] sm:$0xf0]  ;;  %v5765_v47 = vld [vmem:[%s8360_s2 + $0x74] sm:$0xf] }
 0x209   : > { %v1775_v11 = vpack.c.bf16 %v1760_v3, %v1758_v2  ;;  %v1772_v46 = vpack.c.bf16 %v1755_v21, %v1753_v19  ;;  %v4811_v32 = vor.u32 %v5766_v36, %v4810_v20  ;;  %v4815_v60 = vor.u32 %v5765_v47, %v4812_v44  ;;  %v5777_v20 = vld [vmem:[%s8360_s2 + $0xd4] sm:$0xf]  ;;  %v4732_v47 = vld [vmem:[%s8360_s2 + $0xd8] sm:$0xf0]  ;;  %v5754_v44 = vld [vmem:[%s8360_s2 + $0x14] sm:$0xf0] }
 0x20a   : > { %1805 = vmatpush.bf16.msrb.mxu0 %v1776_v8  ;;  %1828 = vmatpush.bf16.msrb.mxu1 %v1777_v9  ;;  %v6021_v53 = vpop.permute.xlu0 %6020  ;;  %v5763_v8 = vld [vmem:[%s8360_s2 + $0x64] sm:$0xf]  ;;  %v4804_v9 = vld [vmem:[%s8360_s2 + $0x68] sm:$0xf0]  ;;  %v4803_v2 = vor.u32 %v5764_v42, %v4802_v62  ;;  %v4735_v62 = vor.u32 %v5777_v20, %v4732_v47 }
 0x20b   : > { %v6023_v14 = vunpack.i.h.bf16 %v6021_v53  ;;  %v6022_v16 = vunpack.i.l.bf16 %v6021_v53  ;;  %v4807_v3 = vor.u32 %v5763_v8, %v4804_v9  ;;  %v4764_v8 = vld [vmem:[%s8360_s2 + $0x18] sm:$0xf0]  ;;  %v4884_v20 = vld [vmem:[%s8360_s2 + $0x168] sm:$0xf0] }
 0x20d   : > { %v1734_v29 = vsel %vm1732_vm3, %v6023_v14, %v6028_v34  ;;  %v1742_v54 = vsel %vm1732_vm3, %v6028_v34, %v6023_v14  ;;  %v1733_v0 = vsel %vm1732_vm3, %v6022_v16, %v6027_v48  ;;  %v1741_v59 = vsel %vm1732_vm3, %v6027_v48, %v6022_v16 }
 0x20e   : > { %1806 = vmatpush.bf16.msrb.mxu0 %v1774_v27  ;;  %1829 = vmatpush.bf16.msrb.mxu1 %v1775_v11  ;;  %v1749_v18 = vmax.f32 %v7192_v10, %v1733_v0  ;;  %v1751_v31 = vmax.f32 %v7190_v28, %v1734_v29  ;;  %v1750_v23 = vmax.f32 %v7178_v5, %v1741_v59  ;;  %v5742_v5 = vld [vmem:[%s8317_s7 + $0x38] sm:$0xff]  ;;  %v5741_v28 = vld [vmem:[%s8317_s7 + $0x30] sm:$0xff] }
 0x20f   : > { %v1752_v33 = vmax.f32 %v7176_v49, %v1742_v54  ;;  %v5750_v49 = vld [vmem:[%s8317_s7 + $0x78] sm:$0xff]  ;;  %1986 = vmatpush.bf16.msrb.mxu2 %v5742_v5  ;;  %v5749_v10 = vld [vmem:[%s8317_s7 + $0x70] sm:$0xff] }
 0x210   : > { %v1770_v6 = vpack.c.bf16 %v1751_v31, %v1749_v18  ;;  %2009 = vmatpush.bf16.msrb.mxu3 %v5750_v49  ;;  %v4794_v54 = vld [vmem:[%s8360_s2 + $0x50] sm:$0xf]  ;;  %v5762_v0 = vld [vmem:[%s8360_s2 + $0x54] sm:$0xf0]  ;;  %v5761_v59 = vld [vmem:[%s8360_s2 + $0x54] sm:$0xf] }
 0x211   : > { %v1771_v15 = vpack.c.bf16 %v1752_v33, %v1750_v23  ;;  %v4786_v31 = vld [vmem:[%s8360_s2 + $0x40] sm:$0xf]  ;;  %v5760_v23 = vld [vmem:[%s8360_s2 + $0x44] sm:$0xf0]  ;;  %v5759_v33 = vld [vmem:[%s8360_s2 + $0x44] sm:$0xf] }
 0x212   : > { %1807 = vmatpush.bf16.msrb.mxu0 %v1772_v46  ;;  %1830 = vmatpush.bf16.msrb.mxu1 %v1773_v39  ;;  %v4795_v46 = vor.u32 %v5762_v0, %v4794_v54  ;;  %v4796_v39 = vld [vmem:[%s8360_s2 + $0x58] sm:$0xf0]  ;;  %v4746_v5 = vld [vmem:[%s8360_s2 + $0xf0] sm:$0xf]  ;;  %v5782_v49 = vld [vmem:[%s8360_s2 + $0xf4] sm:$0xf0] }
 0x213   : > { %1987 = vmatpush.bf16.msrb.mxu2 %v5741_v28  ;;  %v4799_v18 = vor.u32 %v5761_v59, %v4796_v39  ;;  %v5781_v28 = vld [vmem:[%s8360_s2 + $0xf4] sm:$0xf]  ;;  %v4716_v59 = vld [vmem:[%s8360_s2 + $0xb8] sm:$0xf0]  ;;  %v4706_v39 = vld [vmem:[%s8360_s2 + $0xa0] sm:$0xf] }
 0x214   : > { %2010 = vmatpush.bf16.msrb.mxu3 %v5749_v10  ;;  %v4747_v10 = vor.u32 %v5782_v49, %v4746_v5  ;;  %v5773_v54 = vld [vmem:[%s8360_s2 + $0xb4] sm:$0xf] }
 0x215   : > { %v5769_v5 = vld [vmem:[%s8360_s2 + $0x94] sm:$0xf] }
 0x216   : > { %1808 = vmatpush.bf16.msrb.mxu0 %v1770_v6  ;;  %1831 = vmatpush.bf16.msrb.mxu1 %v1771_v15  ;;  %v4787_v6 = vor.u32 %v5760_v23, %v4786_v31  ;;  %v4788_v15 = vld [vmem:[%s8360_s2 + $0x48] sm:$0xf0]  ;;  %v5771_v31 = vld [vmem:[%s8360_s2 + $0xa4] sm:$0xf] }
 0x217   : > { %1988 = vmatpush.bf16.msrb.mxu2 %v5740_v61  ;;  %v4748_v61 = vld [vmem:[%s8360_s2 + $0xf8] sm:$0xf0] }
 0x218   : > { %2011 = vmatpush.bf16.msrb.mxu3 %v5748_v26  ;;  %v4778_v26 = vld [vmem:[%s8360_s2 + $0x30] sm:$0xf] }
 0x219   : > { %4602 = vmatmul.msk.bf16.vlgmr.msrb.gmra.mxu0 %vm1791_vm4, %v5733_v45  ;;  %4605 = vmatmul.msk.bf16.vlgmr.msrb.gmra.mxu1 %vm1791_vm4, %v5733_v45  ;;  %v4791_v45 = vor.u32 %v5759_v33, %v4788_v15  ;;  %v4708_v33 = vld [vmem:[%s8360_s2 + $0xa8] sm:$0xf0]  ;;  %v4698_v15 = vld [vmem:[%s8360_s2 + $0x90] sm:$0xf] }
 0x21a   : > { %2167 = vmatpush.bf16.msra.mxu0 %v4747_v10 }
 0x21b   : > { %1989 = vmatpush.bf16.msrb.mxu2 %v5739_v55  ;;  %v5758_v55 = vld [vmem:[%s8360_s2 + $0x34] sm:$0xf0] }
 0x21c   : > { %2012 = vmatpush.bf16.msrb.mxu3 %v5747_v43  ;;  %v4751_v43 = vor.u32 %v5781_v28, %v4748_v61  ;;  %v4700_v28 = vld [vmem:[%s8360_s2 + $0x98] sm:$0xf0]  ;;  %v4690_v61 = vld [vmem:[%s8360_s2 + $0x80] sm:$0xf] }
 0x21d   : > { %v4703_v10 = vor.u32 %v5769_v5, %v4700_v28  ;;  %v4842_v28 = vld [vmem:[%s8360_s2 + $0x110] sm:$0xf] }
 0x21e   : > { %2186 = vmatpush.bf16.msra.mxu1 %v4751_v43 }
 0x21f   : > { %1990 = vmatpush.bf16.msrb.mxu2 %v5738_v22  ;;  %v5757_v22 = vld [vmem:[%s8360_s2 + $0x34] sm:$0xf] }
 0x220   : > { %2013 = vmatpush.bf16.msrb.mxu3 %v5746_v30  ;;  %v4780_v30 = vld [vmem:[%s8360_s2 + $0x38] sm:$0xf0] }
 0x221   : > { %v4783_v12 = vor.u32 %v5757_v22, %v4780_v30  ;;  %v1885_v22 = vld [vmem:[%s8320_s10] sm:$0xff] }
 0x223   : > { %1991 = vmatpush.bf16.msrb.mxu2 %v5737_v58  ;;  %v5779_v58 = vld [vmem:[%s8360_s2 + $0xe4] sm:$0xf] }
 0x224   : > { %2014 = vmatpush.bf16.msrb.mxu3 %v5745_v4 }
 0x227   : > { %1992 = vmatpush.bf16.msrb.mxu2 %v5736_v17  ;;  %v4740_v17 = vld [vmem:[%s8360_s2 + $0xe8] sm:$0xf0] }
 0x228   : > { %2015 = vmatpush.bf16.msrb.mxu3 %v5744_v35  ;;  %v4770_v35 = vld [vmem:[%s8360_s2 + $0x20] sm:$0xf] }
 0x229   : > { %4603 = vmatmul.msk.bf16.gmra.mxu0 %vm1791_vm4, %v5734_v1  ;;  %4606 = vmatmul.msk.bf16.gmra.mxu1 %vm1791_vm4, %v5734_v1  ;;  %v4779_v1 = vor.u32 %v5758_v55, %v4778_v26  ;;  %v5768_v26 = vld [vmem:[%s8360_s2 + $0x84] sm:$0xf0]  ;;  %v5767_v55 = vld [vmem:[%s8360_s2 + $0x84] sm:$0xf] }
 0x22a   : > { %v4691_v43 = vor.u32 %v5768_v26, %v4690_v61  ;;  %v5785_v26 = vld [vmem:[%s8360_s2 + $0x114] sm:$0xf] }
 0x22b   : > { %1993 = vmatpush.bf16.msrb.mxu2 %v5735_v24  ;;  %v5756_v24 = vld [vmem:[%s8360_s2 + $0x24] sm:$0xf0] }
 0x22c   : > { %2016 = vmatpush.bf16.msrb.mxu3 %v5743_v41  ;;  %v4743_v41 = vor.u32 %v5779_v58, %v4740_v17  ;;  %v5798_v58 = vld [vmem:[%s8360_s2 + $0x174] sm:$0xf0] }
 0x22e   : > { %2187 = vmatpush.bf16.msra.mxu1 %v4743_v41 }
 0x22f   : > { %2285 = vmatpush.bf16.msra.mxu2 %v4811_v32  ;;  %v4762_v32 = vld [vmem:[%s8360_s2 + $0x10] sm:$0xf] }
 0x230   : > { %2304 = vmatpush.bf16.msra.mxu3 %v4815_v60  ;;  %v4763_v42 = vor.u32 %v5754_v44, %v4762_v32  ;;  %v5753_v60 = vld [vmem:[%s8360_s2 + $0x14] sm:$0xf]  ;;  %v4874_v32 = vld [vmem:[%s8360_s2 + $0x150] sm:$0xf]  ;;  %v5794_v44 = vld [vmem:[%s8360_s2 + $0x154] sm:$0xf0] }
 0x231   : > { %v4767_v9 = vor.u32 %v5753_v60, %v4764_v8  ;;  %v4875_v60 = vor.u32 %v5794_v44, %v4874_v32  ;;  %v5793_v8 = vld [vmem:[%s8360_s2 + $0x154] sm:$0xf] }
 0x232   : > { %2188 = vmatpush.bf16.msra.mxu1 %v4735_v62 }
 0x233   : > { %2286 = vmatpush.bf16.msra.mxu2 %v4803_v2  ;;  %v4722_v2 = vld [vmem:[%s8360_s2 + $0xc0] sm:$0xf] }
 0x234   : > { %2305 = vmatpush.bf16.msra.mxu3 %v4807_v3  ;;  %v5776_v3 = vld [vmem:[%s8360_s2 + $0xc4] sm:$0xf0] }
 0x237   : > { %2287 = vmatpush.bf16.msra.mxu2 %v4795_v46  ;;  %v4719_v46 = vor.u32 %v5773_v54, %v4716_v59  ;;  %v4858_v54 = vld [vmem:[%s8360_s2 + $0x130] sm:$0xf]  ;;  %v5789_v59 = vld [vmem:[%s8360_s2 + $0x134] sm:$0xf] }
 0x238   : > { %2306 = vmatpush.bf16.msra.mxu3 %v4799_v18  ;;  %v5772_v18 = vld [vmem:[%s8360_s2 + $0xa4] sm:$0xf0] }
 0x239   : > { %4604 = vmatmul.msk.bf16.gmra.mxu0 %vm1791_vm4, %v1790_v37  ;;  %4607 = vmatmul.msk.bf16.gmra.mxu1 %vm1791_vm4, %v1790_v37  ;;  %v5780_v37 = vld [vmem:[%s8360_s2 + $0xe4] sm:$0xf0]  ;;  %v4707_v23 = vor.u32 %v5772_v18, %v4706_v39  ;;  %v4860_v18 = vld [vmem:[%s8360_s2 + $0x138] sm:$0xf0] }
 0x23a   : > { %v4739_v4 = vor.u32 %v5780_v37, %v4738_v63  ;;  %v4890_v37 = vld [vmem:[%s8360_s2 + $0x170] sm:$0xf] }
 0x23b   : > { %2288 = vmatpush.bf16.msra.mxu2 %v4787_v6  ;;  %v4711_v6 = vor.u32 %v5771_v31, %v4708_v33  ;;  %v4850_v31 = vld [vmem:[%s8360_s2 + $0x120] sm:$0xf]  ;;  %v4863_v33 = vor.u32 %v5789_v59, %v4860_v18 }
 0x23c   : > { %2307 = vmatpush.bf16.msra.mxu3 %v4791_v45  ;;  %2168 = vmatpush.bf16.msra.mxu0 %v4739_v4  ;;  %v5770_v45 = vld [vmem:[%s8360_s2 + $0x94] sm:$0xf0]  ;;  %v5797_v4 = vld [vmem:[%s8360_s2 + $0x174] sm:$0xf] }
 0x23d   : > { %v4699_v49 = vor.u32 %v5770_v45, %v4698_v15  ;;  %v4852_v15 = vld [vmem:[%s8360_s2 + $0x128] sm:$0xf0] }
 0x23f   : > { %2289 = vmatpush.bf16.msra.mxu2 %v4779_v1  ;;  %v4692_v1 = vld [vmem:[%s8360_s2 + $0x88] sm:$0xf0] }
 0x240   : > { %2308 = vmatpush.bf16.msra.mxu3 %v4783_v12  ;;  %v4695_v30 = vor.u32 %v5767_v55, %v4692_v1  ;;  %v4844_v55 = vld [vmem:[%s8360_s2 + $0x118] sm:$0xf0] }
 0x296   : > { %v1810_v57 = vpop.f32.mrf.mxu0  ;;  %v1833_v13 = vpop.f32.mrf.mxu1 }
 0x29e   : > { %v1812_v50 = vpop.f32.mrf.mxu0  ;;  %v1835_v51 = vpop.f32.mrf.mxu1 }
 0x29f   : > { %v1847_v7 = vpack.c.bf16 %v1812_v50, %v1810_v57  ;;  %v1848_v40 = vpack.c.bf16 %v1835_v51, %v1833_v13  ;;  %v4771_v57 = vor.u32 %v5756_v24, %v4770_v35  ;;  %v5755_v13 = vld [vmem:[%s8360_s2 + $0x24] sm:$0xf]  ;;  %v4772_v50 = vld [vmem:[%s8360_s2 + $0x28] sm:$0xf0]  ;;  %v4891_v35 = vor.u32 %v5798_v58, %v4890_v37  ;;  %v4892_v24 = vld [vmem:[%s8360_s2 + $0x178] sm:$0xf0] }
 0x2a0   : > { %v4775_v51 = vor.u32 %v5755_v13, %v4772_v50  ;;  %v4895_v41 = vor.u32 %v5797_v4, %v4892_v24  ;;  %v4882_v13 = vld [vmem:[%s8360_s2 + $0x160] sm:$0xf]  ;;  %v5796_v50 = vld [vmem:[%s8360_s2 + $0x164] sm:$0xf0]  ;;  %v5783_v4 = vld [vmem:[%s8360_s2 + $0x104] sm:$0xf] }
 0x2a1   : > { %1994 = vmatmul.bf16.vlgmr.msrb.gmra.mxu2 %v1847_v7  ;;  %2017 = vmatmul.bf16.vlgmr.msrb.gmra.mxu3 %v1848_v40  ;;  %v4730_v7 = vld [vmem:[%s8360_s2 + $0xd0] sm:$0xf]  ;;  %v5778_v40 = vld [vmem:[%s8360_s2 + $0xd4] sm:$0xf0]  ;;  %v5784_v37 = vld [vmem:[%s8360_s2 + $0x104] sm:$0xf0] }
 0x2a2   : > { %2290 = vmatpush.bf16.msra.mxu2 %v4771_v57  ;;  %v4731_v36 = vor.u32 %v5778_v40, %v4730_v7  ;;  %2309 = vmatpush.bf16.msra.mxu3 %v4775_v51  ;;  %v5795_v51 = vld [vmem:[%s8360_s2 + $0x164] sm:$0xf]  ;;  %v4883_v40 = vor.u32 %v5796_v50, %v4882_v13  ;;  %v1889_v13 = vld [vmem:[%s8320_s10 + $0x20] sm:$0x3] }
 0x2a3   : > { %v4887_v47 = vor.u32 %v5795_v51, %v4884_v20 }
 0x2a4   : > { %2169 = vmatpush.bf16.msra.mxu0 %v4731_v36  ;;  %v1886_v36 = vld [vmem:[%s8320_s10 + $0x8] sm:$0xff] }
 0x2a6   : > { %v1815_v19 = vpop.f32.mrf.mxu0  ;;  %v1838_v53 = vpop.f32.mrf.mxu1  ;;  %2291 = vmatpush.bf16.msra.mxu2 %v4763_v42  ;;  %2310 = vmatpush.bf16.msra.mxu3 %v4767_v9  ;;  %v4876_v9 = vld [vmem:[%s8360_s2 + $0x158] sm:$0xf0] }
 0x2ae   : > { %v1817_v21 = vpop.f32.mrf.mxu0  ;;  %v1840_v56 = vpop.f32.mrf.mxu1 }
 0x2af   : > { %v1849_v52 = vpack.c.bf16 %v1817_v21, %v1815_v19  ;;  %v1850_v34 = vpack.c.bf16 %v1840_v56, %v1838_v53  ;;  %v5775_v19 = vld [vmem:[%s8360_s2 + $0xc4] sm:$0xf]  ;;  %v4723_v53 = vor.u32 %v5776_v3, %v4722_v2  ;;  %v4724_v21 = vld [vmem:[%s8360_s2 + $0xc8] sm:$0xf0]  ;;  %v4754_v56 = vld [vmem:[%s8360_s2] sm:$0xf] }
 0x2b0   : > { %v4866_v2 = vld [vmem:[%s8360_s2 + $0x140] sm:$0xf] }
 0x2b1   : > { %1999 = vmatmul.bf16.gmra.mxu2 %v1849_v52  ;;  %2022 = vmatmul.bf16.gmra.mxu3 %v1850_v34  ;;  %v5752_v52 = vld [vmem:[%s8360_s2 + $0x4] sm:$0xf0]  ;;  %v4727_v34 = vor.u32 %v5775_v19, %v4724_v21  ;;  %v4879_v19 = vor.u32 %v5793_v8, %v4876_v9  ;;  %v5791_v21 = vld [vmem:[%s8360_s2 + $0x144] sm:$0xf] }
 0x2b2   : > { %2170 = vmatpush.bf16.msra.mxu0 %v4723_v53  ;;  %v5792_v53 = vld [vmem:[%s8360_s2 + $0x144] sm:$0xf0] }
 0x2b3   : > { %2189 = vmatpush.bf16.msra.mxu1 %v4727_v34  ;;  %v4867_v34 = vor.u32 %v5792_v53, %v4866_v2 }
 0x2b6   : > { %v1820_v48 = vpop.f32.mrf.mxu0  ;;  %v1843_v14 = vpop.f32.mrf.mxu1 }
 0x2b7   : > { %v1851_v16 = vpack.c.bf16 %v1820_v48, %v1820_v48  ;;  %v1852_v27 = vpack.c.bf16 %v1843_v14, %v1843_v14  ;;  %v4755_v48 = vor.u32 %v5752_v52, %v4754_v56  ;;  %v5751_v14 = vld [vmem:[%s8360_s2 + $0x4] sm:$0xf]  ;;  %2190 = vmatpush.bf16.msra.mxu1 %v4719_v46  ;;  %v4868_v56 = vld [vmem:[%s8360_s2 + $0x148] sm:$0xf0] }
 0x2b9   : > { %2292 = vmatpush.bf16.msra.mxu2 %v4755_v48  ;;  %v4871_v48 = vor.u32 %v5791_v21, %v4868_v56 }
 0x2bb   : > { %2191 = vmatpush.bf16.msra.mxu1 %v4711_v6  ;;  %v5787_v6 = vld [vmem:[%s8360_s2 + $0x124] sm:$0xf] }
 0x2be   : > { %v1822_v11 = vpop.f32.mrf.mxu0  ;;  %v1845_v29 = vpop.f32.mrf.mxu1 }
 0x2bf   : > { %v4714_v11 = vld [vmem:[%s8360_s2 + $0xb0] sm:$0xf]  ;;  %v5774_v29 = vld [vmem:[%s8360_s2 + $0xb4] sm:$0xf0]  ;;  %2192 = vmatpush.bf16.msra.mxu1 %v4703_v10 }
 0x2c0   : > { %v4715_v0 = vor.u32 %v5774_v29, %v4714_v11  ;;  %v5786_v10 = vld [vmem:[%s8360_s2 + $0x114] sm:$0xf0] }
 0x2c1   : > { %2004 = vmatmul.bf16.gmra.mxu2 %v1851_v16  ;;  %2027 = vmatmul.bf16.gmra.mxu3 %v1852_v27  ;;  %v4756_v16 = vld [vmem:[%s8360_s2 + $0x8] sm:$0xf0]  ;;  %v4843_v1 = vor.u32 %v5786_v10, %v4842_v28 }
 0x2c2   : > { %v4759_v27 = vor.u32 %v5751_v14, %v4756_v16  ;;  %2171 = vmatpush.bf16.msra.mxu0 %v4715_v0  ;;  %v1887_v16 = vld [vmem:[%s8320_s10 + $0x10] sm:$0xff]  ;;  %v5790_v0 = vld [vmem:[%s8360_s2 + $0x134] sm:$0xf0] }
 0x2c3   : > { %2193 = vmatpush.bf16.msra.mxu1 %v4695_v30  ;;  %v4859_v39 = vor.u32 %v5790_v0, %v4858_v54 }
 0x2c4   : > { %2311 = vmatpush.bf16.msra.mxu3 %v4759_v27 }
 0x2c6   : > { %2172 = vmatpush.bf16.msra.mxu0 %v4707_v23  ;;  %v5788_v23 = vld [vmem:[%s8360_s2 + $0x124] sm:$0xf0] }
 0x2c7   : > { %2445 = vmatpush.bf16.msrb.mxu1 %v4895_v41  ;;  %v4851_v5 = vor.u32 %v5788_v23, %v4850_v31 }
 0x2ca   : > { %2173 = vmatpush.bf16.msra.mxu0 %v4699_v49  ;;  %v4855_v49 = vor.u32 %v5787_v6, %v4852_v15 }
 0x2cb   : > { %2446 = vmatpush.bf16.msrb.mxu1 %v4887_v47 }
 0x2ce   : > { %2174 = vmatpush.bf16.msra.mxu0 %v4691_v43  ;;  %v1888_v43 = vld [vmem:[%s8320_s10 + $0x18] sm:$0xff] }
 0x2cf   : > { %2447 = vmatpush.bf16.msrb.mxu1 %v4879_v19 }
 0x2d2   : > { %2426 = vmatpush.bf16.msrb.mxu0 %v4891_v35 }
 0x2d3   : > { %2448 = vmatpush.bf16.msrb.mxu1 %v4871_v48 }
 0x2d6   : > { %2427 = vmatpush.bf16.msrb.mxu0 %v4883_v40 }
 0x2d7   : > { %2449 = vmatpush.bf16.msrb.mxu1 %v4863_v33 }
 0x2da   : > { %2428 = vmatpush.bf16.msrb.mxu0 %v4875_v60 }
 0x2db   : > { %2450 = vmatpush.bf16.msrb.mxu1 %v4855_v49 }
 0x2de   : > { %2429 = vmatpush.bf16.msrb.mxu0 %v4867_v34 }
 0x2e2   : > { %2430 = vmatpush.bf16.msrb.mxu0 %v4859_v39 }
 0x2e6   : > { %2431 = vmatpush.bf16.msrb.mxu0 %v4851_v5 }
 0x2ea   : > { %2432 = vmatpush.bf16.msrb.mxu0 %v4843_v1 }
 0x324   : > { %v1995_v12 = vpop.f32.mrf.mxu2  ;;  %v2018_v63 = vpop.f32.mrf.mxu3 }
 0x325   : > { %v1996_v17 = vadd.f32 %v1995_v12, %v1885_v22  ;;  %v4847_v12 = vor.u32 %v5785_v26, %v4844_v55 }
 0x327   : > { %v2019_v57 = vadd.f32 %v2018_v63, %v1996_v17  ;;  %v4834_v63 = vld [vmem:[%s8360_s2 + $0x100] sm:$0xf]  ;;  %v4836_v17 = vld [vmem:[%s8360_s2 + $0x108] sm:$0xf0]  ;;  %2451 = vmatpush.bf16.msrb.mxu1 %v4847_v12 }
 0x328   : > { %v4835_v24 = vor.u32 %v5784_v37, %v4834_v63  ;;  %v4839_v41 = vor.u32 %v5783_v4, %v4836_v17 }
 0x329   : > { %v2032_v7 = vmax.f32 %v2019_v57, 0.0 }
 0x32a   : > { %2433 = vmatpush.bf16.msrb.mxu0 %v4835_v24 }
 0x32b   : > { %2037 = vst [vmem:[#allocation2] sm:$0xff] %v2032_v7  ;;  %2452 = vmatpush.bf16.msrb.mxu1 %v4839_v41 }
 0x32c   : > { %v1997_v62 = vpop.f32.mrf.mxu2  ;;  %v2020_v42 = vpop.f32.mrf.mxu3 }
 0x32d   : > { %v1998_v3 = vadd.f32 %v1997_v62, %v1886_v36 }
 0x32f   : > { %v2021_v52 = vadd.f32 %v2020_v42, %v1998_v3 }
 0x331   : > { %v2033_v14 = vmax.f32 %v2021_v52, 0.0 }
 0x333   : > { %2038 = vst [vmem:[#allocation2 + $0x8] sm:$0xff] %v2033_v14  ;;  %v2046_v27 = vpack.c.bf16 %v2033_v14, %v2032_v7 }
 0x334   : > { %v2000_v11 = vpop.f32.mrf.mxu2  ;;  %v2023_v29 = vpop.f32.mrf.mxu3 }
 0x335   : > { %v2001_v46 = vadd.f32 %v2000_v11, %v1887_v16  ;;  %2293 = vmatmul.bf16.vlgmr.msra.gmra.mxu2 %v2046_v27  ;;  %2312 = vmatmul.bf16.vlgmr.msra.gmra.mxu3 %v2046_v27 }
 0x337   : > { %v2024_v45 = vadd.f32 %v2023_v29, %v2001_v46 }
 0x339   : > { %v2034_v61 = vmax.f32 %v2024_v45, 0.0 }
 0x33a   : > { %v2064_v50 = vld [vmem:[#allocation2 + $0x1] sm:$0xff] }
 0x33b   : > { %2039 = vst [vmem:[#allocation2 + $0x10] sm:$0xff] %v2034_v61  ;;  %v2323_v3 = vld [vmem:[#allocation2 + $0x2] sm:$0xff] }
 0x33c   : > { %v2002_v22 = vpop.f32.mrf.mxu2  ;;  %v2025_v30 = vpop.f32.mrf.mxu3 }
 0x33d   : > { %v2003_v58 = vadd.f32 %v2002_v22, %v1888_v43 }
 0x33f   : > { %v2026_v35 = vadd.f32 %v2025_v30, %v2003_v58 }
 0x341   : > { %v2035_v57 = vmax.f32 %v2026_v35, 0.0 }
 0x342   : > { %v2065_v51 = vld [vmem:[#allocation2 + $0x9] sm:$0xff] }
 0x343   : > { %2040 = vst [vmem:[#allocation2 + $0x18] sm:$0xff] %v2035_v57  ;;  %v2068_v7 = vpack.c.bf16 %v2065_v51, %v2064_v50  ;;  %v2047_v40 = vpack.c.bf16 %v2035_v57, %v2034_v61  ;;  %v2324_v2 = vld [vmem:[#allocation2 + $0xa] sm:$0xff] }
 0x344   : > { %v2005_v20 = vpop.f32.mrf.mxu2  ;;  %v2028_v36 = vpop.f32.mrf.mxu3  ;;  %v2327_v19 = vpack.c.bf16 %v2324_v2, %v2323_v3 }
 0x345   : > { %v2006_v47 = vadd.f32 %v2005_v20, %v1889_v13  ;;  %2175 = vmatmul.bf16.vlgmr.msra.gmra.mxu0 %v2068_v7  ;;  %2194 = vmatmul.bf16.vlgmr.msra.gmra.mxu1 %v2068_v7 }
 0x346   : > { %2298 = vmatmul.bf16.gmra.mxu2 %v2047_v40  ;;  %2317 = vmatmul.bf16.gmra.mxu3 %v2047_v40 }
 0x347   : > { %v2029_v32 = vadd.f32 %v2028_v36, %v2006_v47 }
 0x349   : > { %v2036_v44 = vmax.f32 %v2029_v32, 0.0 }
 0x34a   : > { %v2066_v60 = vld [vmem:[#allocation2 + $0x11] sm:$0xff] }
 0x34b   : > { %2041 = vst [vmem:[#allocation2 + $0x20] sm:$0x3] %v2036_v44  ;;  %v2325_v21 = vld [vmem:[#allocation2 + $0x12] sm:$0xff] }
 0x34c   : > { %v2007_v62 = vpop.f32.mrf.mxu2  ;;  %v2030_v42 = vpop.f32.mrf.mxu3 }
 0x352   : > { %v2067_v8 = vld [vmem:[#allocation2 + $0x19] sm:$0xff] }
 0x353   : > { %v2069_v9 = vpack.c.bf16 %v2067_v8, %v2066_v60  ;;  %v2326_v53 = vld [vmem:[#allocation2 + $0x1a] sm:$0xff] }
 0x354   : > { %v2328_v56 = vpack.c.bf16 %v2326_v53, %v2325_v21 }
 0x355   : > { %2180 = vmatmul.bf16.gmra.mxu0 %v2069_v9  ;;  %2199 = vmatmul.bf16.gmra.mxu1 %v2069_v9 }
 0x365   : > { %2434 = vmatmul.bf16.vlgmr.msrb.gmra.mxu0 %v2327_v19  ;;  %2453 = vmatmul.bf16.vlgmr.msrb.gmra.mxu1 %v2327_v19 }
 0x375   : > { %2439 = vmatmul.bf16.gmra.mxu0 %v2328_v56  ;;  %2458 = vmatmul.bf16.gmra.mxu1 %v2328_v56 }
 0x3b8   : > { %v2294_v11 = vpop.f32.mrf.mxu2  ;;  %v2313_v29 = vpop.f32.mrf.mxu3 }
 0x3c0   : > { %v2296_v39 = vpop.f32.mrf.mxu2  ;;  %v2315_v18 = vpop.f32.mrf.mxu3 }
 0x3c2   : > { %v2176_v52 = vpop.f32.mrf.mxu0  ;;  %v2195_v34 = vpop.f32.mrf.mxu1 }
 0x3c3   : > { %v2295_v6 = vadd.f32 %v2294_v11, %v2176_v52  ;;  %v2314_v30 = vadd.f32 %v2313_v29, %v2195_v34 }
 0x3c9   : > { %v2299_v45 = vpop.f32.mrf.mxu2  ;;  %v2318_v5 = vpop.f32.mrf.mxu3 }
 0x3ca   : > { %v2178_v48 = vpop.f32.mrf.mxu0  ;;  %v2197_v14 = vpop.f32.mrf.mxu1 }
 0x3cb   : > { %v2297_v33 = vadd.f32 %v2296_v39, %v2178_v48  ;;  %v2316_v7 = vadd.f32 %v2315_v18, %v2197_v14  ;;  %v5815_v39 = vld [vmem:[%s8318_s8 + $0x78] sm:$0xff] }
 0x3cc   : > { %2740 = vmatpush.bf16.msra.mxu1 %v5815_v39  ;;  %v5842_v39 = vld [vmem:[%s8361_s3 + $0xd4] sm:$0xf] }
 0x3d1   : > { %v2301_v37 = vpop.f32.mrf.mxu2  ;;  %v2320_v58 = vpop.f32.mrf.mxu3 }
 0x3d2   : > { %v2181_v16 = vpop.f32.mrf.mxu0  ;;  %v2200_v27 = vpop.f32.mrf.mxu1 }
 0x3d3   : > { %v2300_v28 = vadd.f32 %v2299_v45, %v2181_v16  ;;  %v2319_v12 = vadd.f32 %v2318_v5, %v2200_v27  ;;  %v5806_v5 = vld [vmem:[%s8318_s8 + $0x30] sm:$0xff] }
 0x3da   : > { %v2183_v54 = vpop.f32.mrf.mxu0  ;;  %v2202_v0 = vpop.f32.mrf.mxu1 }
 0x3db   : > { %v2302_v24 = vadd.f32 %v2301_v37, %v2183_v54  ;;  %v2321_v41 = vadd.f32 %v2320_v58, %v2202_v0 }
 0x3e2   : > { %v2435_v59 = vpop.f32.mrf.mxu0  ;;  %v2454_v46 = vpop.f32.mrf.mxu1 }
 0x3e3   : > { %v2464_v49 = vadd.f32 %v2435_v59, %v2295_v6  ;;  %v2465_v4 = vadd.f32 %v2454_v46, %v2314_v30  ;;  %v5807_v46 = vld [vmem:[%s8318_s8 + $0x38] sm:$0xff] }
 0x3e4   : > { %2722 = vmatpush.bf16.msra.mxu0 %v5807_v46 }
 0x3e5   : > { %v2472_v55 = vrot.slane %v2464_v49, 1  ;;  %v2473_v36 = vrot.slane %v2465_v4, 1 }
 0x3e8   : > { %2723 = vmatpush.bf16.msra.mxu0 %v5806_v5 }
 0x3ea   : > { %v2437_v31 = vpop.f32.mrf.mxu0  ;;  %v2456_v23 = vpop.f32.mrf.mxu1 }
 0x3eb   : > { %v2466_v15 = vadd.f32 %v2437_v31, %v2297_v33  ;;  %v2467_v47 = vadd.f32 %v2456_v23, %v2316_v7 }
 0x3ed   : > { %v2474_v10 = vrot.slane %v2466_v15, 1  ;;  %v2475_v21 = vrot.slane %v2467_v47, 1 }
 0x3ef   : > { %v2484_v22 = vsel %vm1665_vm2, %v2472_v55, %v2474_v10  ;;  %v2485_v48 = vsel %vm1665_vm2, %v2473_v36, %v2475_v21 }
 0x3f0   : > { %v7617_v17 = vmax.f32 %v2464_v49, %v2484_v22  ;;  %v2489_v16 = vmax.f32 %v2465_v4, %v2485_v48  ;;  %v5814_v49 = vld [vmem:[%s8318_s8 + $0x70] sm:$0xff]  ;;  %v5845_v48 = vld [vmem:[%s8361_s3 + $0xe4] sm:$0xf0] }
 0x3f1   : > { %2741 = vmatpush.bf16.msra.mxu1 %v5814_v49 }
 0x3f2   : > { %v2440_v61 = vpop.f32.mrf.mxu0  ;;  %v2459_v26 = vpop.f32.mrf.mxu1 }
 0x3f3   : > { %v2468_v43 = vadd.f32 %v2440_v61, %v2300_v28  ;;  %v2469_v57 = vadd.f32 %v2459_v26, %v2319_v12 }
 0x3f5   : > { %v2476_v1 = vrot.slane %v2468_v43, 1  ;;  %v2477_v32 = vrot.slane %v2469_v57, 1 }
 0x3f7   : > { %v2482_v63 = vsel %vm1665_vm2, %v2474_v10, %v2476_v1  ;;  %v2483_v34 = vsel %vm1665_vm2, %v2475_v21, %v2477_v32  ;;  %v5846_v21 = vld [vmem:[%s8361_s3 + $0xf4] sm:$0xf] }
 0x3f8   : > { %v7619_v35 = vmax.f32 %v2466_v15, %v2482_v63  ;;  %v2491_v14 = vmax.f32 %v2467_v47, %v2483_v34  ;;  %v5811_v47 = vld [vmem:[%s8318_s8 + $0x58] sm:$0xff]  ;;  %v5034_v34 = vld [vmem:[%s8361_s3 + $0xe0] sm:$0xf] }
 0x3fa   : > { %v2442_v13 = vpop.f32.mrf.mxu0  ;;  %v2461_v50 = vpop.f32.mrf.mxu1  ;;  %v6039_v51 = vpack.i.bf16 %v7619_v35, %v7617_v17  ;;  %v6044_v27 = vpack.i.bf16 %v2491_v14, %v2489_v16 }
 0x3fb   : > { %v2470_v40 = vadd.f32 %v2442_v13, %v2302_v24  ;;  %v2471_v20 = vadd.f32 %v2461_v50, %v2321_v41  ;;  %v5805_v24 = vld [vmem:[%s8318_s8 + $0x28] sm:$0xff] }
 0x3fc   : > { %6040 = vrot.lane.b32.xlu1 %v6039_v51, %s6128_s27  ;;  %v5813_v41 = vld [vmem:[%s8318_s8 + $0x68] sm:$0xff]  ;;  %2724 = vmatpush.bf16.msra.mxu0 %v5805_v24 }
 0x3fd   : > { %v2478_v44 = vrot.slane %v2470_v40, 1  ;;  %v2479_v62 = vrot.slane %v2471_v20, 1  ;;  %2742 = vmatpush.bf16.msra.mxu1 %v5813_v41  ;;  %v5100_v24 = vld [vmem:[%s8361_s3 + $0x68] sm:$0xf0] }
 0x3ff   : > { %v2486_v42 = vsel %vm1665_vm2, %v2478_v44, %v2472_v55  ;;  %v2487_v60 = vsel %vm1665_vm2, %v2479_v62, %v2473_v36  ;;  %v2481_v8 = vsel %vm1665_vm2, %v2477_v32, %v2479_v62  ;;  %v2480_v9 = vsel %vm1665_vm2, %v2476_v1, %v2478_v44  ;;  %v5803_v36 = vld [vmem:[%s8318_s8 + $0x18] sm:$0xff]  ;;  %v2531_v32 = vld [vmem:[%s8315_s5 + $0x8] sm:$0x1] }
 0x400   : > { %v2494_v2 = vmax.f32 %v2470_v40, %v2486_v42  ;;  %v2495_v3 = vmax.f32 %v2471_v20, %v2487_v60  ;;  %v2493_v19 = vmax.f32 %v2469_v57, %v2481_v8  ;;  %v2492_v53 = vmax.f32 %v2468_v43, %v2480_v9  ;;  %v5799_v20 = vld [vmem:[%s8315_s5] sm:$0xff]  ;;  %v5802_v42 = vld [vmem:[%s8318_s8 + $0x10] sm:$0xff]  ;;  %v5801_v8 = vld [vmem:[%s8318_s8 + $0x8] sm:$0xff] }
 0x401   : > { %v2541_v44 = vunpack.c.l.b16 %v2531_v32  ;;  %v5810_v60 = vld [vmem:[%s8318_s8 + $0x50] sm:$0xff]  ;;  %v5809_v9 = vld [vmem:[%s8318_s8 + $0x48] sm:$0xff] }
 0x402   : > { %v6034_v56 = vpack.i.bf16 %v2495_v3, %v2493_v19  ;;  %v6029_v52 = vpack.i.bf16 %v2494_v2, %v2492_v53 }
 0x403   : > { %v2543_v62 = vpack.c.b16 %v2541_v44, %v2541_v44  ;;  %v5018_v44 = vld [vmem:[%s8361_s3 + $0xc0] sm:$0xf] }
 0x404   : > { %6035 = vrot.lane.b32.xlu0 %v6034_v56, %s6128_s27  ;;  %6030 = vrot.lane.b32.xlu2 %v6029_v52, %s6128_s27  ;;  %v5044_v52 = vld [vmem:[%s8361_s3 + $0xf8] sm:$0xf0] }
 0x40c   : > { %6045 = vrot.lane.b32.xlu2 %v6044_v27, %s6128_s27  ;;  %v5036_v27 = vld [vmem:[%s8361_s3 + $0xe8] sm:$0xf0]  ;;  %s4082_s27 = scalar_lea.hbm %s8363_s24, %s6241_s28  ;;  %s6083_s28 = scalar_lea.hbm %s8364_s20, 2 }
 0x40d   : > { %s4086_s1 = sshll.u32 %s4082_s27, 4  ;;  %s4087_s1 = int_to_ptr.hbm [resolvable:$true] %s4086_s1 }
 0x40e   : > { %s6077_s22 = sshra.s32 %s4087_s1, 4  ;;  %s6078_s22 = int_to_ptr.hbm [resolvable:$true] %s6077_s22 }
 0x40f   : > { %s6079_s21 = scalar_lea.hbm %s6078_s22, 1  ;;  %p6084_p0 = scmp.lt.s32.totalorder %s6078_s22, %s8364_s20 }
 0x410   : > { %p6080_p11 = scmp.ne.s32.totalorder %s6078_s22, %s6079_s21  ;;  %p6085_p1 = scmp.lt.s32.totalorder %s6083_s28, %s6079_s21 }
 0x412   : > { %p6081_p12 = pnand %p6080_p11, %p6258_p5  ;;  %p6086_p2 = por %p6085_p1, %p6084_p0 }
 0x414   : > { %p6082_p13 = pneg %p6081_p12 }
 0x416   : > { %p6087_p3 = pnand %p6086_p2, %p6082_p13 }
 0x45e   : > { %v6031_v11 = vpop.permute.xlu2 %6030 }
 0x45f   : > { %v6033_v33 = vunpack.i.h.bf16 %v6031_v11  ;;  %v6032_v6 = vunpack.i.l.bf16 %v6031_v11  ;;  %v5035_v11 = vor.u32 %v5845_v48, %v5034_v34  ;;  %v5839_v34 = vld [vmem:[%s8361_s3 + $0xb4] sm:$0xf0]  ;;  %v5838_v48 = vld [vmem:[%s8361_s3 + $0xb4] sm:$0xf] }
 0x466   : > { %v6046_v54 = vpop.permute.xlu2 %6045 }
 0x467   : > { %v6048_v18 = vunpack.i.h.bf16 %v6046_v54  ;;  %v6047_v31 = vunpack.i.l.bf16 %v6046_v54  ;;  %v5026_v54 = vld [vmem:[%s8361_s3 + $0xd0] sm:$0xf] }
 0x46e   : > { %v6041_v29 = vpop.permute.xlu1 %6040 }
 0x46f   : > { %v6043_v0 = vunpack.i.h.bf16 %v6041_v29  ;;  %v6042_v59 = vunpack.i.l.bf16 %v6041_v29 }
 0x471   : > { %v2513_v28 = vsel %vm2512_vm5, %v6042_v59, %v6047_v31  ;;  %v2514_v10 = vsel %vm2512_vm5, %v6043_v0, %v6048_v18  ;;  %v2517_v61 = vsel %vm2512_vm5, %v6047_v31, %v6042_v59  ;;  %v2518_v26 = vsel %vm2512_vm5, %v6048_v18, %v6043_v0  ;;  %v5843_v0 = vld [vmem:[%s8361_s3 + $0xd4] sm:$0xf0]  ;;  %v5028_v18 = vld [vmem:[%s8361_s3 + $0xd8] sm:$0xf0] }
 0x472   : > { %v2521_v58 = vmax.f32 %v7617_v17, %v2513_v28  ;;  %v2523_v4 = vmax.f32 %v7619_v35, %v2514_v10  ;;  %v2522_v50 = vmax.f32 %v2489_v16, %v2517_v61  ;;  %v2524_v51 = vmax.f32 %v2491_v14, %v2518_v26  ;;  %v5804_v17 = vld [vmem:[%s8318_s8 + $0x20] sm:$0xff] }
 0x473   : > { %v5812_v35 = vld [vmem:[%s8318_s8 + $0x60] sm:$0xff]  ;;  %2725 = vmatpush.bf16.msra.mxu0 %v5804_v17  ;;  %v5047_v14 = vor.u32 %v5846_v21, %v5044_v52  ;;  %v5027_v31 = vor.u32 %v5843_v0, %v5026_v54  ;;  %v5092_v17 = vld [vmem:[%s8361_s3 + $0x58] sm:$0xf0]  ;;  %v5010_v52 = vld [vmem:[%s8361_s3 + $0xb0] sm:$0xf] }
 0x474   : > { %v2532_v7 = vpack.c.bf16 %v2523_v4, %v2521_v58  ;;  %v2533_v40 = vpack.c.bf16 %v2524_v51, %v2522_v50  ;;  %2743 = vmatpush.bf16.msra.mxu1 %v5812_v35  ;;  %v5844_v16 = vld [vmem:[%s8361_s3 + $0xe4] sm:$0xf]  ;;  %v5826_v50 = vld [vmem:[%s8361_s3 + $0x54] sm:$0xf]  ;;  %v5076_v21 = vld [vmem:[%s8361_s3 + $0x38] sm:$0xf0] }
 0x475   : > { %v5039_v29 = vor.u32 %v5844_v16, %v5036_v27  ;;  %v5828_v58 = vld [vmem:[%s8361_s3 + $0x64] sm:$0xf]  ;;  %v5095_v35 = vor.u32 %v5826_v50, %v5092_v17  ;;  %v5012_v16 = vld [vmem:[%s8361_s3 + $0xb8] sm:$0xf0]  ;;  %v5066_v27 = vld [vmem:[%s8361_s3 + $0x20] sm:$0xf] }
 0x476   : > { %v6036_v23 = vpop.permute.xlu0 %6035  ;;  %v5103_v41 = vor.u32 %v5828_v58, %v5100_v24  ;;  %v5820_v0 = vld [vmem:[%s8361_s3 + $0x24] sm:$0xf]  ;;  %v5052_v58 = vld [vmem:[%s8361_s3 + $0x8] sm:$0xf0]  ;;  %v4986_v24 = vld [vmem:[%s8361_s3 + $0x80] sm:$0xf] }
 0x477   : > { %v6038_v15 = vunpack.i.h.bf16 %v6036_v23  ;;  %v6037_v45 = vunpack.i.l.bf16 %v6036_v23  ;;  %2726 = vmatpush.bf16.msra.mxu0 %v5803_v36  ;;  %v5031_v23 = vor.u32 %v5842_v39, %v5028_v18  ;;  %v5002_v39 = vld [vmem:[%s8361_s3 + $0xa0] sm:$0xf]  ;;  %v5837_v18 = vld [vmem:[%s8361_s3 + $0xa4] sm:$0xf0]  ;;  %v4988_v50 = vld [vmem:[%s8361_s3 + $0x88] sm:$0xf0] }
 0x478   : > { %2744 = vmatpush.bf16.msra.mxu1 %v5811_v47  ;;  %v5084_v47 = vld [vmem:[%s8361_s3 + $0x48] sm:$0xf0] }
 0x479   : > { %v2515_v55 = vsel %vm2512_vm5, %v6032_v6, %v6037_v45  ;;  %v2516_v43 = vsel %vm2512_vm5, %v6033_v33, %v6038_v15  ;;  %v2519_v1 = vsel %vm2512_vm5, %v6037_v45, %v6032_v6  ;;  %v2520_v22 = vsel %vm2512_vm5, %v6038_v15, %v6033_v33 }
 0x47a   : > { %v2525_v30 = vmax.f32 %v2492_v53, %v2515_v55  ;;  %v2526_v12 = vmax.f32 %v2493_v19, %v2519_v1  ;;  %v2527_v63 = vmax.f32 %v2494_v2, %v2516_v43  ;;  %v2528_v37 = vmax.f32 %v2495_v3, %v2520_v22  ;;  %v5800_v2 = vld [vmem:[%s8318_s8] sm:$0xff]  ;;  %v5042_v19 = vld [vmem:[%s8361_s3 + $0xf0] sm:$0xf]  ;;  %v5847_v53 = vld [vmem:[%s8361_s3 + $0xf4] sm:$0xf0] }
 0x47b   : > { %2727 = vmatpush.bf16.msra.mxu0 %v5802_v42  ;;  %v5808_v3 = vld [vmem:[%s8318_s8 + $0x40] sm:$0xff]  ;;  %v5043_v56 = vor.u32 %v5847_v53, %v5042_v19  ;;  %v5106_v55 = vld [vmem:[%s8361_s3 + $0x70] sm:$0xf]  ;;  %v5831_v43 = vld [vmem:[%s8361_s3 + $0x74] sm:$0xf0] }
 0x47c   : > { %v2534_v57 = vpack.c.bf16 %v2527_v63, %v2525_v30  ;;  %v2535_v13 = vpack.c.bf16 %v2528_v37, %v2526_v12  ;;  %2745 = vmatpush.bf16.msra.mxu1 %v5810_v60  ;;  %v5830_v1 = vld [vmem:[%s8361_s3 + $0x74] sm:$0xf]  ;;  %v5107_v22 = vor.u32 %v5831_v43, %v5106_v55  ;;  %v5108_v30 = vld [vmem:[%s8361_s3 + $0x78] sm:$0xf0]  ;;  %v5098_v63 = vld [vmem:[%s8361_s3 + $0x60] sm:$0xf] }
 0x47d   : > { %v5111_v12 = vor.u32 %v5830_v1, %v5108_v30  ;;  %v5829_v37 = vld [vmem:[%s8361_s3 + $0x64] sm:$0xf0]  ;;  %v5840_v42 = vld [vmem:[%s8361_s3 + $0xc4] sm:$0xf]  ;;  %v5822_v53 = vld [vmem:[%s8361_s3 + $0x34] sm:$0xf] }
 0x47e   : > { %2557 = vmatpush.bf16.msrb.mxu2 %v2534_v57  ;;  %2575 = vmatpush.bf16.msrb.mxu3 %v2535_v13  ;;  %v5099_v4 = vor.u32 %v5829_v37, %v5098_v63  ;;  %v5090_v57 = vld [vmem:[%s8361_s3 + $0x50] sm:$0xf]  ;;  %v5827_v13 = vld [vmem:[%s8361_s3 + $0x54] sm:$0xf0]  ;;  %v5834_v55 = vld [vmem:[%s8361_s3 + $0x94] sm:$0xf] }
 0x47f   : > { %2728 = vmatpush.bf16.msra.mxu0 %v5801_v8  ;;  %v5091_v51 = vor.u32 %v5827_v13, %v5090_v57  ;;  %v5020_v8 = vld [vmem:[%s8361_s3 + $0xc8] sm:$0xf0]  ;;  %v4996_v1 = vld [vmem:[%s8361_s3 + $0x98] sm:$0xf0]  ;;  %v5817_v30 = vld [vmem:[%s8361_s3 + $0x4] sm:$0xf0] }
 0x480   : > { %2746 = vmatpush.bf16.msra.mxu1 %v5809_v9  ;;  %v5074_v9 = vld [vmem:[%s8361_s3 + $0x30] sm:$0xf]  ;;  %v5816_v37 = vld [vmem:[%s8361_s3 + $0x4] sm:$0xf] }
 0x481   : > { %v5832_v13 = vld [vmem:[%s8361_s3 + $0x84] sm:$0xf] }
 0x482   : > { %2558 = vmatpush.bf16.msrb.mxu2 %v2532_v7  ;;  %2576 = vmatpush.bf16.msrb.mxu3 %v2533_v40  ;;  %v5082_v7 = vld [vmem:[%s8361_s3 + $0x40] sm:$0xf]  ;;  %v5825_v40 = vld [vmem:[%s8361_s3 + $0x44] sm:$0xf0]  ;;  %v4991_v17 = vor.u32 %v5832_v13, %v4988_v50  ;;  %v2625_v50 = vld [vmem:[%s8321_s11 + $0x10] sm:$0x3] }
 0x483   : > { %2729 = vmatpush.bf16.msra.mxu0 %v5800_v2  ;;  %v5083_v36 = vor.u32 %v5825_v40, %v5082_v7  ;;  %v5823_v2 = vld [vmem:[%s8361_s3 + $0x34] sm:$0xf0]  ;;  %v5862_v7 = vld [vmem:[%s8361_s3 + $0x174] sm:$0xf]  ;;  %v5188_v40 = vld [vmem:[%s8361_s3 + $0x178] sm:$0xf0] }
 0x484   : > { %2747 = vmatpush.bf16.msra.mxu1 %v5808_v3  ;;  %v5023_v3 = vor.u32 %v5840_v42, %v5020_v8  ;;  %v5075_v19 = vor.u32 %v5823_v2, %v5074_v9  ;;  %v5180_v42 = vld [vmem:[%s8361_s3 + $0x168] sm:$0xf0]  ;;  %v5170_v8 = vld [vmem:[%s8361_s3 + $0x150] sm:$0xf]  ;;  %v5859_v9 = vld [vmem:[%s8361_s3 + $0x154] sm:$0xf0] }
 0x485   : > { %4900 = vmatmul.msk.bf16.vlgmr.msrb.gmra.mxu2 %vm2544_vm6, %v5799_v20  ;;  %4902 = vmatmul.msk.bf16.vlgmr.msrb.gmra.mxu3 %vm2544_vm6, %v5799_v20  ;;  %v5824_v20 = vld [vmem:[%s8361_s3 + $0x44] sm:$0xf]  ;;  %v5858_v2 = vld [vmem:[%s8361_s3 + $0x154] sm:$0xf] }
 0x486   : > { %2883 = vmatpush.bf16.msra.mxu2 %v5043_v56  ;;  %2897 = vmatpush.bf16.msra.mxu3 %v5047_v14  ;;  %v5087_v32 = vor.u32 %v5824_v20, %v5084_v47  ;;  %v5079_v56 = vor.u32 %v5822_v53, %v5076_v21  ;;  %v5011_v14 = vor.u32 %v5839_v34, %v5010_v52  ;;  %v5178_v47 = vld [vmem:[%s8361_s3 + $0x160] sm:$0xf]  ;;  %v5856_v52 = vld [vmem:[%s8361_s3 + $0x144] sm:$0xf]  ;;  %v5164_v34 = vld [vmem:[%s8361_s3 + $0x148] sm:$0xf0] }
 0x487   : > { %2991 = vmatpush.bf16.msrb.mxu0 %v5107_v22  ;;  %v5050_v22 = vld [vmem:[%s8361_s3] sm:$0xf] }
 0x488   : > { %3005 = vmatpush.bf16.msrb.mxu1 %v5111_v12  ;;  %v4999_v12 = vor.u32 %v5834_v55, %v4996_v1  ;;  %v5051_v63 = vor.u32 %v5817_v30, %v5050_v22  ;;  %v5162_v53 = vld [vmem:[%s8361_s3 + $0x140] sm:$0xf]  ;;  %v2624_v55 = vld [vmem:[%s8321_s11 + $0x8] sm:$0xff] }
 0x48a   : > { %2884 = vmatpush.bf16.msra.mxu2 %v5035_v11  ;;  %2898 = vmatpush.bf16.msra.mxu3 %v5039_v29  ;;  %v5821_v11 = vld [vmem:[%s8361_s3 + $0x24] sm:$0xf0]  ;;  %v5015_v29 = vor.u32 %v5838_v48, %v5012_v16  ;;  %v2623_v16 = vld [vmem:[%s8321_s11] sm:$0xff] }
 0x48b   : > { %2992 = vmatpush.bf16.msrb.mxu0 %v5099_v4  ;;  %v5067_v54 = vor.u32 %v5821_v11, %v5066_v27  ;;  %v5055_v4 = vor.u32 %v5816_v37, %v5052_v58  ;;  %v5849_v37 = vld [vmem:[%s8361_s3 + $0x104] sm:$0xf0]  ;;  %v5848_v58 = vld [vmem:[%s8361_s3 + $0x104] sm:$0xf] }
 0x48c   : > { %3006 = vmatpush.bf16.msrb.mxu1 %v5103_v41  ;;  %v5833_v41 = vld [vmem:[%s8361_s3 + $0x84] sm:$0xf0] }
 0x48d   : > { %v4987_v57 = vor.u32 %v5833_v41, %v4986_v24 }
 0x48e   : > { %2885 = vmatpush.bf16.msra.mxu2 %v5027_v31  ;;  %2899 = vmatpush.bf16.msra.mxu3 %v5031_v23  ;;  %v5003_v31 = vor.u32 %v5837_v18, %v5002_v39  ;;  %v5836_v23 = vld [vmem:[%s8361_s3 + $0xa4] sm:$0xf]  ;;  %v5156_v39 = vld [vmem:[%s8361_s3 + $0x138] sm:$0xf0]  ;;  %v5146_v18 = vld [vmem:[%s8361_s3 + $0x120] sm:$0xf] }
 0x48f   : > { %2993 = vmatpush.bf16.msrb.mxu0 %v5091_v51  ;;  %v5186_v51 = vld [vmem:[%s8361_s3 + $0x170] sm:$0xf] }
 0x490   : > { %3007 = vmatpush.bf16.msrb.mxu1 %v5095_v35  ;;  %v5863_v35 = vld [vmem:[%s8361_s3 + $0x174] sm:$0xf0] }
 0x491   : > { %v5187_v20 = vor.u32 %v5863_v35, %v5186_v51 }
 0x492   : > { %2900 = vmatpush.bf16.msra.mxu3 %v5023_v3  ;;  %v5171_v3 = vor.u32 %v5859_v9, %v5170_v8 }
 0x493   : > { %2994 = vmatpush.bf16.msrb.mxu0 %v5083_v36  ;;  %v5191_v36 = vor.u32 %v5862_v7, %v5188_v40 }
 0x494   : > { %3008 = vmatpush.bf16.msrb.mxu1 %v5087_v32  ;;  %v5861_v32 = vld [vmem:[%s8361_s3 + $0x164] sm:$0xf0] }
 0x495   : > { %4901 = vmatmul.msk.bf16.gmra.mxu2 %vm2544_vm6, %v2543_v62  ;;  %4903 = vmatmul.msk.bf16.gmra.mxu3 %vm2544_vm6, %v2543_v62  ;;  %v5841_v62 = vld [vmem:[%s8361_s3 + $0xc4] sm:$0xf0] }
 0x496   : > { %v5019_v60 = vor.u32 %v5841_v62, %v5018_v44  ;;  %2901 = vmatpush.bf16.msra.mxu3 %v5015_v29  ;;  %v5860_v44 = vld [vmem:[%s8361_s3 + $0x164] sm:$0xf]  ;;  %v5179_v62 = vor.u32 %v5861_v32, %v5178_v47  ;;  %v5154_v29 = vld [vmem:[%s8361_s3 + $0x130] sm:$0xf] }
 0x497   : > { %2995 = vmatpush.bf16.msrb.mxu0 %v5075_v19  ;;  %v5172_v19 = vld [vmem:[%s8361_s3 + $0x158] sm:$0xf0] }
 0x498   : > { %2886 = vmatpush.bf16.msra.mxu2 %v5019_v60  ;;  %3009 = vmatpush.bf16.msrb.mxu1 %v5079_v56  ;;  %v5183_v60 = vor.u32 %v5860_v44, %v5180_v42  ;;  %v5175_v21 = vor.u32 %v5858_v2, %v5172_v19  ;;  %v5857_v56 = vld [vmem:[%s8361_s3 + $0x144] sm:$0xf0] }
 0x499   : > { %v5163_v48 = vor.u32 %v5857_v56, %v5162_v53 }
 0x49b   : > { %2996 = vmatpush.bf16.msrb.mxu0 %v5067_v54  ;;  %v5855_v54 = vld [vmem:[%s8361_s3 + $0x134] sm:$0xf0] }
 0x49c   : > { %2887 = vmatpush.bf16.msra.mxu2 %v5011_v14  ;;  %v5167_v14 = vor.u32 %v5856_v52, %v5164_v34 }
 0x4a0   : > { %2888 = vmatpush.bf16.msra.mxu2 %v5003_v31  ;;  %v5853_v31 = vld [vmem:[%s8361_s3 + $0x124] sm:$0xf0] }
 0x508   : > { %v2560_v59 = vpop.f32.mrf.mxu2  ;;  %v2578_v46 = vpop.f32.mrf.mxu3 }
 0x510   : > { %v2562_v33 = vpop.f32.mrf.mxu2  ;;  %v2580_v6 = vpop.f32.mrf.mxu3 }
 0x511   : > { %v2587_v15 = vpack.c.bf16 %v2562_v33, %v2560_v59  ;;  %v2588_v45 = vpack.c.bf16 %v2580_v6, %v2578_v46  ;;  %v5068_v59 = vld [vmem:[%s8361_s3 + $0x28] sm:$0xf0]  ;;  %v5058_v6 = vld [vmem:[%s8361_s3 + $0x10] sm:$0xf] }
 0x512   : > { %v5071_v46 = vor.u32 %v5820_v0, %v5068_v59  ;;  %v5004_v33 = vld [vmem:[%s8361_s3 + $0xa8] sm:$0xf0]  ;;  %v5854_v0 = vld [vmem:[%s8361_s3 + $0x134] sm:$0xf] }
 0x513   : > { %2730 = vmatmul.bf16.vlgmr.msra.gmra.mxu0 %v2587_v15  ;;  %2748 = vmatmul.bf16.vlgmr.msra.gmra.mxu1 %v2588_v45  ;;  %v5007_v15 = vor.u32 %v5836_v23, %v5004_v33  ;;  %v5819_v45 = vld [vmem:[%s8361_s3 + $0x14] sm:$0xf0]  ;;  %v5159_v23 = vor.u32 %v5854_v0, %v5156_v39  ;;  %v5852_v33 = vld [vmem:[%s8361_s3 + $0x124] sm:$0xf] }
 0x514   : > { %3010 = vmatpush.bf16.msrb.mxu1 %v5071_v46  ;;  %v5155_v46 = vor.u32 %v5855_v54, %v5154_v29 }
 0x515   : > { %2902 = vmatpush.bf16.msra.mxu3 %v5007_v15 }
 0x518   : > { %v2565_v5 = vpop.f32.mrf.mxu2  ;;  %v2583_v49 = vpop.f32.mrf.mxu3 }
 0x519   : > { %v2589_v28 = vpack.c.bf16 %v2565_v5, %v2565_v5  ;;  %v2590_v10 = vpack.c.bf16 %v2583_v49, %v2583_v49  ;;  %v5818_v5 = vld [vmem:[%s8361_s3 + $0x14] sm:$0xf]  ;;  %v5060_v49 = vld [vmem:[%s8361_s3 + $0x18] sm:$0xf0]  ;;  %2903 = vmatpush.bf16.msra.mxu3 %v4999_v12  ;;  %v5130_v12 = vld [vmem:[%s8361_s3 + $0x100] sm:$0xf] }
 0x51a   : > { %v5131_v41 = vor.u32 %v5849_v37, %v5130_v12  ;;  %v5878_v12 = vld [vmem:[%s8319_s9 + $0x68] sm:$0xff]  ;;  %v5877_v37 = vld [vmem:[%s8319_s9 + $0x60] sm:$0xff] }
 0x51d   : > { %2904 = vmatpush.bf16.msra.mxu3 %v4991_v17 }
 0x520   : > { %v2567_v61 = vpop.f32.mrf.mxu2  ;;  %v2585_v26 = vpop.f32.mrf.mxu3 }
 0x521   : > { %v4994_v61 = vld [vmem:[%s8361_s3 + $0x90] sm:$0xf]  ;;  %v5835_v26 = vld [vmem:[%s8361_s3 + $0x94] sm:$0xf0]  ;;  %3133 = vmatpush.bf16.msrb.mxu3 %v5191_v36 }
 0x522   : > { %v4995_v43 = vor.u32 %v5835_v26, %v4994_v61  ;;  %v5850_v61 = vld [vmem:[%s8361_s3 + $0x114] sm:$0xf]  ;;  %v5140_v26 = vld [vmem:[%s8361_s3 + $0x118] sm:$0xf0] }
 0x523   : > { %2735 = vmatmul.bf16.gmra.mxu0 %v2589_v28  ;;  %2753 = vmatmul.bf16.gmra.mxu1 %v2590_v10  ;;  %v5059_v28 = vor.u32 %v5819_v45, %v5058_v6  ;;  %v5063_v10 = vor.u32 %v5818_v5, %v5060_v49  ;;  %v5148_v6 = vld [vmem:[%s8361_s3 + $0x128] sm:$0xf0]  ;;  %v5147_v45 = vor.u32 %v5853_v31, %v5146_v18  ;;  %v5138_v49 = vld [vmem:[%s8361_s3 + $0x110] sm:$0xf] }
 0x524   : > { %2889 = vmatpush.bf16.msra.mxu2 %v4995_v43  ;;  %v5151_v5 = vor.u32 %v5852_v33, %v5148_v6  ;;  %v5143_v30 = vor.u32 %v5850_v61, %v5140_v26 }
 0x525   : > { %2997 = vmatpush.bf16.msrb.mxu0 %v5059_v28  ;;  %3011 = vmatpush.bf16.msrb.mxu1 %v5063_v10  ;;  %v5851_v28 = vld [vmem:[%s8361_s3 + $0x114] sm:$0xf0] }
 0x526   : > { %3134 = vmatpush.bf16.msrb.mxu3 %v5183_v60  ;;  %v5139_v22 = vor.u32 %v5851_v28, %v5138_v49 }
 0x528   : > { %2890 = vmatpush.bf16.msra.mxu2 %v4987_v57 }
 0x529   : > { %2998 = vmatpush.bf16.msrb.mxu0 %v5051_v63  ;;  %3012 = vmatpush.bf16.msrb.mxu1 %v5055_v4  ;;  %v5132_v4 = vld [vmem:[%s8361_s3 + $0x108] sm:$0xf0] }
 0x52a   : > { %3135 = vmatpush.bf16.msrb.mxu3 %v5175_v21  ;;  %v5135_v57 = vor.u32 %v5848_v58, %v5132_v4  ;;  %v5868_v58 = vld [vmem:[%s8319_s9 + $0x18] sm:$0xff] }
 0x52b   : > { %v5876_v4 = vld [vmem:[%s8319_s9 + $0x58] sm:$0xff] }
 0x52c   : > { %3119 = vmatpush.bf16.msrb.mxu2 %v5187_v20 }
 0x52e   : > { %3136 = vmatpush.bf16.msrb.mxu3 %v5167_v14 }
 0x530   : > { %3120 = vmatpush.bf16.msrb.mxu2 %v5179_v62 }
 0x532   : > { %3137 = vmatpush.bf16.msrb.mxu3 %v5159_v23 }
 0x534   : > { %3121 = vmatpush.bf16.msrb.mxu2 %v5171_v3 }
 0x536   : > { %3138 = vmatpush.bf16.msrb.mxu3 %v5151_v5 }
 0x538   : > { %3122 = vmatpush.bf16.msrb.mxu2 %v5163_v48 }
 0x53a   : > { %3139 = vmatpush.bf16.msrb.mxu3 %v5143_v30  ;;  %v5870_v30 = vld [vmem:[%s8319_s9 + $0x28] sm:$0xff] }
 0x53c   : > { %3123 = vmatpush.bf16.msrb.mxu2 %v5155_v46 }
 0x53e   : > { %3140 = vmatpush.bf16.msrb.mxu3 %v5135_v57 }
 0x540   : > { %3124 = vmatpush.bf16.msrb.mxu2 %v5147_v45 }
 0x544   : > { %3125 = vmatpush.bf16.msrb.mxu2 %v5139_v22  ;;  %v5879_v22 = vld [vmem:[%s8319_s9 + $0x70] sm:$0xff] }
 0x548   : > { %3126 = vmatpush.bf16.msrb.mxu2 %v5131_v41 }
 0x590   : > { %v2731_v27 = vpop.f32.mrf.mxu0  ;;  %v2749_v11 = vpop.f32.mrf.mxu1 }
 0x591   : > { %v2732_v59 = vadd.f32 %v2731_v27, %v2623_v16 }
 0x593   : > { %v2750_v15 = vadd.f32 %v2749_v11, %v2732_v59 }
 0x595   : > { %v2758_v10 = vmax.f32 %v2750_v15, 0.0 }
 0x597   : > { %2761 = vst [vmem:[#allocation2] sm:$0xff] %v2758_v10 }
 0x598   : > { %v2733_v43 = vpop.f32.mrf.mxu0  ;;  %v2751_v1 = vpop.f32.mrf.mxu1 }
 0x599   : > { %v2734_v63 = vadd.f32 %v2733_v43, %v2624_v55  ;;  %v5872_v43 = vld [vmem:[%s8319_s9 + $0x38] sm:$0xff] }
 0x59b   : > { %v2752_v24 = vadd.f32 %v2751_v1, %v2734_v63  ;;  %v5880_v1 = vld [vmem:[%s8319_s9 + $0x78] sm:$0xff]  ;;  %v5869_v63 = vld [vmem:[%s8319_s9 + $0x20] sm:$0xff] }
 0x59d   : > { %v2759_v13 = vmax.f32 %v2752_v24, 0.0 }
 0x59f   : > { %2762 = vst [vmem:[#allocation2 + $0x8] sm:$0xff] %v2759_v13  ;;  %v2766_v51 = vpack.c.bf16 %v2759_v13, %v2758_v10 }
 0x5a0   : > { %v2736_v17 = vpop.f32.mrf.mxu0  ;;  %v2754_v35 = vpop.f32.mrf.mxu1 }
 0x5a1   : > { %v2737_v7 = vadd.f32 %v2736_v17, %v2625_v50  ;;  %2999 = vmatmul.bf16.vlgmr.msrb.gmra.mxu0 %v2766_v51  ;;  %3013 = vmatmul.bf16.vlgmr.msrb.gmra.mxu1 %v2766_v51 }
 0x5a3   : > { %v2755_v40 = vadd.f32 %v2754_v35, %v2737_v7 }
 0x5a5   : > { %v2760_v20 = vmax.f32 %v2755_v40, 0.0 }
 0x5a6   : > { %v2783_v32 = vld [vmem:[#allocation2 + $0x1] sm:$0xff] }
 0x5a7   : > { %2763 = vst [vmem:[#allocation2 + $0x10] sm:$0x3] %v2760_v20  ;;  %v3019_v60 = vld [vmem:[#allocation2 + $0x2] sm:$0xff] }
 0x5a8   : > { %v2738_v36 = vpop.f32.mrf.mxu0  ;;  %v2756_v47 = vpop.f32.mrf.mxu1 }
 0x5ae   : > { %v2784_v44 = vld [vmem:[#allocation2 + $0x9] sm:$0xff] }
 0x5af   : > { %v2785_v62 = vpack.c.bf16 %v2784_v44, %v2783_v32  ;;  %v3020_v42 = vld [vmem:[#allocation2 + $0xa] sm:$0xff]  ;;  %v5194_v44 = vld [vmem:[%s8316_s6] sm:$0xf] }
 0x5b0   : > { %v3021_v8 = vpack.c.bf16 %v3020_v42, %v3019_v60  ;;  %v5195_v60 = vor.u32 %v5864_v25, %v5194_v44  ;;  %v5925_v44 = vld [vmem:[%s8323_s13 + $0x160] sm:$0xff]  ;;  %v5932_v25 = vld [vmem:[%s8323_s13 + $0x198] sm:$0xff] }
 0x5b1   : > { %2891 = vmatmul.bf16.vlgmr.msra.gmra.mxu2 %v2785_v62  ;;  %2905 = vmatmul.bf16.vlgmr.msra.gmra.mxu3 %v2785_v62 }
 0x5b2   : > { %3353 = vmatpush.bf16.msra.mxu2 %v5872_v43  ;;  %3367 = vmatpush.bf16.msra.mxu3 %v5880_v1 }
 0x5b6   : > { %3354 = vmatpush.bf16.msra.mxu2 %v5871_v38  ;;  %3368 = vmatpush.bf16.msra.mxu3 %v5879_v22 }
 0x5ba   : > { %3355 = vmatpush.bf16.msra.mxu2 %v5870_v30  ;;  %3369 = vmatpush.bf16.msra.mxu3 %v5878_v12  ;;  %v5890_v30 = vld [vmem:[%s8323_s13 + $0x48] sm:$0xff]  ;;  %v5897_v12 = vld [vmem:[%s8323_s13 + $0x80] sm:$0xff] }
 0x5be   : > { %3356 = vmatpush.bf16.msra.mxu2 %v5869_v63  ;;  %3370 = vmatpush.bf16.msra.mxu3 %v5877_v37  ;;  %v5881_v63 = vld [vmem:[%s8323_s13] sm:$0xff] }
 0x5bf   : > { %v5905_v37 = vld [vmem:[%s8323_s13 + $0xc0] sm:$0xff] }
 0x5c1   : > { %3127 = vmatmul.bf16.vlgmr.msrb.gmra.mxu2 %v3021_v8  ;;  %3141 = vmatmul.bf16.vlgmr.msrb.gmra.mxu3 %v3021_v8  ;;  %v5867_v8 = vld [vmem:[%s8319_s9 + $0x10] sm:$0xff] }
 0x5c2   : > { %3357 = vmatpush.bf16.msra.mxu2 %v5868_v58  ;;  %3371 = vmatpush.bf16.msra.mxu3 %v5876_v4  ;;  %v5936_v58 = vld [vmem:[%s8323_s13 + $0x1b8] sm:$0xff] }
 0x5c3   : > { %v5920_v4 = vld [vmem:[%s8323_s13 + $0x138] sm:$0xff] }
 0x5c6   : > { %3358 = vmatpush.bf16.msra.mxu2 %v5867_v8  ;;  %v5931_v8 = vld [vmem:[%s8323_s13 + $0x190] sm:$0xff] }
 0x61e   : > { %v3000_v53 = vpop.f32.mrf.mxu0  ;;  %v3014_v21 = vpop.f32.mrf.mxu1 }
 0x626   : > { %v3002_v14 = vpop.f32.mrf.mxu0  ;;  %v3016_v16 = vpop.f32.mrf.mxu1 }
 0x634   : > { %v2892_v9 = vpop.f32.mrf.mxu2  ;;  %v2906_v2 = vpop.f32.mrf.mxu3 }
 0x635   : > { %v3001_v34 = vadd.f32 %v3000_v53, %v2892_v9  ;;  %v3015_v48 = vadd.f32 %v3014_v21, %v2906_v2  ;;  %v5875_v9 = vld [vmem:[%s8319_s9 + $0x50] sm:$0xff]  ;;  %v5866_v2 = vld [vmem:[%s8319_s9 + $0x8] sm:$0xff]  ;;  %v5873_v53 = vld [vmem:[%s8319_s9 + $0x40] sm:$0xff] }
 0x636   : > { %3372 = vmatpush.bf16.msra.mxu3 %v5875_v9  ;;  %3359 = vmatpush.bf16.msra.mxu2 %v5866_v2  ;;  %v5904_v21 = vld [vmem:[%s8323_s13 + $0xb8] sm:$0xff]  ;;  %v5915_v9 = vld [vmem:[%s8323_s13 + $0x110] sm:$0xff] }
 0x637   : > { %v5939_v2 = vld [vmem:[%s8323_s13 + $0x1d0] sm:$0xff] }
 0x63c   : > { %v2894_v3 = vpop.f32.mrf.mxu2  ;;  %v2908_v19 = vpop.f32.mrf.mxu3 }
 0x63d   : > { %v3003_v27 = vadd.f32 %v3002_v14, %v2894_v3  ;;  %v3017_v11 = vadd.f32 %v3016_v16, %v2908_v19  ;;  %v5874_v3 = vld [vmem:[%s8319_s9 + $0x48] sm:$0xff]  ;;  %v5865_v19 = vld [vmem:[%s8319_s9] sm:$0xff]  ;;  %v5887_v14 = vld [vmem:[%s8323_s13 + $0x30] sm:$0xff] }
 0x63e   : > { %3373 = vmatpush.bf16.msra.mxu3 %v5874_v3  ;;  %3360 = vmatpush.bf16.msra.mxu2 %v5865_v19  ;;  %v5911_v16 = vld [vmem:[%s8323_s13 + $0xf0] sm:$0xff]  ;;  %v5930_v19 = vld [vmem:[%s8323_s13 + $0x188] sm:$0xff] }
 0x63f   : > { %v5923_v3 = vld [vmem:[%s8323_s13 + $0x150] sm:$0xff] }
 0x642   : > { %3374 = vmatpush.bf16.msra.mxu3 %v5873_v53  ;;  %3614 = vmatpush.bf16.msrb.mxu2 %v5904_v21  ;;  %v5914_v53 = vld [vmem:[%s8323_s13 + $0x108] sm:$0xff] }
 0x643   : > { %v5938_v21 = vld [vmem:[%s8323_s13 + $0x1c8] sm:$0xff] }
 0x644   : > { %v3128_v56 = vpop.f32.mrf.mxu2  ;;  %v3142_v52 = vpop.f32.mrf.mxu3 }
 0x645   : > { %v3147_v29 = vadd.f32 %v3128_v56, %v3001_v34  ;;  %v3148_v54 = vadd.f32 %v3142_v52, %v3015_v48  ;;  %v5888_v56 = vld [vmem:[%s8323_s13 + $0x38] sm:$0xff]  ;;  %v5903_v48 = vld [vmem:[%s8323_s13 + $0xb0] sm:$0xff] }
 0x646   : > { %v5912_v52 = vld [vmem:[%s8323_s13 + $0xf8] sm:$0xff]  ;;  %3615 = vmatpush.bf16.msrb.mxu2 %v5903_v48  ;;  %v5937_v48 = vld [vmem:[%s8323_s13 + $0x1c0] sm:$0xff] }
 0x647   : > { %v3151_v18 = vrot.slane %v3147_v29, 1  ;;  %v3152_v31 = vrot.slane %v3148_v54, 1  ;;  %v5896_v34 = vld [vmem:[%s8323_s13 + $0x78] sm:$0xff]  ;;  %3695 = vmatpush.bf16.msrb.mxu3 %v5912_v52  ;;  %v5929_v52 = vld [vmem:[%s8323_s13 + $0x180] sm:$0xff] }
 0x64b   : > { %3696 = vmatpush.bf16.msrb.mxu3 %v5911_v16  ;;  %v5921_v16 = vld [vmem:[%s8323_s13 + $0x140] sm:$0xff] }
 0x64c   : > { %v3130_v0 = vpop.f32.mrf.mxu2  ;;  %v3144_v59 = vpop.f32.mrf.mxu3 }
 0x64d   : > { %v3149_v46 = vadd.f32 %v3130_v0, %v3003_v27  ;;  %v3150_v39 = vadd.f32 %v3144_v59, %v3017_v11  ;;  %v5895_v27 = vld [vmem:[%s8323_s13 + $0x70] sm:$0xff]  ;;  %v5902_v11 = vld [vmem:[%s8323_s13 + $0xa8] sm:$0xff]  ;;  %v5901_v59 = vld [vmem:[%s8323_s13 + $0xa0] sm:$0xff] }
 0x64e   : > { %v5894_v0 = vld [vmem:[%s8323_s13 + $0x68] sm:$0xff]  ;;  %3616 = vmatpush.bf16.msrb.mxu2 %v5902_v11 }
 0x64f   : > { %v3153_v23 = vrot.slane %v3149_v46, 1  ;;  %v3154_v33 = vrot.slane %v3150_v39, 1 }
 0x651   : > { %v3157_v6 = vsel %vm1665_vm2, %v3153_v23, %v3151_v18  ;;  %v3158_v15 = vsel %vm1665_vm2, %v3154_v33, %v3152_v31  ;;  %v3156_v45 = vsel %vm1665_vm2, %v3152_v31, %v3154_v33  ;;  %v3155_v5 = vsel %vm1665_vm2, %v3151_v18, %v3153_v23  ;;  %v5893_v18 = vld [vmem:[%s8323_s13 + $0x60] sm:$0xff]  ;;  %v5900_v31 = vld [vmem:[%s8323_s13 + $0x98] sm:$0xff] }
 0x652   : > { %v3161_v49 = vmax.f32 %v3149_v46, %v3157_v6  ;;  %v3162_v28 = vmax.f32 %v3150_v39, %v3158_v15  ;;  %v3160_v10 = vmax.f32 %v3148_v54, %v3156_v45  ;;  %v3159_v61 = vmax.f32 %v3147_v29, %v3155_v5  ;;  %v5886_v29 = vld [vmem:[%s8323_s13 + $0x28] sm:$0xff]  ;;  %v5885_v46 = vld [vmem:[%s8323_s13 + $0x20] sm:$0xff]  ;;  %3617 = vmatpush.bf16.msrb.mxu2 %v5901_v59  ;;  %v5884_v23 = vld [vmem:[%s8323_s13 + $0x18] sm:$0xff] }
 0x653   : > { %v5910_v54 = vld [vmem:[%s8323_s13 + $0xe8] sm:$0xff]  ;;  %v5909_v39 = vld [vmem:[%s8323_s13 + $0xe0] sm:$0xff]  ;;  %v5908_v33 = vld [vmem:[%s8323_s13 + $0xd8] sm:$0xff] }
 0x654   : > { %v6054_v26 = vpack.i.bf16 %v3162_v28, %v3160_v10  ;;  %v6049_v55 = vpack.i.bf16 %v3161_v49, %v3159_v61  ;;  %3697 = vmatpush.bf16.msrb.mxu3 %v5910_v54  ;;  %v5892_v6 = vld [vmem:[%s8323_s13 + $0x58] sm:$0xff]  ;;  %v5899_v15 = vld [vmem:[%s8323_s13 + $0x90] sm:$0xff]  ;;  %v3256_v59 = vld [vmem:[%s8322_s12 + $0x8] sm:$0x3] }
 0x655   : > { %v5883_v45 = vld [vmem:[%s8323_s13 + $0x10] sm:$0xff] }
 0x656   : > { %6055 = vrot.lane.b32.xlu1 %v6054_v26, %s6129_s30  ;;  %6050 = vrot.lane.b32.xlu0 %v6049_v55, %s6129_s30  ;;  %v5907_v5 = vld [vmem:[%s8323_s13 + $0xd0] sm:$0xff]  ;;  %v5882_v26 = vld [vmem:[%s8323_s13 + $0x8] sm:$0xff]  ;;  %s540_s30 = scalar_lea.vmem [#allocation3], %s539_s18 }
 0x657   : > { %3618 = vmatpush.bf16.msrb.mxu2 %v5900_v31  ;;  %v5906_v55 = vld [vmem:[%s8323_s13 + $0xc8] sm:$0xff]  ;;  %s4084_s17 = sshll.u32 %s540_s30, 4  ;;  %s4085_s17 = int_to_ptr.vmem [resolvable:$true] %s4084_s17 }
 0x658   : > { %3698 = vmatpush.bf16.msrb.mxu3 %v5909_v39 }
 0x65b   : > { %3619 = vmatpush.bf16.msrb.mxu2 %v5899_v15 }
 0x65c   : > { %3699 = vmatpush.bf16.msrb.mxu3 %v5908_v33 }
 0x660   : > { %3700 = vmatpush.bf16.msrb.mxu3 %v5907_v5 }
 0x664   : > { %3701 = vmatpush.bf16.msrb.mxu3 %v5906_v55 }
 0x668   : > { %3702 = vmatpush.bf16.msrb.mxu3 %v5905_v37 }
 0x6c8   : > { %v6056_v24 = vpop.permute.xlu1 %6055  ;;  %v6051_v41 = vpop.permute.xlu0 %6050 }
 0x6c9   : > { %v6058_v57 = vunpack.i.h.bf16 %v6056_v24  ;;  %v6057_v13 = vunpack.i.l.bf16 %v6056_v24  ;;  %v6053_v50 = vunpack.i.h.bf16 %v6051_v41  ;;  %v6052_v51 = vunpack.i.l.bf16 %v6051_v41  ;;  %v5944_v24 = vld [vmem:[%s8323_s13 + $0x1f8] sm:$0xff]  ;;  %v5889_v41 = vld [vmem:[%s8323_s13 + $0x40] sm:$0xff] }
 0x6cb   : > { %v3173_v17 = vsel %vm3171_vm7, %v6053_v50, %v6058_v57  ;;  %v3175_v35 = vsel %vm3171_vm7, %v6058_v57, %v6053_v50  ;;  %v3172_v7 = vsel %vm3171_vm7, %v6052_v51, %v6057_v13  ;;  %v3174_v40 = vsel %vm3171_vm7, %v6057_v13, %v6052_v51  ;;  %v5928_v57 = vld [vmem:[%s8323_s13 + $0x178] sm:$0xff]  ;;  %v5935_v13 = vld [vmem:[%s8323_s13 + $0x1b0] sm:$0xff] }
 0x6cc   : > { %v3178_v20 = vmax.f32 %v3161_v49, %v3173_v17  ;;  %v3179_v36 = vmax.f32 %v3162_v28, %v3175_v35  ;;  %v3176_v47 = vmax.f32 %v3159_v61, %v3172_v7  ;;  %v3177_v32 = vmax.f32 %v3160_v10, %v3174_v40  ;;  %v5891_v49 = vld [vmem:[%s8323_s13 + $0x50] sm:$0xff]  ;;  %v5898_v61 = vld [vmem:[%s8323_s13 + $0x88] sm:$0xff] }
 0x6cd   : > { %3620 = vmatpush.bf16.msrb.mxu2 %v5898_v61  ;;  %v5919_v50 = vld [vmem:[%s8323_s13 + $0x130] sm:$0xff]  ;;  %v5934_v35 = vld [vmem:[%s8323_s13 + $0x1a8] sm:$0xff] }
 0x6ce   : > { %v3182_v62 = vpack.c.bf16 %v3178_v20, %v3176_v47  ;;  %v3183_v42 = vpack.c.bf16 %v3179_v36, %v3177_v32  ;;  %v5943_v51 = vld [vmem:[%s8323_s13 + $0x1f0] sm:$0xff]  ;;  %v5918_v7 = vld [vmem:[%s8323_s13 + $0x128] sm:$0xff]  ;;  %v5933_v36 = vld [vmem:[%s8323_s13 + $0x1a0] sm:$0xff] }
 0x6cf   : > { %v5927_v17 = vld [vmem:[%s8323_s13 + $0x170] sm:$0xff]  ;;  %v5942_v40 = vld [vmem:[%s8323_s13 + $0x1e8] sm:$0xff]  ;;  %v5917_v47 = vld [vmem:[%s8323_s13 + $0x120] sm:$0xff] }
 0x6d0   : > { %3200 = vmatpush.bf16.msra.mxu0 %v3182_v62  ;;  %3214 = vmatpush.bf16.msra.mxu1 %v3183_v42  ;;  %v5926_v20 = vld [vmem:[%s8323_s13 + $0x168] sm:$0xff]  ;;  %v5941_v32 = vld [vmem:[%s8323_s13 + $0x1e0] sm:$0xff]  ;;  %v5916_v62 = vld [vmem:[%s8323_s13 + $0x118] sm:$0xff] }
 0x6d1   : > { %3621 = vmatpush.bf16.msrb.mxu2 %v5897_v12  ;;  %v5940_v42 = vld [vmem:[%s8323_s13 + $0x1d8] sm:$0xff]  ;;  %v5945_v12 = vld [vmem:[%s8325_s15] sm:$0xff] }
 0x6d3   : > { %5196 = vmatmul.msk.bf16.vlgmr.msra.gmra.mxu0 %vm3189_vm8, %v5195_v60  ;;  %5197 = vmatmul.msk.bf16.vlgmr.msra.gmra.mxu1 %vm3189_vm8, %v5195_v60  ;;  %v5924_v60 = vld [vmem:[%s8323_s13 + $0x158] sm:$0xff] }
 0x6d4   : > { %3452 = vmatpush.bf16.msrb.mxu0 %v5888_v56  ;;  %3533 = vmatpush.bf16.msrb.mxu1 %v5896_v34  ;;  %v5922_v56 = vld [vmem:[%s8323_s13 + $0x148] sm:$0xff]  ;;  %v5913_v34 = vld [vmem:[%s8323_s13 + $0x100] sm:$0xff] }
 0x6d8   : > { %3453 = vmatpush.bf16.msrb.mxu0 %v5887_v14  ;;  %3534 = vmatpush.bf16.msrb.mxu1 %v5895_v27  ;;  %v3255_v14 = vld [vmem:[%s8322_s12] sm:$0xff] }
 0x6dc   : > { %3454 = vmatpush.bf16.msrb.mxu0 %v5886_v29  ;;  %3535 = vmatpush.bf16.msrb.mxu1 %v5894_v0 }
 0x6e0   : > { %3455 = vmatpush.bf16.msrb.mxu0 %v5885_v46  ;;  %3536 = vmatpush.bf16.msrb.mxu1 %v5893_v18 }
 0x6e4   : > { %3456 = vmatpush.bf16.msrb.mxu0 %v5884_v23  ;;  %3537 = vmatpush.bf16.msrb.mxu1 %v5892_v6 }
 0x6e8   : > { %3457 = vmatpush.bf16.msrb.mxu0 %v5883_v45  ;;  %3538 = vmatpush.bf16.msrb.mxu1 %v5891_v49 }
 0x6ec   : > { %3458 = vmatpush.bf16.msrb.mxu0 %v5882_v26  ;;  %3539 = vmatpush.bf16.msrb.mxu1 %v5890_v30 }
 0x6f0   : > { %3459 = vmatpush.bf16.msrb.mxu0 %v5881_v63  ;;  %3540 = vmatpush.bf16.msrb.mxu1 %v5889_v41 }
 0x6f4   : > { %3776 = vmatpush.bf16.msra.mxu0 %v5920_v4  ;;  %3857 = vmatpush.bf16.msra.mxu1 %v5928_v57 }
 0x6f8   : > { %3777 = vmatpush.bf16.msra.mxu0 %v5919_v50  ;;  %3858 = vmatpush.bf16.msra.mxu1 %v5927_v17 }
 0x6fc   : > { %3778 = vmatpush.bf16.msra.mxu0 %v5918_v7  ;;  %3859 = vmatpush.bf16.msra.mxu1 %v5926_v20 }
 0x700   : > { %3779 = vmatpush.bf16.msra.mxu0 %v5917_v47  ;;  %3860 = vmatpush.bf16.msra.mxu1 %v5925_v44 }
 0x704   : > { %3780 = vmatpush.bf16.msra.mxu0 %v5916_v62  ;;  %3861 = vmatpush.bf16.msra.mxu1 %v5924_v60 }
 0x708   : > { %3781 = vmatpush.bf16.msra.mxu0 %v5915_v9  ;;  %3862 = vmatpush.bf16.msra.mxu1 %v5923_v3 }
 0x70c   : > { %3782 = vmatpush.bf16.msra.mxu0 %v5914_v53  ;;  %3863 = vmatpush.bf16.msra.mxu1 %v5922_v56 }
 0x710   : > { %3783 = vmatpush.bf16.msra.mxu0 %v5913_v34  ;;  %3864 = vmatpush.bf16.msra.mxu1 %v5921_v16 }
 0x750   : > { %v3202_v28 = vpop.f32.mrf.mxu0  ;;  %v3216_v10 = vpop.f32.mrf.mxu1 }
 0x758   : > { %v3204_v43 = vpop.f32.mrf.mxu0  ;;  %v3218_v1 = vpop.f32.mrf.mxu1 }
 0x759   : > { %v3221_v38 = vpack.c.bf16 %v3204_v43, %v3202_v28  ;;  %v3222_v22 = vpack.c.bf16 %v3218_v1, %v3216_v10 }
 0x75b   : > { %3361 = vmatmul.bf16.vlgmr.msra.gmra.mxu2 %v3221_v38  ;;  %3375 = vmatmul.bf16.vlgmr.msra.gmra.mxu3 %v3222_v22 }
 0x75c   : > { %3938 = vmatpush.bf16.msra.mxu2 %v5936_v58  ;;  %4019 = vmatpush.bf16.msra.mxu3 %v5944_v24  ;;  %v3385_v58 = vld [vmem:[%s8324_s14] sm:$0x1] }
 0x760   : > { %3939 = vmatpush.bf16.msra.mxu2 %v5935_v13  ;;  %4020 = vmatpush.bf16.msra.mxu3 %v5943_v51 }
 0x764   : > { %3940 = vmatpush.bf16.msra.mxu2 %v5934_v35  ;;  %4021 = vmatpush.bf16.msra.mxu3 %v5942_v40 }
 0x768   : > { %3941 = vmatpush.bf16.msra.mxu2 %v5933_v36  ;;  %4022 = vmatpush.bf16.msra.mxu3 %v5941_v32 }
 0x76c   : > { %3942 = vmatpush.bf16.msra.mxu2 %v5932_v25  ;;  %4023 = vmatpush.bf16.msra.mxu3 %v5940_v42 }
 0x770   : > { %3943 = vmatpush.bf16.msra.mxu2 %v5931_v8  ;;  %4024 = vmatpush.bf16.msra.mxu3 %v5939_v2 }
 0x774   : > { %3944 = vmatpush.bf16.msra.mxu2 %v5930_v19  ;;  %4025 = vmatpush.bf16.msra.mxu3 %v5938_v21  ;;  %v4037_v19 = vld [vmem:[%s8326_s16] sm:$0x1] }
 0x778   : > { %3945 = vmatpush.bf16.msra.mxu2 %v5929_v52  ;;  %4026 = vmatpush.bf16.msra.mxu3 %v5937_v48 }
 0x7de   : > { %v3362_v27 = vpop.f32.mrf.mxu2  ;;  %v3376_v11 = vpop.f32.mrf.mxu3 }
 0x7df   : > { %v3363_v29 = vadd.f32 %v3362_v27, %v3255_v14 }
 0x7e1   : > { %v3377_v54 = vadd.f32 %v3376_v11, %v3363_v29 }
 0x7e3   : > { %v3381_v0 = vmax.f32 %v3377_v54, 0.0 }
 0x7e5   : > { %3383 = vst [vmem:[#allocation2] sm:$0xff] %v3381_v0 }
 0x7e6   : > { %v3364_v46 = vpop.f32.mrf.mxu2  ;;  %v3378_v18 = vpop.f32.mrf.mxu3 }
 0x7e7   : > { %v3365_v39 = vadd.f32 %v3364_v46, %v3256_v59 }
 0x7e9   : > { %v3379_v31 = vadd.f32 %v3378_v18, %v3365_v39 }
 0x7eb   : > { %v3382_v23 = vmax.f32 %v3379_v31, 0.0 }
 0x7ec   : > { %v3547_v33 = vld [vmem:[#allocation2 + $0x3] sm:$0x1]  ;;  %v3386_v6 = vld [vmem:[#allocation2 + $0x1] sm:$0x1]  ;;  %v3628_v15 = vld [vmem:[#allocation2 + $0x4] sm:$0x1] }
 0x7ed   : > { %v3548_v45 = vpack.c.bf16 %v3547_v33, %v3547_v33  ;;  %v3387_v5 = vpack.c.bf16 %v3386_v6, %v3386_v6  ;;  %v3629_v49 = vpack.c.bf16 %v3628_v15, %v3628_v15  ;;  %3384 = vst [vmem:[#allocation2 + $0x8] sm:$0x3] %v3382_v23  ;;  %v3466_v28 = vld [vmem:[#allocation2 + $0x2] sm:$0x1]  ;;  %v3871_v61 = vld [vmem:[#allocation2 + $0x7] sm:$0x1] }
 0x7ee   : > { %v3467_v10 = vpack.c.bf16 %v3466_v28, %v3466_v28  ;;  %v3709_v26 = vld [vmem:[#allocation2 + $0x5] sm:$0x1]  ;;  %v3790_v43 = vld [vmem:[#allocation2 + $0x6] sm:$0x1]  ;;  %v3872_v1 = vpack.c.bf16 %v3871_v61, %v3871_v61 }
 0x7ef   : > { %3622 = vmatmul.bf16.vlgmr.msrb.gmra.mxu2 %v3548_v45  ;;  %3460 = vmatmul.bf16.vlgmr.msrb.gmra.mxu0 %v3387_v5  ;;  %v3710_v38 = vpack.c.bf16 %v3709_v26, %v3709_v26  ;;  %v3791_v30 = vpack.c.bf16 %v3790_v43, %v3790_v43 }
 0x7f0   : > { %3703 = vmatmul.bf16.vlgmr.msrb.gmra.mxu3 %v3629_v49  ;;  %3541 = vmatmul.bf16.vlgmr.msrb.gmra.mxu1 %v3467_v10 }
 0x7f1   : > { %4054 = vmatpush.bf16.msrb.mxu0 %v5945_v12 }
 0x7f4   : > { %v3952_v55 = vld [vmem:[#allocation2 + $0x8] sm:$0x1] }
 0x7f5   : > { %v3953_v22 = vpack.c.bf16 %v3952_v55, %v3952_v55 }
 0x7ff   : > { %3946 = vmatmul.bf16.vlgmr.msra.gmra.mxu2 %v3872_v1  ;;  %3784 = vmatmul.bf16.vlgmr.msra.gmra.mxu0 %v3710_v38 }
 0x800   : > { %4027 = vmatmul.bf16.vlgmr.msra.gmra.mxu3 %v3953_v22  ;;  %3865 = vmatmul.bf16.vlgmr.msra.gmra.mxu1 %v3791_v30 }
 0x86c   : > { %v3461_v63 = vpop.f32.mrf.mxu0 }
 0x86d   : > { %v3542_v37 = vpop.f32.mrf.mxu1  ;;  %v3465_v4 = vadd.f32 %v3461_v63, %v3385_v58 }
 0x86f   : > { %v3546_v13 = vadd.f32 %v3542_v37, %v3465_v4 }
 0x872   : > { %v3623_v24 = vpop.f32.mrf.mxu2 }
 0x873   : > { %v3704_v41 = vpop.f32.mrf.mxu3  ;;  %v3627_v51 = vadd.f32 %v3623_v24, %v3546_v13 }
 0x874   : > { %v3463_v57 = vpop.f32.mrf.mxu0 }
 0x875   : > { %v3544_v50 = vpop.f32.mrf.mxu1  ;;  %v3708_v35 = vadd.f32 %v3704_v41, %v3627_v51 }
 0x87a   : > { %v3625_v17 = vpop.f32.mrf.mxu2 }
 0x87b   : > { %v3706_v7 = vpop.f32.mrf.mxu3 }
 0x87c   : > { %v3785_v40 = vpop.f32.mrf.mxu0 }
 0x87d   : > { %v3789_v20 = vadd.f32 %v3785_v40, %v3708_v35  ;;  %v3866_v36 = vpop.f32.mrf.mxu1 }
 0x87f   : > { %v3870_v47 = vadd.f32 %v3866_v36, %v3789_v20 }
 0x882   : > { %v3947_v32 = vpop.f32.mrf.mxu2 }
 0x883   : > { %v3951_v44 = vadd.f32 %v3947_v32, %v3870_v47  ;;  %v4028_v25 = vpop.f32.mrf.mxu3 }
 0x884   : > { %v3787_v62 = vpop.f32.mrf.mxu0 }
 0x885   : > { %v4032_v42 = vadd.f32 %v4028_v25, %v3951_v44  ;;  %v3868_v60 = vpop.f32.mrf.mxu1 }
 0x887   : > { %v4033_v8 = vmax.f32 %v4032_v42, 0.0 }
 0x889   : > { %v4034_v9 = vpack.c.bf16 %v4033_v8, %v4033_v8 }
 0x88a   : > { %v3949_v2 = vpop.f32.mrf.mxu2 }
 0x88b   : > { %5634 = vmatmul.msk.bf16.vlgmr.msrb.gmra.mxu0 %vm3189_vm8, %v4034_v9  ;;  %v4030_v3 = vpop.f32.mrf.mxu3 }
 0x908   : > { %v4056_v53 = vpop.f32.mrf.mxu0 }
 0x909   : > { %v4057_v21 = vadd.f32 %v4056_v53, %v4037_v19 }
 0x90b   : > { %v4061_v56 = vsel %vm4060_vm9, %v4057_v21, -inf }
 0x90c   : > { %4062 = vmax.xlane.f32.xlu2 %v4061_v56 }
 0x910   : > { %v4058_v52 = vpop.f32.mrf.mxu0 }
 0x97f   : > { %v4063_v34 = vpop.xlane.xlu2 %4062 }
 0x980   : > { %v4064_v48 = vsub.f32 %v4057_v21, %v4063_v34 }
 0x982   : > { %v4065_v14 = vmul.f32 1.442695, %v4064_v48 }
 0x984   : > { %6059 = vpow2.f32 %v4065_v14 }
 0x98a   : > { %v6060_v16 = vpop.eup %6059 }
 0x98b   : > { %v4067_v27 = vsel %vm4060_vm9, %v6060_v16, 0.0 }
 0x98c   : > { %4068 = vadd.xlane.f32.xlu0 %v4067_v27 }
 0x9ff   : > { %v4069_v11 = vpop.xlane.xlu0 %4068 }
 0xa00   : > { %6061 = vrcp.f32 %v4069_v11 }
 0xa06   : > { %v6062_v29 = vpop.eup %6061 }
 0xa07   : > { %v4071_v54 = vmul.f32 %v6062_v29, %v6060_v16 }
 0xa09   : > { %4072 = vst [vmem:[%s540_s30] sm:$0x1] %v4071_v54 }
 0xa0a   : > { %6090 = shalt.err (!%p6087_p3)
}
 0xa0b   : > { %5947 = dma.vmem_to_hbm [thread:$0]  (%p6258_p5), %s4085_s17, 16, %s4087_s1, %s4074_s29  }
 0xa0c PF: > { %s8365_s18 = sld [smem:[#allocation8_spill]] }
 0xa0d   : > { %s8366_s24 = sld [smem:[#allocation6_spill]] }
 0xa12   : > { %p5953_p4 = scmp.ge.s32.totalorder %s8365_s18, 2 }
 0xa13   : > { %s4098_s30 = sand.u32 1, %s8366_s24  }
 0xa14   : > { %p5950_p7 = pnand %p5953_p4, %p6262_p6  ;;  %s4099_s2 = scalar_lea.sflag [#allocation4], %s4098_s30 }
 0xa16   : > { %p5951_p8 = pneg %p5950_p7 }
 0xa18   : > { %6108 = dma.done.wait (%p5951_p8), %s4099_s2, 16  }
 0xa19   : > { %6110 = vsyncadd (%p5951_p8), %s4099_s2, 4294967280  ;;  %s8368_s27 = sld [smem:[#allocation9_spill]]  ;;  %s8371_s24 = smov %s6117_s25 }
 0xa1a   : > { %s8369_s3 = sld [smem:[#allocation7_spill]] }
 0xa1b   : > { %s8370_s26 = sld [smem:[#allocation10_spill]] }
 0xa1f   : > { %p27_p9 = scmp.ge.s32.totalorder %s8368_s27, 4  }
 0xa20   : > { %s8372_s25 = smov %s8369_s3 }
 0xa21   :  { %29 = sbr.rel (!%p27_p9) target bundleno = 9 (0x9), region = 136 }
 0xa26   :  { %4104 = vsyncpa [#allocation4], 1 }
 0xa27   :  { %4106 = vsyncpa [#allocation4 + $0x1], 1 }

</bundles_post_ra>
